<compile_context>
chip_gen: v7x
topology: tpu7x:2x2x1
jax: 0.10.0
libtpu: 0.0.40
codegen_flags: <defaults>
</compile_context>

<pallas_src>
import functools

import jax
import jax.numpy as jnp
from jax import lax
from jax.experimental import pallas as pl
from jax.experimental.pallas import tpu as pltpu


def _round_up(x, m):
    return (x + m - 1) // m * m


def _vmem_limit_bytes():
    """Generation-aware VMEM request: leave headroom for compiler scratch."""
    cap = 128 * 1024 * 1024
    try:
        cap = int(pltpu.get_tpu_info().vmem_capacity_bytes)
    except Exception:
        pass
    return max(32 * 1024 * 1024, cap - 16 * 1024 * 1024)


def _repconv_kernel(x_ref, w_ref, b_ref, o_ref, xc_ref, *, wp, sp, c1p):
    """One image per grid step: 3x3 same-conv (stride 1) + bias + SiLU.

    x_ref:  (1, Sp, C1p)      bf16  flattened zero-padded NHWC image
    w_ref:  (3, 3*C1p, C2p)   bf16  fused weight, dy-major; K packed dx-major
    b_ref:  (1, C2p)          f32   fused bias
    o_ref:  (1, Sp, C2p)      bf16  padded output slab (interior sliced outside)
    xc_ref: (Sp, 3*C1p)       bf16  scratch: dx-packed LHS [x[s-1] | x[s] | x[s+1]]
    """
    x = x_ref[0]                                   # (Sp, C1p) bf16

    # Build the dx-packed LHS.  The +-1 flat-spatial shifts run on an f32 copy
    # (32-bit sublane rolls are the well-supported XLU path) and are stored back
    # as bf16 (exact round trip); the center block is copied as-is.
    x32 = x.astype(jnp.float32)
    xc_ref[:, 0 * c1p:1 * c1p] = (
        pltpu.roll(x32, shift=1, axis=0).astype(jnp.bfloat16))        # x[s-1]
    xc_ref[:, 1 * c1p:2 * c1p] = x                                    # x[s]
    xc_ref[:, 2 * c1p:3 * c1p] = (
        pltpu.roll(x32, shift=sp - 1, axis=0).astype(jnp.bfloat16))   # x[s+1]
    xc = xc_ref[...]                               # (Sp, 3*C1p) bf16

    # One deep-K matmul per kernel row dy; only dy != 1 needs a whole-sublane
    # (+-Wp) roll of the f32 result before accumulation.
    acc = jnp.dot(xc, w_ref[1], preferred_element_type=jnp.float32)   # dy=1 (center)
    g0 = jnp.dot(xc, w_ref[0], preferred_element_type=jnp.float32)    # dy=0 (top)
    acc = acc + pltpu.roll(g0, shift=wp, axis=0)       # acc[s] += g0[s - Wp]
    g2 = jnp.dot(xc, w_ref[2], preferred_element_type=jnp.float32)    # dy=2 (bottom)
    acc = acc + pltpu.roll(g2, shift=sp - wp, axis=0)  # acc[s] += g2[s + Wp]

    z = acc + b_ref[...]                           # (Sp, C2p) + (1, C2p) broadcast
    o_ref[0] = (z * jax.nn.sigmoid(z)).astype(o_ref.dtype)   # SiLU, bf16 out


def repconv_forward_nhwc(x_nhwc, w_eq_hwio, b_eq, out_dtype=jnp.bfloat16):
    """x_nhwc: (N, H, W, C1) -> (N, H, W, C2) in out_dtype."""
    N, H, W, C1 = x_nhwc.shape
    C2 = w_eq_hwio.shape[-1]

    C1p = _round_up(C1, 128)
    C2p = _round_up(C2, 128)
    Hp = H + 2
    Wp = _round_up(W + 2, 8)     # sublane-aligned row stride => +-Wp rolls are whole-sublane
    S = Hp * Wp
    Sp = _round_up(S, 16)        # bf16 sublane-tile friendly

    # Roll-wrap invariant (see module header): wrapped values only ever reach
    # rows py in {0, Hp-1}, padding columns, or the [S, Sp) tail -- all discarded.
    assert Wp >= W + 2 and Hp == H + 2 and Wp % 8 == 0 and Sp >= S and Sp % 16 == 0

    # Zero-pad spatially ("same" conv + alignment) and channel-wise (lane density),
    # flatten spatial.  Cheap layout plumbing; fused by XLA under jit.
    x_pad = jnp.pad(x_nhwc.astype(jnp.bfloat16),
                    ((0, 0), (1, 1), (1, Wp - W - 1), (0, C1p - C1)))
    x_flat = x_pad.reshape(N, S, C1p)
    if Sp != S:
        x_flat = jnp.pad(x_flat, ((0, 0), (0, Sp - S), (0, 0)))

    # Fused weight HWIO (3,3,C1,C2) -> (3 [dy], 3*C1p [K = dx-major, c-minor], C2p) bf16.
    w_pad = jnp.pad(w_eq_hwio, ((0, 0), (0, 0), (0, C1p - C1), (0, C2p - C2)))
    w_cat = w_pad.reshape(3, 3 * C1p, C2p).astype(jnp.bfloat16)

    b_pad = jnp.pad(b_eq, (0, C2p - C2)).reshape(1, C2p).astype(jnp.float32)

    kernel = functools.partial(_repconv_kernel, wp=Wp, sp=Sp, c1p=C1p)

    out_slab = pl.pallas_call(
        kernel,
        out_shape=jax.ShapeDtypeStruct((N, Sp, C2p), out_dtype),
        grid_spec=pltpu.PrefetchScalarGridSpec(
            num_scalar_prefetch=0,
            grid=(N,),
            in_specs=[
                pl.BlockSpec((1, Sp, C1p), lambda n: (n, 0, 0)),
                pl.BlockSpec((3, 3 * C1p, C2p), lambda n: (0, 0, 0)),
                pl.BlockSpec((1, C2p), lambda n: (0, 0)),
            ],
            out_specs=pl.BlockSpec((1, Sp, C2p), lambda n: (n, 0, 0)),
            scratch_shapes=[pltpu.VMEM((Sp, 3 * C1p), jnp.bfloat16)],
        ),
        compiler_params=pltpu.CompilerParams(
            dimension_semantics=("parallel",),
            vmem_limit_bytes=_vmem_limit_bytes(),
        ),
    )(x_flat, w_cat, b_pad)

    # Slice valid interior rows/cols and real output channels.
    return out_slab[:, :S, :C2].reshape(N, Hp, Wp, C2)[:, 1:H + 1, 1:W + 1, :]


def repconv_forward(x_nchw, w_eq_hwio, b_eq, out_dtype=jnp.bfloat16):
    """NCHW wrapper matching the torch module: (N, C1, H, W) -> (N, C2, H, W)."""
    x_nhwc = jnp.transpose(x_nchw, (0, 2, 3, 1))
    out_nhwc = repconv_forward_nhwc(x_nhwc, w_eq_hwio, b_eq, out_dtype)
    return jnp.transpose(out_nhwc, (0, 3, 1, 2))


def build_repconv_params(key, c1, c2, eps=1e-5):
    """Deterministic parameter init mirroring RepConv.__init__ (g=1, bn=False),
    then fuse BN (eval mode) + 1x1 branch into one equivalent 3x3 kernel/bias."""
    ks = jax.random.split(key, 8)
    # conv1: Conv2d(c1, c2, 3) weight (OIHW), no bias; BatchNorm2d(c2)
    w3 = jax.random.normal(ks[0], (c2, c1, 3, 3), jnp.float32) * 0.1
    g1 = 1.0 + 0.1 * jax.random.normal(ks[1], (c2,), jnp.float32)
    b1 = 0.1 * jax.random.normal(ks[2], (c2,), jnp.float32)
    m1 = 0.1 * jax.random.normal(ks[3], (c2,), jnp.float32)
    v1 = jnp.abs(jax.random.normal(ks[4], (c2,), jnp.float32)) + 0.5
    # conv2: Conv2d(c1, c2, 1) weight (OIHW), no bias; BatchNorm2d(c2)
    w1 = jax.random.normal(ks[5], (c2, c1, 1, 1), jnp.float32) * 0.1
    g2 = 1.0 + 0.1 * jax.random.normal(ks[6], (c2,), jnp.float32)
    b2 = 0.1 * jax.random.normal(ks[7], (c2,), jnp.float32)
    m2 = jnp.zeros((c2,), jnp.float32)
    v2 = jnp.ones((c2,), jnp.float32)

    # _fuse_bn_tensor for each branch (eval-mode BN running stats).
    std1 = jnp.sqrt(v1 + eps)
    k3 = w3 * (g1 / std1)[:, None, None, None]
    bias3 = b1 - m1 * g1 / std1

    std2 = jnp.sqrt(v2 + eps)
    k1 = w1 * (g2 / std2)[:, None, None, None]
    bias1 = b2 - m2 * g2 / std2

    # _pad_1x1_to_3x3_tensor and sum (bn=False -> no identity branch).
    k1_padded = jnp.pad(k1, ((0, 0), (0, 0), (1, 1), (1, 1)))
    w_eq_oihw = k3 + k1_padded
    b_eq = bias3 + bias1

    # OIHW -> HWIO for the kernel's (K, C2) matmuls.
    w_eq_hwio = jnp.transpose(w_eq_oihw, (2, 3, 1, 0))
    return w_eq_oihw, w_eq_hwio, b_eq


def _silu(x):
    return x * jax.nn.sigmoid(x)


def _conv_ref(x, w_oihw, b):
    y = lax.conv_general_dilated(
        x, w_oihw, window_strides=(1, 1), padding=((1, 1), (1, 1)),
        dimension_numbers=("NCHW", "OIHW", "NCHW"),
    ) + b[None, :, None, None]
    return _silu(y)


if __name__ == "__main__":
    key = jax.random.PRNGKey(0)
    kx, kp = jax.random.split(key)

    N, C1, C2, H, W = 2, 4, 8, 16, 16
    x = jax.random.normal(kx, (N, C1, H, W), jnp.float32)

    w_eq_oihw, w_eq_hwio, b_eq = build_repconv_params(kp, C1, C2)

    fwd = jax.jit(repconv_forward)
    out = jax.block_until_ready(fwd(x, w_eq_hwio, b_eq))
    assert out.shape == (N, C2, H, W)
    assert out.dtype == jnp.bfloat16
    out_f32 = out.astype(jnp.float32)

    # Tight check: reference computed from the same bf16-rounded inputs/weights
    # (f32 accumulation in both); tolerance covers the kernel's bf16 output cast.
    x_q = x.astype(jnp.bfloat16).astype(jnp.float32)
    w_q = w_eq_oihw.astype(jnp.bfloat16).astype(jnp.float32)
    ref_bf = _conv_ref(x_q, w_q, b_eq)
    assert jnp.allclose(out_f32, ref_bf, atol=1e-2, rtol=1e-2)

    # Loose check against the full-f32 RepConv eval-mode forward (semantics;
    # tolerance loosened for the bf16 activation/weight/output casts).
    ref_f32 = _conv_ref(x, w_eq_oihw, b_eq)
    assert jnp.allclose(out_f32, ref_f32, atol=5e-2, rtol=5e-2)

    print("KERNEL_OK")
</pallas_src>

<mosaic_0001>
module attributes {stable_mosaic.version = 11 : i64} {
  func.func @_repconv_kernel(%arg0: i32, %arg1: memref<1x432x128xbf16, #tpu.memory_space<vmem>>, %arg2: memref<3x384x128xbf16, #tpu.memory_space<vmem>>, %arg3: memref<1x128xf32, #tpu.memory_space<vmem>>, %arg4: memref<1x432x128xbf16, #tpu.memory_space<vmem>>, %arg5: memref<432x384xbf16, #tpu.memory_space<vmem>>) attributes {dimension_semantics = [#tpu.dimension_semantics<parallel>], iteration_bounds = array<i64: 2>, scalar_prefetch = 0 : i64, scratch_operands = 1 : i64, tpu.core_type = #tpu.core_type<tc>, window_params = [{transform_indices = @transform_0, window_bounds = array<i64: 1, 432, 128>}, {pipeline_mode = #tpu.pipeline_mode<synchronous>, transform_indices = @transform_1, window_bounds = array<i64: 3, 384, 128>}, {pipeline_mode = #tpu.pipeline_mode<synchronous>, transform_indices = @transform_2, window_bounds = array<i64: 1, 128>}, {transform_indices = @transform_3, window_bounds = array<i64: 1, 432, 128>}]} {
    %c0 = arith.constant 0 : index
    %c0_0 = arith.constant 0 : index
    %c0_1 = arith.constant 0 : index
    %0 = vector.load %arg1[%c0, %c0_0, %c0_1] : memref<1x432x128xbf16, #tpu.memory_space<vmem>>, vector<1x432x128xbf16>
    %1 = vector.shape_cast %0 : vector<1x432x128xbf16> to vector<432x128xbf16>
    %2 = arith.extf %1 : vector<432x128xbf16> to vector<432x128xf32>
    %c1_i32 = arith.constant 1 : i32
    %3 = tpu.dynamic_rotate %2 by %c1_i32 dim 0 : vector<432x128xf32>, i32 -> vector<432x128xf32>
    %4 = arith.truncf %3 : vector<432x128xf32> to vector<432x128xbf16>
    %c0_2 = arith.constant 0 : index
    %c0_3 = arith.constant 0 : index
    %5 = vector.load %arg5[%c0_2, %c0_3] : memref<432x384xbf16, #tpu.memory_space<vmem>>, vector<432x128xbf16>
    tpu.vector_store %arg5[%c0_2, %c0_3], %4 {strides = array<i32>} : memref<432x384xbf16, #tpu.memory_space<vmem>>, vector<432x128xbf16>,
    %c0_4 = arith.constant 0 : index
    %c128 = arith.constant 128 : index
    %6 = vector.load %arg5[%c0_4, %c128] : memref<432x384xbf16, #tpu.memory_space<vmem>>, vector<432x128xbf16>
    tpu.vector_store %arg5[%c0_4, %c128], %1 {strides = array<i32>} : memref<432x384xbf16, #tpu.memory_space<vmem>>, vector<432x128xbf16>,
    %c431_i32 = arith.constant 431 : i32
    %7 = tpu.dynamic_rotate %2 by %c431_i32 dim 0 : vector<432x128xf32>, i32 -> vector<432x128xf32>
    %8 = arith.truncf %7 : vector<432x128xf32> to vector<432x128xbf16>
    %c0_5 = arith.constant 0 : index
    %c256 = arith.constant 256 : index
    %9 = vector.load %arg5[%c0_5, %c256] : memref<432x384xbf16, #tpu.memory_space<vmem>>, vector<432x128xbf16>
    tpu.vector_store %arg5[%c0_5, %c256], %8 {strides = array<i32>} : memref<432x384xbf16, #tpu.memory_space<vmem>>, vector<432x128xbf16>,
    %c0_6 = arith.constant 0 : index
    %c0_7 = arith.constant 0 : index
    %10 = vector.load %arg5[%c0_6, %c0_7] : memref<432x384xbf16, #tpu.memory_space<vmem>>, vector<432x384xbf16>
    %c1 = arith.constant 1 : index
    %c0_8 = arith.constant 0 : index
    %c0_9 = arith.constant 0 : index
    %11 = vector.load %arg2[%c1, %c0_8, %c0_9] : memref<3x384x128xbf16, #tpu.memory_space<vmem>>, vector<1x384x128xbf16>
    %12 = vector.shape_cast %11 : vector<1x384x128xbf16> to vector<384x128xbf16>
    %cst = arith.constant dense<0.000000e+00> : vector<432x128xf32>
    %13 = tpu.matmul %10, %12, %cst {dimension_numbers = #tpu.dot_dimension_numbers<[1], [0], [0], [1], [0, 0, 1, 1], [], []>} : vector<432x384xbf16>, vector<384x128xbf16>, vector<432x128xf32> -> vector<432x128xf32>
    %c0_10 = arith.constant 0 : index
    %c0_11 = arith.constant 0 : index
    %c0_12 = arith.constant 0 : index
    %14 = vector.load %arg2[%c0_10, %c0_11, %c0_12] : memref<3x384x128xbf16, #tpu.memory_space<vmem>>, vector<1x384x128xbf16>
    %15 = vector.shape_cast %14 : vector<1x384x128xbf16> to vector<384x128xbf16>
    %cst_13 = arith.constant dense<0.000000e+00> : vector<432x128xf32>
    %16 = tpu.matmul %10, %15, %cst_13 {dimension_numbers = #tpu.dot_dimension_numbers<[1], [0], [0], [1], [0, 0, 1, 1], [], []>} : vector<432x384xbf16>, vector<384x128xbf16>, vector<432x128xf32> -> vector<432x128xf32>
    %c24_i32 = arith.constant 24 : i32
    %17 = tpu.dynamic_rotate %16 by %c24_i32 dim 0 : vector<432x128xf32>, i32 -> vector<432x128xf32>
    %18 = arith.addf %13, %17 : vector<432x128xf32>
    %c2 = arith.constant 2 : index
    %c0_14 = arith.constant 0 : index
    %c0_15 = arith.constant 0 : index
    %19 = vector.load %arg2[%c2, %c0_14, %c0_15] : memref<3x384x128xbf16, #tpu.memory_space<vmem>>, vector<1x384x128xbf16>
    %20 = vector.shape_cast %19 : vector<1x384x128xbf16> to vector<384x128xbf16>
    %cst_16 = arith.constant dense<0.000000e+00> : vector<432x128xf32>
    %21 = tpu.matmul %10, %20, %cst_16 {dimension_numbers = #tpu.dot_dimension_numbers<[1], [0], [0], [1], [0, 0, 1, 1], [], []>} : vector<432x384xbf16>, vector<384x128xbf16>, vector<432x128xf32> -> vector<432x128xf32>
    %c408_i32 = arith.constant 408 : i32
    %22 = tpu.dynamic_rotate %21 by %c408_i32 dim 0 : vector<432x128xf32>, i32 -> vector<432x128xf32>
    %23 = arith.addf %18, %22 : vector<432x128xf32>
    %c0_17 = arith.constant 0 : index
    %c0_18 = arith.constant 0 : index
    %24 = vector.load %arg3[%c0_17, %c0_18] : memref<1x128xf32, #tpu.memory_space<vmem>>, vector<1x128xf32>
    %25 = vector.broadcast %24 : vector<1x128xf32> to vector<432x128xf32>
    %26 = arith.addf %23, %25 : vector<432x128xf32>
    %27 = arith.negf %26 : vector<432x128xf32>
    %28 = math.exp %27 : vector<432x128xf32>
    %cst_19 = arith.constant 1.000000e+00 : f32
    %29 = vector.broadcast %cst_19 : f32 to vector<432x128xf32>
    %30 = arith.addf %29, %28 : vector<432x128xf32>
    %31 = arith.divf %29, %30 : vector<432x128xf32>
    %32 = arith.mulf %26, %31 : vector<432x128xf32>
    %33 = arith.truncf %32 : vector<432x128xf32> to vector<432x128xbf16>
    %c0_20 = arith.constant 0 : index
    %c0_21 = arith.constant 0 : index
    %c0_22 = arith.constant 0 : index
    %34 = vector.load %arg4[%c0_20, %c0_21, %c0_22] : memref<1x432x128xbf16, #tpu.memory_space<vmem>>, vector<1x432x128xbf16>
    %35 = vector.shape_cast %34 : vector<1x432x128xbf16> to vector<432x128xbf16>
    %36 = vector.shape_cast %33 : vector<432x128xbf16> to vector<1x432x128xbf16>
    tpu.vector_store %arg4[%c0_20, %c0_21, %c0_22], %36 {strides = array<i32>} : memref<1x432x128xbf16, #tpu.memory_space<vmem>>, vector<1x432x128xbf16>,
    return
  }
  func.func @transform_0(%arg0: i32) -> (i32, i32, i32) {
    %c0_i32 = arith.constant 0 : i32
    %c0_i32_0 = arith.constant 0 : i32
    %c0_i32_1 = arith.constant 0 : i32
    return %arg0, %c0_i32, %c0_i32_0 : i32, i32, i32
  }
  func.func @transform_1(%arg0: i32) -> (i32, i32, i32) {
    %c0_i32 = arith.constant 0 : i32
    %c0_i32_0 = arith.constant 0 : i32
    %c0_i32_1 = arith.constant 0 : i32
    %c0_i32_2 = arith.constant 0 : i32
    return %c0_i32, %c0_i32_0, %c0_i32_1 : i32, i32, i32
  }
  func.func @transform_2(%arg0: i32) -> (i32, i32) {
    %c0_i32 = arith.constant 0 : i32
    %c0_i32_0 = arith.constant 0 : i32
    %c0_i32_1 = arith.constant 0 : i32
    return %c0_i32, %c0_i32_0 : i32, i32
  }
  func.func @transform_3(%arg0: i32) -> (i32, i32, i32) {
    %c0_i32 = arith.constant 0 : i32
    %c0_i32_0 = arith.constant 0 : i32
    %c0_i32_1 = arith.constant 0 : i32
    return %arg0, %c0_i32, %c0_i32_0 : i32, i32, i32
  }
}

</mosaic_0001>

<bundles_post_ra>
// kernel: repconv_forward.1
= control target key start
LH: loop header
LB: loop body
LE: loop exit
PB: predicated region body
PF: predicated region fallthrough
CT: control target
= control target key end

     0   :  { %8 = vsyncpa [#allocation4], 0  ;;  %s7754_s0 = inlined_call_operand.hbm [shape: bf16[2,432,128], index: 0, kind: input, shape index: {}]   ;;  %s7755_s1 = inlined_call_operand.hbm [shape: bf16[3,384,128], index: 1, kind: input, shape index: {}]   ;;  %s7756_s2 = inlined_call_operand.hbm [shape: f32[1,128], index: 2, kind: input, shape index: {}]   ;;  %s7757_s3 = inlined_call_operand.hbm [shape: bf16[2,432,128], index: 3, kind: output, shape index: {}]  }
   0x1   :  { %10 = vsyncpa [#allocation4 + $0x1], 0 }
   0x2   :  { %11 = vsyncpa [#allocation7], 0 }
   0x3   :  { %12 = vsyncpa [#allocation5], 0 }
   0x4   :  { %14 = vsyncpa [#allocation5 + $0x1], 0  ;;  %s5548_s12 = smov 0   ;;  %s5550_s13 = smov 0  }
   0x5   :  { %s5552_s14 = smov 0   ;;  %s5554_s15 = smov 0  }
   0x6 LB: > { %s5569_s16 = sadd.s32 4294967295, %s5515_s15   ;;  %s3864_s17 = sadd.s32 4294967294, %s5515_s15   ;;  %s5515_s15 = sphi %s5554_s15, %s8036_s15   ;;  %s5511_s14 = sphi %s5552_s14, %s8035_s14   ;;  %s5507_s13 = sphi %s5550_s13, %s8034_s13   ;;  %s5503_s12 = sphi %s5548_s12, %s8033_s12  }
   0x7   : > { %p40_p0 = scmp.ne.s32.totalorder %s5507_s13, %s5503_s12  ;;  %p7758_p1 = scmp.eq.s32.totalorder %s5569_s16, 0 }
   0x8   : > { %p112_p3 = scmp.eq.s32.totalorder %s3864_s17, 1  ;;  %p3865_p5 = scmp.ge.s32.totalorder %s5515_s15, 1 }
   0x9   : > { %p5578_p4 = por %p7758_p1, %p40_p0  ;;  %p119_p7 = scmp.lt.s32.totalorder %s5515_s15, 3 }
   0xa   : > { %p5583_p6 = por %p112_p3, %p40_p0  ;;  %s5517_s21 = smov [#allocation6]  }
   0xb   : > { %s7865_s18 = scalar_select %p5578_p4, 1, 0 }
   0xc   : > { %s7866_s19 = scalar_select %p5583_p6, 1, 0 }
   0xd   : > { %p5588_p8 = pnand %p3865_p5, %p119_p7  ;;  %s131_s22 = sshll.u32 %s5517_s21, 4  ;;  %s5592_s22 = int_to_ptr.vmem [resolvable:$true] %s131_s22 }
   0xe   : > { %s5518_s24 = smov [#allocation8]   ;;  %s5359_s28 = scalar_lea.hbm %s7755_s1, 9216 }
   0xf   : > { %p4954_p9 = pneg %p5588_p8  ;;  %s145_s25 = sshll.u32 %s5518_s24, 4  ;;  %s5603_s25 = int_to_ptr.vmem [resolvable:$true] %s145_s25 }
  0x10   : > { %p5360_p12 = scmp.ne.s32.totalorder %s7755_s1, %s5359_s28  ;;  %p5366_p5 = scmp.lt.u32.totalorder %s5359_s28, %s7755_s1 }
  0x11   : > { %p5599_p11 = pnand %p4954_p9, %p7758_p1 }
  0x13   : > { %p5361_p13 = pneg %p5599_p11 }
  0x15   : > { %p5362_p0 = pnand %p5361_p13, %p5360_p12 }
  0x17   : > { %p5363_p3 = pneg %p5362_p0 }
  0x19   : > { %p5368_p7 = pnand %p5366_p5, %p5363_p3 }
  0x1b   : > { %5371 = shalt.err (!%p5368_p7)
}
  0x1c   : > { %s5372_s6 = scalar_lea.vmem %s5592_s22, 9216  ;;  %p5380_p2 = scmp.lt.s32.totalorder %s5592_s22, %s5592_s22 }
  0x1d   : > { %p5373_p9 = scmp.ne.s32.totalorder %s5592_s22, %s5372_s6  ;;  %p5381_p12 = scmp.lt.s32.totalorder %s5372_s6, %s5372_s6 }
  0x1f   : > { %p5375_p10 = pnand %p5373_p9, %p5361_p13  ;;  %p5382_p0 = por %p5381_p12, %p5380_p2 }
  0x21   : > { %p5376_p1 = pneg %p5375_p10 }
  0x23   : > { %p5383_p6 = pnand %p5382_p0, %p5376_p1 }
  0x25   : > { %5386 = shalt.err (!%p5383_p6)
}
  0x26   : > { %s5519_s7 = smov 64   ;;  %s5520_s8 = smov 4  }
  0x27   : > { %4957 = dma.hbm_to_vmem [thread:$0]  (!%p5599_p11), %s7755_s1, 9216, %s5592_s22, [#allocation7], %s5519_s7, %s5519_s7, %s5520_s8  }
  0x28   : > { %s5387_s21 = scalar_lea.hbm %s7756_s2, 16 }
  0x29   : > { %p5388_p1 = scmp.ne.s32.totalorder %s7756_s2, %s5387_s21  ;;  %p5394_p10 = scmp.lt.u32.totalorder %s5387_s21, %s7756_s2 }
  0x2b   : > { %p5390_p2 = pnand %p5388_p1, %p5361_p13 }
  0x2d   : > { %p5391_p6 = pneg %p5390_p2 }
  0x2f   : > { %p5396_p3 = pnand %p5394_p10, %p5391_p6 }
  0x31   : > { %5399 = shalt.err (!%p5396_p3)
}
  0x32   : > { %s5400_s22 = scalar_lea.vmem %s5603_s25, 16  ;;  %s5407_s29 = scalar_lea.vmem %s5603_s25, 32 }
  0x33   : > { %p5401_p5 = scmp.ne.s32.totalorder %s5603_s25, %s5400_s22  ;;  %p5408_p12 = scmp.lt.s32.totalorder %s5603_s25, %s5603_s25 }
  0x34   : > { %p5409_p0 = scmp.lt.s32.totalorder %s5407_s29, %s5400_s22 }
  0x35   : > { %p5403_p7 = pnand %p5401_p5, %p5361_p13 }
  0x36   : > { %p5410_p1 = por %p5409_p0, %p5408_p12 }
  0x37   : > { %p5404_p9 = pneg %p5403_p7 }
  0x39   : > { %p5411_p2 = pnand %p5410_p1, %p5404_p9 }
  0x3b   : > { %5414 = shalt.err (!%p5411_p2)
}
  0x3c   : > { %4960 = dma.hbm_to_vmem [thread:$0]  (!%p5599_p11), %s7756_s2, 16, %s5603_s25, [#allocation7]  }
  0x3d   : > { %s5662_s5 = sadd.s32 1, %s5515_s15   ;;  %s27_s23 = sadd.s32 1, %s5511_s14 }
  0x3e   : > { %s24_s6 = ssub.s32 %s5515_s15, %s5662_s5  ;;  %p34_p13 = scmp.ne.s32.totalorder %s5511_s14, %s5507_s13 }
  0x3f   : > { %p25_p6 = scmp.eq.s32.totalorder %s24_s6, 0  ;;  %p35_p10 = scmp.eq.s32.totalorder %s5515_s15, 0 }
  0x40   : > { %p7869_p3 = scmp.eq.s32.totalorder %s5569_s16, 1  ;;  %p4971_p7 = scmp.lt.s32.totalorder %s5515_s15, 2 }
  0x41   : > { %s5678_s10 = scalar_select %p25_p6, %s5511_s14, %s27_s23  }
  0x42   : > { %p5672_p5 = por %p7869_p3, %p34_p13  ;;  %p36_p9 = por %p35_p10, %p34_p13 }
  0x43   : > { %s156_s11 = sand.u32 1, %s5511_s14   ;;  %s4939_s25 = smul.u32 3456, %s5515_s15 }
  0x44   : > { %s7870_s9 = scalar_select %p5672_p5, 1, 0 }
  0x45   : > { %s4938_s17 = smul.u32 216, %s156_s11  ;;  %p5682_p11 = pnand %p4971_p7, %p36_p9 }
  0x46   : > { %s5689_s27 = scalar_lea.hbm %s7754_s0, %s4939_s25  ;;  %s5693_s29 = scalar_lea.sflag [#allocation4], %s156_s11 }
  0x47   : > { %s160_s28 = scalar_lea.vmem [#allocation3], %s4938_s17  ;;  %s5415_s30 = scalar_lea.hbm %s5689_s27, 3456 }
  0x48   : > { %s167_s22 = sshll.u32 %s160_s28, 4  ;;  %p5416_p12 = scmp.ne.s32.totalorder %s5689_s27, %s5415_s30  ;;  %s5691_s22 = int_to_ptr.vmem [resolvable:$true] %s167_s22 }
  0x49   : > { %p5417_p0 = pneg %p5682_p11  ;;  %s5420_s6 = scalar_lea.hbm %s7754_s0, 6912 }
  0x4a   : > { %p5421_p13 = scmp.lt.u32.totalorder %s5689_s27, %s7754_s0  ;;  %p5422_p6 = scmp.lt.u32.totalorder %s5420_s6, %s5415_s30 }
  0x4b   : > { %p5418_p1 = pnand %p5417_p0, %p5416_p12  ;;  %p5424_p3 = scmp.lt.u32.totalorder %s5415_s30, %s5689_s27 }
  0x4c   : > { %p5423_p10 = por %p5422_p6, %p5421_p13 }
  0x4d   : > { %p5419_p2 = pneg %p5418_p1 }
  0x4e   : > { %p5425_p7 = por %p5424_p3, %p5423_p10 }
  0x50   : > { %p5426_p9 = pnand %p5425_p7, %p5419_p2 }
  0x52   : > { %5429 = shalt.err (!%p5426_p9)
}
  0x53   : > { %s5430_s11 = scalar_lea.vmem %s5691_s22, 3456  ;;  %s5521_s17 = smov [#allocation3]  }
  0x54   : > { %p5431_p12 = scmp.ne.s32.totalorder %s5691_s22, %s5430_s11  ;;  %s5435_s26 = sshll.u32 %s5521_s17, 4  ;;  %s5436_s26 = int_to_ptr.vmem [resolvable:$false] %s5435_s26 }
  0x55   : > { %s5437_s28 = scalar_lea.vmem %s5436_s26, 6912  ;;  %p5438_p4 = scmp.lt.s32.totalorder %s5691_s22, %s5436_s26 }
  0x56   : > { %p5433_p1 = pnand %p5431_p12, %p5417_p0  ;;  %p5439_p13 = scmp.lt.s32.totalorder %s5437_s28, %s5430_s11 }
  0x58   : > { %p5434_p5 = pneg %p5433_p1  ;;  %p5440_p6 = por %p5439_p13, %p5438_p4 }
  0x5a   : > { %p5441_p10 = pnand %p5440_p6, %p5434_p5 }
  0x5c   : > { %5444 = shalt.err (!%p5441_p10)
}
  0x5d   : > { %4964 = dma.hbm_to_vmem [thread:$0]  (!%p5682_p11), %s5689_s27, 3456, %s5691_s22, %s5693_s29, %s5519_s7, %s5519_s7, %s5520_s8  }
  0x5e   : > { %179 = sbr.rel (%p5588_p8) target bundleno = 1079 (0x437), region = 32 }
  0x65   : > { %s5727_s30 = sand.u32 1, %s5507_s13   ;;  %p7872_p4 = scmp.ne.s32.totalorder %s7865_s18, 0 }
  0x66   : > { %s4940_s4 = smul.u32 216, %s5727_s30  ;;  %s182_s23 = scalar_lea.sflag [#allocation4], %s5727_s30 }
  0x68   : > { %s5733_s21 = scalar_lea.vmem [#allocation3], %s4940_s4 }
  0x69   : > { %5490 = dma.done.wait (%p7872_p4), %s182_s23, 3456  }
  0x6a   : > { %5492 = vsyncadd (%p7872_p4), %s182_s23, 4294963840  ;;  %p7873_p5 = scmp.eq.s32.totalorder %s5569_s16, 0 }
  0x6c   : > { %5494 = dma.done.wait (%p7873_p5), [#allocation7], 9232   ;;  %p7874_p8 = pmov %p7873_p5 }
  0x6d   : > { %v5522_v0 = vmov 0   ;;  %v7771_v1 = vmov 0.0   ;;  %vm5524_vm0 = vmmov 0   ;;  %v5016_v2 = vld [vmem:[#allocation6] sm:$0xff]   ;;  %v5018_v4 = vld [vmem:[#allocation6 + $0x8] sm:$0xff]   ;;  %v5020_v6 = vld [vmem:[#allocation6 + $0x10] sm:$0xff]   ;;  %v379_v14 = vlaneseq }
  0x6e   : > { %5496 = vsyncadd (%p7874_p8), [#allocation7], 4294958064  ;;  %1164 = vmatprep.subr.bf16.mxu1 %v5522_v0  ;;  %4404 = vmatprep.subr.bf16.mxu0 %v7771_v1  ;;  %v5017_v3 = vld [vmem:[#allocation6 + $0x80] sm:$0xff]   ;;  %v5019_v5 = vld [vmem:[#allocation6 + $0x88] sm:$0xff]   ;;  %s7291_s18 = scalar_lea.vmem [#allocation9], %s4940_s4  ;;  %s4941_s20 = smul.u32 3456, %s5569_s16 }
  0x6f   : > { %4420 = vmatprep.mubr.msk.bf16.mxu0 %vm5524_vm0, %v7771_v1  ;;  %1165 = vmatpush1.bf16.msra.mxu1 %v5016_v2  ;;  %v5021_v7 = vld [vmem:[#allocation6 + $0x90] sm:$0xff]   ;;  %v5022_v8 = vld [vmem:[#allocation6 + $0x18] sm:$0xff]   ;;  %v5024_v10 = vld [vmem:[#allocation6 + $0x20] sm:$0xff]   ;;  %v5766_v20 = vshrl.u32 %v379_v14, 7  ;;  %s3772_s7 = sshll.u32 %s7291_s18, 4  ;;  %s3759_s29 = scalar_lea.sflag [#allocation5], %s5727_s30  ;;  %s7709_s7 = int_to_ptr.vmem [resolvable:$true] %s3772_s7 }
  0x70   : > { %4405 = vmatpush3.bf16.msra.mxu0 %v5017_v3  ;;  %1166 = vmatprep.subr.bf16.mxu1 %v5522_v0  ;;  %v5023_v9 = vld [vmem:[#allocation6 + $0x98] sm:$0xff]   ;;  %v5025_v11 = vld [vmem:[#allocation6 + $0xa0] sm:$0xff]   ;;  %v5756_v12 = vld [vmem:[%s5733_s21] sm:$0xff]   ;;  %s7707_s22 = scalar_lea.hbm %s7757_s3, %s4941_s20  ;;  %s5445_s6 = scalar_lea.vmem %s7709_s7, 3456 }
  0x71   : > { %4406 = vmatprep.subr.bf16.mxu0 %v7771_v1  ;;  %v5759_v13 = vld [vmem:[%s5733_s21 + $0x8] sm:$0xff]   ;;  %v5026_v15 = vld [vmem:[#allocation6 + $0x28] sm:$0xff]   ;;  %v271_v17 = vunpack.c.l.bf16 %v5756_v12  ;;  %v272_v18 = vunpack.c.h.bf16 %v5756_v12  ;;  %1196 = vmatprep.mubr.bf16.mxu1 %v5756_v12  ;;  %vm733_vm1 = vcmp.lt.s32.totalorder %v5766_v20, 7  ;;  %v5781_v26 = vld [vmem:[%s5733_s21 + $0x10] sm:$0xff]   ;;  %vm381_vm2 = vcmp.lt.s32.totalorder %v5766_v20, 1  ;;  %p5446_p11 = scmp.ne.s32.totalorder %s7709_s7, %s5445_s6  ;;  %p8030_p0 = scmp.ne.s32.totalorder %s7870_s9, 0 }
  0x72   : > { %v5027_v16 = vld [vmem:[#allocation6 + $0xa8] sm:$0xff]   ;;  %v273_v19 = vunpack.c.l.bf16 %v5759_v13  ;;  %v5028_v21 = vld [vmem:[#allocation6 + $0x30] sm:$0xff]   ;;  %v5030_v27 = vld [vmem:[#allocation6 + $0x38] sm:$0xff]   ;;  %v274_v31 = vunpack.c.h.bf16 %v5759_v13  ;;  %v275_v32 = vunpack.c.l.bf16 %v5781_v26  ;;  %v276_v40 = vunpack.c.h.bf16 %v5781_v26  ;;  %s5525_s16 = smov [#allocation9]  }
  0x73   : > { %1167 = vmatpush1.bf16.msra.mxu1 %v5018_v4  ;;  %v5029_v22 = vld [vmem:[#allocation6 + $0xb0] sm:$0xff]   ;;  %v5772_v23 = vrot.slane %v271_v17, 1  ;;  %v680_v24 = vrot.slane %v272_v18, 1  ;;  %v5031_v28 = vld [vmem:[#allocation6 + $0xb8] sm:$0xff]   ;;  %v5032_v34 = vld [vmem:[#allocation6 + $0x40] sm:$0xff]   ;;  %p5447_p2 = pnand %p5446_p11, %p8030_p0  ;;  %s5449_s25 = sshll.u32 %s5525_s16, 4  ;;  %s5450_s25 = int_to_ptr.vmem [resolvable:$false] %s5449_s25 }
  0x74   : > { %4407 = vmatpush3.bf16.msra.mxu0 %v5019_v5  ;;  %1168 = vmatprep.subr.bf16.mxu1 %v5522_v0  ;;  %v681_v25 = vrot.slane %v273_v19, 1  ;;  %v682_v35 = vrot.slane %v274_v31, 1  ;;  %v683_v36 = vrot.slane %v275_v32, 1  ;;  %v5800_v37 = vld [vmem:[%s5733_s21 + $0x18] sm:$0xff]   ;;  %v5034_v46 = vld [vmem:[#allocation6 + $0x50] sm:$0xff]   ;;  %v684_v47 = vrot.slane %v276_v40, 1  ;;  %p5452_p7 = scmp.lt.s32.totalorder %s7709_s7, %s5450_s25 }
  0x75   : > { %4408 = vmatprep.subr.bf16.mxu0 %v7771_v1  ;;  %v786_v30 = vsel %vm733_vm1, %v5772_v23, %v680_v24  ;;  %v5042_v38 = vld [vmem:[#allocation6 + $0x180] sm:$0xff]   ;;  %v5033_v39 = vld [vmem:[#allocation6 + $0x48] sm:$0xff]   ;;  %v277_v43 = vunpack.c.l.bf16 %v5800_v37  ;;  %v5049_v50 = vld [vmem:[#allocation6 + $0x190] sm:$0xff]   ;;  %v278_v52 = vunpack.c.h.bf16 %v5800_v37  ;;  %p5448_p3 = pneg %p5447_p2  ;;  %s5451_s24 = scalar_lea.vmem %s5450_s25, 6912 }
  0x76   : > { %v785_v29 = vsel %vm733_vm1, %v680_v24, %v681_v25  ;;  %v783_v41 = vsel %vm733_vm1, %v682_v35, %v683_v36  ;;  %v784_v42 = vsel %vm733_vm1, %v681_v25, %v682_v35  ;;  %v5046_v44 = vld [vmem:[#allocation6 + $0x188] sm:$0xff]   ;;  %v5035_v51 = vld [vmem:[#allocation6 + $0x58] sm:$0xff]   ;;  %v782_v55 = vsel %vm733_vm1, %v683_v36, %v684_v47  ;;  %v5036_v57 = vld [vmem:[#allocation6 + $0x60] sm:$0xff]   ;;  %p5453_p9 = scmp.lt.s32.totalorder %s5451_s24, %s5445_s6 }
  0x77   : > { %1169 = vmatpush1.bf16.msra.mxu1 %v5020_v6  ;;  %v5792_v33 = vpack.c.bf16 %v785_v29, %v786_v30  ;;  %v5814_v45 = vpack.c.bf16 %v783_v41, %v784_v42  ;;  %v685_v48 = vrot.slane %v277_v43, 1  ;;  %v5822_v49 = vld [vmem:[%s5733_s21 + $0x20] sm:$0xff]   ;;  %v5053_v56 = vld [vmem:[#allocation6 + $0x198] sm:$0xff]   ;;  %v686_v59 = vrot.slane %v278_v52, 1  ;;  %v5057_v63 = vld [vmem:[#allocation6 + $0x1a0] sm:$0xff]  }
  0x78   : > { %4409 = vmatpush3.bf16.msra.mxu0 %v5021_v7  ;;  %1170 = vmatprep.subr.bf16.mxu1 %v5522_v0  ;;  %v279_v53 = vunpack.c.l.bf16 %v5822_v49  ;;  %v5844_v61 = vld [vmem:[%s5733_s21 + $0xd4] sm:$0xf]  ;;  %v5847_v62 = vld [vmem:[%s5733_s21 + $0x28] sm:$0xff]   ;;  %v280_v2 = vunpack.c.h.bf16 %v5822_v49  ;;  %v5037_v3 = vld [vmem:[#allocation6 + $0x68] sm:$0xff]   ;;  %v325_v7 = vrot.slane %v271_v17, 7  ;;  %p5454_p12 = por %p5453_p9, %p5452_p7 }
  0x79   : > { %4410 = vmatprep.subr.bf16.mxu0 %v7771_v1  ;;  %7875 = vst [vmem:[#allocation13_spill] sm:$0xff] %v5792_v33  ;;  %7876 = vst [vmem:[#allocation14_spill] sm:$0xff] %v5814_v45  ;;  %v781_v54 = vsel %vm733_vm1, %v684_v47, %v685_v48  ;;  %v7761_v4 = vunpack.c.l.bf16 %v5844_v61  ;;  %v780_v6 = vsel %vm733_vm1, %v685_v48, %v686_v59  ;;  %v5876_v17 = vld [vmem:[%s5733_s21 + $0x30] sm:$0xff]   ;;  %v282_v29 = vunpack.c.h.bf16 %v5847_v62  ;;  %v5907_v42 = vld [vmem:[%s5733_s21 + $0x38] sm:$0xff]  }
  0x7a   : > { %v5836_v58 = vpack.c.bf16 %v781_v54, %v782_v55  ;;  %v687_v60 = vrot.slane %v279_v53, 1  ;;  %v688_v14 = vrot.slane %v280_v2, 1  ;;  %v283_v30 = vunpack.c.l.bf16 %v5876_v17  ;;  %v5068_v35 = vld [vmem:[#allocation6 + $0x1b8] sm:$0xff]   ;;  %v5045_v48 = vld [vmem:[#allocation6 + $0xc8] sm:$0xff]   ;;  %p5455_p1 = pnand %p5454_p12, %p5448_p3 }
  0x7b   : > { %1171 = vmatpush1.bf16.msra.mxu1 %v5022_v8  ;;  %v281_v8 = vunpack.c.l.bf16 %v5847_v62  ;;  %v284_v54 = vunpack.c.h.bf16 %v5876_v17  ;;  %v285_v55 = vunpack.c.l.bf16 %v5907_v42 }
  0x7c   : > { %4411 = vmatpush3.bf16.msra.mxu0 %v5023_v9  ;;  %1172 = vmatprep.subr.bf16.mxu1 %v5522_v0  ;;  %7877 = vst [vmem:[#allocation15_spill] sm:$0xff] %v5836_v58  ;;  %v779_v5 = vsel %vm733_vm1, %v686_v59, %v687_v60  ;;  %v326_v9 = vrot.slane %v272_v18, 7 }
  0x7d   : > { %4412 = vmatprep.subr.bf16.mxu0 %v7771_v1  ;;  %v689_v18 = vrot.slane %v281_v8, 1 }
  0x7e   : > { %v434_v24 = vsel %vm381_vm2, %v325_v7, %v326_v9 }
  0x7f   : > { %1173 = vmatpush1.bf16.msra.mxu1 %v5024_v10  ;;  %v5061_v10 = vld [vmem:[#allocation6 + $0x1a8] sm:$0xff]  }
  0x80   : > { %4413 = vmatpush3.bf16.msra.mxu0 %v5025_v11  ;;  %1174 = vmatprep.subr.bf16.mxu1 %v5522_v0  ;;  %v5038_v11 = vld [vmem:[#allocation6 + $0x70] sm:$0xff]  }
  0x81   : > { %4414 = vmatprep.subr.bf16.mxu0 %v7771_v1 }
  0x83   : > { %1175 = vmatpush1.bf16.msra.mxu1 %v5026_v15  ;;  %v5869_v15 = vpack.c.bf16 %v779_v5, %v780_v6  ;;  %v5048_v5 = vld [vmem:[#allocation6 + $0xd0] sm:$0xff]   ;;  %v692_v6 = vrot.slane %v284_v54, 1 }
  0x84   : > { %4415 = vmatpush3.bf16.msra.mxu0 %v5027_v16  ;;  %1176 = vmatprep.subr.bf16.mxu1 %v5522_v0  ;;  %v5873_v16 = vrot.slane %v7761_v4, 7 }
  0x85   : > { %4416 = vmatprep.subr.bf16.mxu0 %v7771_v1  ;;  %7878 = vst [vmem:[#allocation16_spill] sm:$0xff] %v5869_v15 }
  0x86   : > { %v435_v25 = vsel %vm381_vm2, %v5873_v16, %v325_v7 }
  0x87   : > { %1177 = vmatpush1.bf16.msra.mxu1 %v5028_v21  ;;  %v5064_v21 = vld [vmem:[#allocation6 + $0x1b0] sm:$0xff]   ;;  %v5897_v36 = vpack.c.bf16 %v434_v24, %v435_v25  ;;  %v331_v24 = vrot.slane %v277_v43, 7 }
  0x88   : > { %4417 = vmatpush3.bf16.msra.mxu0 %v5029_v22  ;;  %1178 = vmatprep.subr.bf16.mxu1 %v5522_v0  ;;  %v5039_v22 = vld [vmem:[#allocation6 + $0x78] sm:$0xff]  }
  0x89   : > { %4418 = vmatprep.subr.bf16.mxu0 %v7771_v1 }
  0x8b   : > { %1179 = vmatpush1.bf16.msra.mxu1 %v5030_v27  ;;  %v777_v27 = vsel %vm733_vm1, %v688_v14, %v689_v18 }
  0x8c   : > { %4419 = vmatpush3.bf16.msra.mxu0 %v5031_v28  ;;  %1180 = vmatprep.subr.bf16.mxu1 %v5522_v0  ;;  %v778_v28 = vsel %vm733_vm1, %v687_v60, %v688_v14 }
  0x8d   : > { %2497 = vmatprep.subr.bf16.mxu0 %v5522_v0  ;;  %v5904_v41 = vpack.c.bf16 %v777_v27, %v778_v28  ;;  %v332_v27 = vrot.slane %v278_v52, 7 }
  0x8f   : > { %4421 = vmatmul.mubr.bf16.vlgmr.msra.gmra.mrb[0].mxu0 %v5792_v33  ;;  %1181 = vmatpush1.bf16.msra.mxu1 %v5032_v34  ;;  %v5041_v34 = vld [vmem:[#allocation6 + $0xc0] sm:$0xff]   ;;  %7879 = vst [vmem:[#allocation17_spill] sm:$0xff] %v5904_v41  ;;  %v428_v43 = vsel %vm381_vm2, %v331_v24, %v332_v27 }
  0x90   : > { %1182 = vmatprep.subr.bf16.mxu1 %v5522_v0  ;;  %4424 = vmatprep.mubr.msk.bf16.mxu0 %vm5524_vm0, %v7771_v1 }
  0x91   : > { %2498 = vmatpush1.bf16.msra.mxu0 %v5042_v38  ;;  %v327_v38 = vrot.slane %v273_v19, 7  ;;  %v5072_v19 = vld [vmem:[#allocation6 + $0x1c0] sm:$0xff]  }
  0x92   : > { %2499 = vmatprep.subr.bf16.mxu0 %v5522_v0 }
  0x93   : > { %1183 = vmatpush1.bf16.msra.mxu1 %v5033_v39  ;;  %v328_v39 = vrot.slane %v274_v31, 7  ;;  %v433_v47 = vsel %vm381_vm2, %v326_v9, %v327_v38  ;;  %v286_v9 = vunpack.c.h.bf16 %v5907_v42 }
  0x94   : > { %1184 = vmatprep.subr.bf16.mxu1 %v5522_v0 }
  0x95   : > { %2500 = vmatpush1.bf16.msra.mxu0 %v5046_v44  ;;  %v690_v44 = vrot.slane %v282_v29, 1  ;;  %v432_v31 = vsel %vm381_vm2, %v327_v38, %v328_v39  ;;  %v694_v28 = vrot.slane %v286_v9, 1  ;;  %v5979_v38 = vld [vmem:[%s5733_s21 + $0x48] sm:$0xff]  }
  0x96   : > { %2501 = vmatprep.subr.bf16.mxu0 %v5522_v0  ;;  %v5933_v59 = vpack.c.bf16 %v432_v31, %v433_v47  ;;  %v5059_v31 = vld [vmem:[#allocation6 + $0xe8] sm:$0xff]  }
  0x97   : > { %4425 = vmatmul.mubr.bf16.gmra.mrb[4].mxu0 %v5814_v45  ;;  %1185 = vmatpush1.bf16.msra.mxu1 %v5034_v46  ;;  %v691_v46 = vrot.slane %v283_v30, 1 }
  0x98   : > { %1186 = vmatprep.subr.bf16.mxu1 %v5522_v0  ;;  %4428 = vmatprep.mubr.msk.bf16.mxu0 %vm5524_vm0, %v7771_v1 }
  0x99   : > { %2502 = vmatpush1.bf16.msra.mxu0 %v5049_v50  ;;  %v775_v50 = vsel %vm733_vm1, %v690_v44, %v691_v46 }
  0x9a   : > { %2503 = vmatprep.subr.bf16.mxu0 %v5522_v0 }
  0x9b   : > { %1187 = vmatpush1.bf16.msra.mxu1 %v5035_v51  ;;  %v776_v51 = vsel %vm733_vm1, %v689_v18, %v690_v44  ;;  %v774_v18 = vsel %vm733_vm1, %v691_v46, %v692_v6 }
  0x9c   : > { %1188 = vmatprep.subr.bf16.mxu1 %v5522_v0  ;;  %v5936_v60 = vpack.c.bf16 %v775_v50, %v776_v51  ;;  %v333_v50 = vrot.slane %v279_v53, 7  ;;  %v334_v51 = vrot.slane %v280_v2, 7 }
  0x9d   : > { %2504 = vmatpush1.bf16.msra.mxu0 %v5053_v56  ;;  %v329_v56 = vrot.slane %v275_v32, 7  ;;  %v693_v32 = vrot.slane %v285_v55, 1 }
  0x9e   : > { %2505 = vmatprep.subr.bf16.mxu0 %v5522_v0  ;;  %7880 = vst [vmem:[#allocation18_spill] sm:$0xff] %v5936_v60  ;;  %v426_v53 = vsel %vm381_vm2, %v333_v50, %v334_v51  ;;  %v427_v2 = vsel %vm381_vm2, %v332_v27, %v333_v50  ;;  %v336_v27 = vrot.slane %v282_v29, 7 }
  0x9f   : > { %4429 = vmatmul.mubr.bf16.gmra.mrb[8].mxu0 %v5836_v58  ;;  %1189 = vmatpush1.bf16.msra.mxu1 %v5036_v57  ;;  %v5075_v57 = vld [vmem:[#allocation6 + $0x1c8] sm:$0xff]   ;;  %v431_v7 = vsel %vm381_vm2, %v328_v39, %v329_v56  ;;  %v773_v14 = vsel %vm733_vm1, %v692_v6, %v693_v32  ;;  %v772_v44 = vsel %vm733_vm1, %v693_v32, %v694_v28  ;;  %v5083_v6 = vld [vmem:[#allocation6 + $0x1d8] sm:$0xff]  }
  0xa0   : > { %1190 = vmatprep.subr.bf16.mxu1 %v5522_v0  ;;  %4432 = vmatprep.mubr.msk.bf16.mxu0 %vm5524_vm0, %v7771_v1  ;;  %v5970_v25 = vpack.c.bf16 %v773_v14, %v774_v18  ;;  %v6030_v14 = vpack.c.bf16 %v426_v53, %v427_v2  ;;  %v337_v53 = vrot.slane %v283_v30, 7 }
  0xa1   : > { %2506 = vmatpush1.bf16.msra.mxu0 %v5057_v63  ;;  %v330_v63 = vrot.slane %v276_v40, 7 }
  0xa2   : > { %2507 = vmatprep.subr.bf16.mxu0 %v5522_v0  ;;  %7881 = vst [vmem:[#allocation19_spill] sm:$0xff] %v5970_v25 }
  0xa3   : > { %1191 = vmatpush1.bf16.msra.mxu1 %v5037_v3  ;;  %v5941_v3 = vld [vmem:[%s5733_s21 + $0x40] sm:$0xff]   ;;  %v430_v40 = vsel %vm381_vm2, %v329_v56, %v330_v63  ;;  %v429_v52 = vsel %vm381_vm2, %v330_v63, %v331_v24  ;;  %v335_v24 = vrot.slane %v281_v8, 7 }
  0xa4   : > { %1192 = vmatprep.subr.bf16.mxu1 %v5522_v0  ;;  %v288_v46 = vunpack.c.h.bf16 %v5941_v3  ;;  %v5998_v47 = vpack.c.bf16 %v428_v43, %v429_v52  ;;  %v5063_v63 = vld [vmem:[#allocation6 + $0xf0] sm:$0xff]   ;;  %v6044_v43 = vld [vmem:[%s5733_s21 + $0x58] sm:$0xff]  }
  0xa5   : > { %2508 = vmatpush1.bf16.msra.mxu0 %v5061_v10  ;;  %v5052_v10 = vld [vmem:[#allocation6 + $0xd8] sm:$0xff]   ;;  %v424_v8 = vsel %vm381_vm2, %v335_v24, %v336_v27  ;;  %v425_v29 = vsel %vm381_vm2, %v334_v51, %v335_v24  ;;  %v5086_v52 = vld [vmem:[#allocation6 + $0x1e0] sm:$0xff]   ;;  %v293_v50 = vunpack.c.l.bf16 %v6044_v43 }
  0xa6   : > { %2509 = vmatprep.subr.bf16.mxu0 %v5522_v0  ;;  %v696_v56 = vrot.slane %v288_v46, 1  ;;  %v6063_v51 = vpack.c.bf16 %v424_v8, %v425_v29  ;;  %v5081_v29 = vld [vmem:[#allocation6 + $0x118] sm:$0xff]  }
  0xa7   : > { %4433 = vmatmul.mubr.bf16.gmra.mrb[12].mxu0 %v5869_v15  ;;  %1193 = vmatpush1.bf16.msra.mxu1 %v5038_v11  ;;  %v5079_v11 = vld [vmem:[#allocation6 + $0x1d0] sm:$0xff]  }
  0xa8   : > { %1194 = vmatprep.subr.bf16.mxu1 %v5522_v0  ;;  %4436 = vmatprep.mubr.msk.bf16.mxu0 %vm5524_vm0, %v7771_v1 }
  0xa9   : > { %2510 = vmatpush1.bf16.msra.mxu0 %v5064_v21  ;;  %v287_v21 = vunpack.c.l.bf16 %v5941_v3 }
  0xaa   : > { %2511 = vmatprep.subr.bf16.mxu0 %v5522_v0 }
  0xab   : > { %1195 = vmatpush1.bf16.msra.mxu1 %v5039_v22  ;;  %v5965_v22 = vpack.c.bf16 %v430_v40, %v431_v7  ;;  %v290_v7 = vunpack.c.h.bf16 %v5979_v38 }
  0xac   : > { %1806 = vmatprep.subr.bf16.mxu1 %v5522_v0 }
  0xad   : > { %2512 = vmatpush1.bf16.msra.mxu0 %v5068_v35  ;;  %v5056_v35 = vld [vmem:[#allocation6 + $0xe0] sm:$0xff]  }
  0xae   : > { %1197 = vmatmul.mubr.bf16.vlgmr.msra.gmra.mrb[0].mxu1 %v5897_v36  ;;  %2513 = vmatprep.subr.bf16.mxu0 %v5522_v0 }
  0xaf   : > { %4437 = vmatmul.mubr.bf16.gmra.mrb[16].mxu0 %v5904_v41  ;;  %1807 = vmatpush1.bf16.msra.mxu1 %v5041_v34  ;;  %v695_v34 = vrot.slane %v287_v21, 1 }
  0xb0   : > { %1204 = vmatprep.mubr.bf16.mxu1 %v5759_v13  ;;  %4440 = vmatprep.mubr.msk.bf16.mxu0 %vm5524_vm0, %v7771_v1 }
  0xb1   : > { %1808 = vmatprep.subr.bf16.mxu1 %v5522_v0  ;;  %2514 = vmatpush1.bf16.msra.mxu0 %v5072_v19  ;;  %v771_v39 = vsel %vm733_vm1, %v694_v28, %v695_v34  ;;  %v289_v19 = vunpack.c.l.bf16 %v5979_v38  ;;  %v770_v40 = vsel %vm733_vm1, %v695_v34, %v696_v56  ;;  %v698_v28 = vrot.slane %v290_v7, 1 }
  0xb2   : > { %2515 = vmatprep.subr.bf16.mxu0 %v5522_v0 }
  0xb3   : > { %1809 = vmatpush1.bf16.msra.mxu1 %v5045_v48  ;;  %v6000_v48 = vpack.c.bf16 %v771_v39, %v772_v44 }
  0xb4   : > { %1810 = vmatprep.subr.bf16.mxu1 %v5522_v0 }
  0xb5   : > { %2516 = vmatpush1.bf16.msra.mxu0 %v5075_v57  ;;  %7882 = vst [vmem:[#allocation20_spill] sm:$0xff] %v6000_v48  ;;  %v697_v57 = vrot.slane %v289_v19, 1 }
  0xb6   : > { %1205 = vmatmul.mubr.bf16.gmra.mrb[4].mxu1 %v5933_v59  ;;  %2517 = vmatprep.subr.bf16.mxu0 %v5522_v0 }
  0xb7   : > { %4441 = vmatmul.mubr.bf16.gmra.mrb[20].mxu0 %v5936_v60  ;;  %1212 = vmatprep.mubr.bf16.mxu1 %v5781_v26  ;;  %v769_v32 = vsel %vm733_vm1, %v696_v56, %v697_v57  ;;  %v768_v44 = vsel %vm733_vm1, %v697_v57, %v698_v28  ;;  %v5074_v56 = vld [vmem:[#allocation6 + $0x108] sm:$0xff]   ;;  %v338_v57 = vrot.slane %v284_v54, 7  ;;  %v423_v54 = vsel %vm381_vm2, %v336_v27, %v337_v53 }
  0xb8   : > { %4444 = vmatprep.mubr.msk.bf16.mxu0 %vm5524_vm0, %v7771_v1  ;;  %1811 = vmatpush1.bf16.msra.mxu1 %v5048_v5  ;;  %v6011_v5 = vld [vmem:[%s5733_s21 + $0x50] sm:$0xff]   ;;  %v6033_v18 = vpack.c.bf16 %v769_v32, %v770_v40  ;;  %v5078_v32 = vld [vmem:[#allocation6 + $0x110] sm:$0xff]  }
  0xb9   : > { %1812 = vmatprep.subr.bf16.mxu1 %v5522_v0  ;;  %2518 = vmatpush1.bf16.msra.mxu0 %v5079_v11  ;;  %v5067_v11 = vld [vmem:[#allocation6 + $0xf8] sm:$0xff]   ;;  %v6077_v40 = vld [vmem:[%s5733_s21 + $0x60] sm:$0xff]   ;;  %v422_v30 = vsel %vm381_vm2, %v337_v53, %v338_v57  ;;  %v5085_v53 = vld [vmem:[#allocation6 + $0x120] sm:$0xff]  }
  0xba   : > { %2519 = vmatprep.subr.bf16.mxu0 %v5522_v0  ;;  %7883 = vst [vmem:[#allocation21_spill] sm:$0xff] %v6033_v18  ;;  %v7768_v8 = vunpack.c.l.bf16 %v6077_v40  ;;  %v6096_v27 = vpack.c.bf16 %v422_v30, %v423_v54 }
  0xbc   : > { %1813 = vmatpush1.bf16.msra.mxu1 %v5052_v10  ;;  %v291_v10 = vunpack.c.l.bf16 %v6011_v5 }
  0xbd   : > { %1814 = vmatprep.subr.bf16.mxu1 %v5522_v0  ;;  %2520 = vmatpush1.bf16.msra.mxu0 %v5083_v6  ;;  %v701_v6 = vrot.slane %v293_v50, 1 }
  0xbe   : > { %1213 = vmatmul.mubr.bf16.gmra.mrb[8].mxu1 %v5965_v22  ;;  %2521 = vmatprep.subr.bf16.mxu0 %v5522_v0  ;;  %v699_v34 = vrot.slane %v291_v10, 1 }
  0xbf   : > { %4445 = vmatmul.mubr.bf16.gmra.mrb[24].mxu0 %v5970_v25  ;;  %1220 = vmatprep.mubr.bf16.mxu1 %v5800_v37 }
  0xc0   : > { %4448 = vmatprep.mubr.msk.bf16.mxu0 %vm5524_vm0, %v7771_v1  ;;  %1815 = vmatpush1.bf16.msra.mxu1 %v5056_v35  ;;  %v5070_v35 = vld [vmem:[#allocation6 + $0x100] sm:$0xff]   ;;  %v767_v39 = vsel %vm733_vm1, %v698_v28, %v699_v34 }
  0xc1   : > { %1816 = vmatprep.subr.bf16.mxu1 %v5522_v0  ;;  %2522 = vmatpush1.bf16.msra.mxu0 %v5086_v52 }
  0xc2   : > { %2523 = vmatprep.subr.bf16.mxu0 %v5522_v0 }
  0xc4   : > { %1817 = vmatpush1.bf16.msra.mxu1 %v5059_v31  ;;  %v292_v31 = vunpack.c.h.bf16 %v6011_v5 }
  0xc5   : > { %1818 = vmatprep.subr.bf16.mxu1 %v5522_v0 }
  0xc6   : > { %1221 = vmatmul.mubr.bf16.gmra.mrb[12].mxu1 %v5998_v47  ;;  %v700_v2 = vrot.slane %v292_v31, 1 }
  0xc7   : > { %4449 = vmatmul.mubr.bf16.gmra.mrb[28].mxu0 %v6000_v48  ;;  %1228 = vmatprep.mubr.bf16.mxu1 %v5822_v49 }
  0xc8   : > { %4452 = vmatprep.mubr.msk.bf16.mxu0 %vm5524_vm0, %v7771_v1  ;;  %1819 = vmatpush1.bf16.msra.mxu1 %v5063_v63  ;;  %v6066_v63 = vpack.c.bf16 %v767_v39, %v768_v44  ;;  %v765_v24 = vsel %vm733_vm1, %v700_v2, %v701_v6  ;;  %v766_v28 = vsel %vm733_vm1, %v699_v34, %v700_v2  ;;  %v339_v39 = vrot.slane %v285_v55, 7  ;;  %v6110_v2 = vld [vmem:[%s5733_s21 + $0x68] sm:$0xff]  }
  0xc9   : > { %1820 = vmatprep.subr.bf16.mxu1 %v5522_v0  ;;  %v6099_v52 = vpack.c.bf16 %v765_v24, %v766_v28  ;;  %v340_v34 = vrot.slane %v286_v9, 7  ;;  %v7762_v24 = vunpack.c.l.bf16 %v6110_v2  ;;  %v5090_v28 = vld [vmem:[#allocation6 + $0x128] sm:$0xff]  }
  0xca   : > { %7884 = vst [vmem:[#allocation22_spill] sm:$0xff] %v6066_v63  ;;  %v421_v9 = vsel %vm381_vm2, %v338_v57, %v339_v39  ;;  %v5092_v57 = vld [vmem:[#allocation6 + $0x1f8] sm:$0xff]  }
  0xcb   : > { %7885 = vst [vmem:[#allocation23_spill] sm:$0xff] %v6099_v52  ;;  %v420_v55 = vsel %vm381_vm2, %v339_v39, %v340_v34  ;;  %v705_v4 = vrot.slane %v7762_v24, 1  ;;  %v344_v24 = vrot.slane %v290_v7, 7 }
  0xcc   : > { %1821 = vmatpush1.bf16.msra.mxu1 %v5067_v11  ;;  %v5088_v11 = vld [vmem:[#allocation6 + $0x1e8] sm:$0xff]  }
  0xcd   : > { %1822 = vmatprep.subr.bf16.mxu1 %v5522_v0  ;;  %2524 = vmatpush1.bf16.msra.mxu0 %v5088_v11  ;;  %v7763_v11 = vunpack.c.h.bf16 %v6077_v40 }
  0xce   : > { %1229 = vmatmul.mubr.bf16.gmra.mrb[16].mxu1 %v6030_v14  ;;  %2525 = vmatprep.subr.bf16.mxu0 %v5522_v0 }
  0xcf   : > { %4453 = vmatmul.mubr.bf16.gmra.mrb[32].mxu0 %v6033_v18  ;;  %1236 = vmatprep.mubr.bf16.mxu1 %v5847_v62 }
  0xd0   : > { %4456 = vmatprep.mubr.msk.bf16.mxu0 %vm5524_vm0, %v7771_v1  ;;  %1823 = vmatpush1.bf16.msra.mxu1 %v5070_v35  ;;  %v294_v35 = vunpack.c.h.bf16 %v6044_v43 }
  0xd1   : > { %1824 = vmatprep.subr.bf16.mxu1 %v5522_v0 }
  0xd2   : > { %v702_v44 = vrot.slane %v294_v35, 1 }
  0xd4   : > { %1825 = vmatpush1.bf16.msra.mxu1 %v5074_v56  ;;  %v703_v56 = vrot.slane %v7768_v8, 1  ;;  %v764_v54 = vsel %vm733_vm1, %v701_v6, %v702_v44  ;;  %v341_v6 = vrot.slane %v287_v21, 7  ;;  %v6237_v8 = vld [vmem:[%s5733_s21 + $0x88] sm:$0xff]  }
  0xd5   : > { %1826 = vmatprep.subr.bf16.mxu1 %v5522_v0  ;;  %7890 = vst [vmem:[#allocation28_spill] sm:$0xff] %v6237_v8 }
  0xd6   : > { %1237 = vmatmul.mubr.bf16.gmra.mrb[20].mxu1 %v6063_v51  ;;  %v763_v30 = vsel %vm733_vm1, %v702_v44, %v703_v56  ;;  %v342_v44 = vrot.slane %v288_v46, 7  ;;  %v419_v46 = vsel %vm381_vm2, %v340_v34, %v341_v6 }
  0xd7   : > { %4457 = vmatmul.mubr.bf16.gmra.mrb[36].mxu0 %v6066_v63  ;;  %1244 = vmatprep.mubr.bf16.mxu1 %v5876_v17  ;;  %v6132_v39 = vpack.c.bf16 %v763_v30, %v764_v54  ;;  %v7767_v54 = vunpack.c.h.bf16 %v6110_v2 }
  0xd8   : > { %4460 = vmatprep.mubr.msk.bf16.mxu0 %vm5524_vm0, %v7771_v1  ;;  %1827 = vmatpush1.bf16.msra.mxu1 %v5078_v32  ;;  %v5091_v32 = vld [vmem:[#allocation6 + $0x1f0] sm:$0xff]   ;;  %v418_v21 = vsel %vm381_vm2, %v341_v6, %v342_v44  ;;  %v343_v6 = vrot.slane %v289_v19, 7 }
  0xd9   : > { %1828 = vmatprep.subr.bf16.mxu1 %v5522_v0  ;;  %2526 = vmatpush1.bf16.msra.mxu0 %v5091_v32  ;;  %7886 = vst [vmem:[#allocation24_spill] sm:$0xff] %v6132_v39  ;;  %v6143_v32 = vld [vmem:[%s5733_s21 + $0x70] sm:$0xff]  }
  0xda   : > { %2527 = vmatprep.subr.bf16.mxu0 %v5522_v0  ;;  %v417_v19 = vsel %vm381_vm2, %v342_v44, %v343_v6  ;;  %v345_v44 = vrot.slane %v291_v10, 7 }
  0xdc   : > { %1829 = vmatpush1.bf16.msra.mxu1 %v5081_v29  ;;  %v6129_v29 = vpack.c.bf16 %v420_v55, %v421_v9  ;;  %v5094_v55 = vld [vmem:[#allocation6 + $0x130] sm:$0xff]  }
  0xdd   : > { %1830 = vmatprep.subr.bf16.mxu1 %v5522_v0  ;;  %2528 = vmatpush1.bf16.msra.mxu0 %v5092_v57  ;;  %v6162_v57 = vpack.c.bf16 %v418_v21, %v419_v46  ;;  %v7766_v46 = vunpack.c.h.bf16 %v6143_v32 }
  0xde   : > { %1245 = vmatmul.mubr.bf16.gmra.mrb[24].mxu1 %v6096_v27  ;;  %4652 = vmatprep.subr.bf16.mxu0 %v7771_v1 }
  0xdf   : > { %4461 = vmatmul.mubr.bf16.gmra.mrb[40].mxu0 %v6099_v52  ;;  %1252 = vmatprep.mubr.bf16.mxu1 %v5907_v42 }
  0xe0   : > { %4464 = vmatprep.mubr.msk.bf16.mxu0 %vm5524_vm0, %v7771_v1  ;;  %1831 = vmatpush1.bf16.msra.mxu1 %v5085_v53  ;;  %v704_v53 = vrot.slane %v7763_v11, 1  ;;  %v6176_v11 = vld [vmem:[%s5733_s21 + $0x78] sm:$0xff]  }
  0xe1   : > { %1832 = vmatprep.subr.bf16.mxu1 %v5522_v0 }
  0xe2   : > { %v761_v9 = vsel %vm733_vm1, %v704_v53, %v705_v4  ;;  %v762_v30 = vsel %vm733_vm1, %v703_v56, %v704_v53  ;;  %v706_v56 = vrot.slane %v7767_v54, 1  ;;  %v348_v54 = vrot.slane %v294_v35, 7 }
  0xe3   : > { %v6165_v34 = vpack.c.bf16 %v761_v9, %v762_v30 }
  0xe4   : > { %1833 = vmatpush1.bf16.msra.mxu1 %v5090_v28  ;;  %v7764_v28 = vunpack.c.l.bf16 %v6143_v32  ;;  %v760_v21 = vsel %vm733_vm1, %v705_v4, %v706_v56 }
  0xe5   : > { %1834 = vmatprep.subr.bf16.mxu1 %v5522_v0  ;;  %7887 = vst [vmem:[#allocation25_spill] sm:$0xff] %v6165_v34 }
  0xe6   : > { %1253 = vmatmul.mubr.bf16.gmra.mrb[28].mxu1 %v6129_v29  ;;  %v707_v53 = vrot.slane %v7764_v28, 1  ;;  %v708_v28 = vrot.slane %v7766_v46, 1 }
  0xe7   : > { %4465 = vmatmul.mubr.bf16.gmra.mrb[44].mxu0 %v6132_v39  ;;  %1260 = vmatprep.mubr.bf16.mxu1 %v5941_v3 }
  0xe8   : > { %4468 = vmatprep.mubr.msk.bf16.mxu0 %vm5524_vm0, %v7771_v1  ;;  %1835 = vmatpush1.bf16.msra.mxu1 %v5094_v55  ;;  %v759_v7 = vsel %vm733_vm1, %v706_v56, %v707_v53  ;;  %v7765_v55 = vunpack.c.l.bf16 %v6176_v11  ;;  %v6206_v56 = vld [vmem:[%s5733_s21 + $0x80] sm:$0xff]  }
  0xe9   : > { %1836 = vmatprep.subr.bf16.mxu1 %v5522_v0  ;;  %v416_v0 = vsel %vm381_vm2, %v343_v6, %v344_v24  ;;  %v6195_v30 = vpack.c.bf16 %v759_v7, %v760_v21  ;;  %v346_v6 = vrot.slane %v292_v31, 7  ;;  %v415_v31 = vsel %vm381_vm2, %v344_v24, %v345_v44 }
  0xea   : > { %v6193_v9 = vpack.c.bf16 %v416_v0, %v417_v19  ;;  %v709_v4 = vrot.slane %v7765_v55, 1  ;;  %v5097_v0 = vld [vmem:[#allocation6 + $0x138] sm:$0xff]   ;;  %v758_v7 = vsel %vm733_vm1, %v707_v53, %v708_v28  ;;  %v7770_v21 = vunpack.c.h.bf16 %v6176_v11 }
  0xeb   : > { %7888 = vst [vmem:[#allocation26_spill] sm:$0xff] %v6195_v30  ;;  %v414_v10 = vsel %vm381_vm2, %v345_v44, %v346_v6  ;;  %v7769_v55 = vunpack.c.l.bf16 %v6206_v56  ;;  %v347_v44 = vrot.slane %v293_v50, 7 }
  0xec   : > { %v757_v19 = vsel %vm733_vm1, %v708_v28, %v709_v4  ;;  %1837 = vmatpush1.bf16.msra.mxu1 %v5097_v0  ;;  %v6223_v46 = vpack.c.bf16 %v414_v10, %v415_v31  ;;  %v710_v28 = vrot.slane %v7770_v21, 1  ;;  %v7776_v0 = vunpack.c.h.bf16 %v6206_v56 }
  0xed   : > { %4528 = vmatprep.subr.bf16.mxu1 %v7771_v1  ;;  %v6226_v24 = vpack.c.bf16 %v757_v19, %v758_v7  ;;  %v711_v53 = vrot.slane %v7769_v55, 1  ;;  %v412_v50 = vsel %vm381_vm2, %v347_v44, %v348_v54  ;;  %v413_v35 = vsel %vm381_vm2, %v346_v6, %v347_v44 }
  0xee   : > { %1261 = vmatmul.mubr.bf16.gmra.mrb[32].mxu1 %v6162_v57  ;;  %v756_v31 = vsel %vm733_vm1, %v709_v4, %v710_v28  ;;  %v7775_v19 = vunpack.c.l.bf16 %v6237_v8  ;;  %v6254_v7 = vpack.c.bf16 %v412_v50, %v413_v35  ;;  %v7892_v21 = vunpack.c.l.bf16 %v6077_v40 }
  0xef   : > { %4469 = vmatmul.mubr.bf16.gmra.mrb[48].mxu0 %v6165_v34  ;;  %1268 = vmatprep.mubr.bf16.mxu1 %v5979_v38  ;;  %7889 = vst [vmem:[#allocation27_spill] sm:$0xff] %v6226_v24  ;;  %v755_v10 = vsel %vm733_vm1, %v710_v28, %v711_v53  ;;  %v7893_v44 = vunpack.c.h.bf16 %v6077_v40  ;;  %v6267_v28 = vld [vmem:[%s5733_s21 + $0x90] sm:$0xff]   ;;  %v7895_v35 = vmov 0.0  }
  0xf0   : > { %4472 = vmatprep.mubr.msk.bf16.mxu0 %vm5524_vm0, %v7771_v1  ;;  %v6256_v55 = vpack.c.bf16 %v755_v10, %v756_v31  ;;  %v349_v6 = vrot.slane %v7892_v21, 7  ;;  %v713_v4 = vrot.slane %v7775_v19, 1  ;;  %7894 = vst [vmem:[#allocation30_spill] sm:$0xff] %v6267_v28  ;;  %v7785_v19 = vunpack.c.l.bf16 %v6267_v28 }
  0xf2   : > { %7891 = vst [vmem:[#allocation29_spill] sm:$0xff] %v6256_v55  ;;  %v411_v50 = vsel %vm381_vm2, %v348_v54, %v349_v6 }
  0xf6   : > { %1269 = vmatmul.mubr.bf16.gmra.mrb[36].mxu1 %v6193_v9 }
  0xf7   : > { %4473 = vmatmul.mubr.bf16.gmra.mrb[52].mxu0 %v6195_v30  ;;  %1276 = vmatprep.mubr.bf16.mxu1 %v6011_v5  ;;  %v7897_v30 = vunpack.c.l.bf16 %v6110_v2 }
  0xf8   : > { %4476 = vmatprep.mubr.msk.bf16.mxu0 %vm5524_vm0, %v7771_v1 }
  0xf9   : > { %v351_v54 = vrot.slane %v7897_v30, 7 }
  0xfe   : > { %1277 = vmatmul.mubr.bf16.gmra.mrb[40].mxu1 %v6223_v46 }
  0xff   : > { %4477 = vmatmul.mubr.bf16.gmra.mrb[56].mxu0 %v6226_v24  ;;  %1284 = vmatprep.mubr.bf16.mxu1 %v6044_v43  ;;  %v712_v24 = vrot.slane %v7776_v0, 1 }
 0x100   : > { %4480 = vmatprep.mubr.msk.bf16.mxu0 %vm5524_vm0, %v7771_v1  ;;  %v350_v1 = vrot.slane %v7893_v44, 7  ;;  %v7786_v44 = vunpack.c.h.bf16 %v6237_v8 }
 0x101   : > { %v753_v10 = vsel %vm733_vm1, %v712_v24, %v713_v4  ;;  %v754_v31 = vsel %vm733_vm1, %v711_v53, %v712_v24  ;;  %v715_v24 = vrot.slane %v7785_v19, 1  ;;  %v6297_v53 = vld [vmem:[%s5733_s21 + $0x98] sm:$0xff]  }
 0x102   : > { %v410_v21 = vsel %vm381_vm2, %v349_v6, %v350_v1  ;;  %v7898_v6 = vunpack.c.h.bf16 %v6110_v2  ;;  %v714_v39 = vrot.slane %v7786_v44, 1  ;;  %7899 = vst [vmem:[#allocation32_spill] sm:$0xff] %v6297_v53 }
 0x103   : > { %v6284_v0 = vpack.c.bf16 %v410_v21, %v411_v50  ;;  %v409_v21 = vsel %vm381_vm2, %v350_v1, %v351_v54 }
 0x104   : > { %v352_v34 = vrot.slane %v7898_v6, 7  ;;  %v751_v50 = vsel %vm733_vm1, %v714_v39, %v715_v24  ;;  %v7793_v6 = vunpack.c.l.bf16 %v6297_v53 }
 0x106   : > { %1285 = vmatmul.mubr.bf16.gmra.mrb[44].mxu1 %v6254_v7  ;;  %v408_v30 = vsel %vm381_vm2, %v351_v54, %v352_v34  ;;  %v7902_v54 = vunpack.c.h.bf16 %v6143_v32 }
 0x107   : > { %4481 = vmatmul.mubr.bf16.gmra.mrb[60].mxu0 %v6256_v55  ;;  %1292 = vmatprep.mubr.bf16.mxu1 %v6077_v40  ;;  %v6286_v55 = vpack.c.bf16 %v753_v10, %v754_v31  ;;  %v752_v10 = vsel %vm733_vm1, %v713_v4, %v714_v39  ;;  %v7794_v31 = vunpack.c.h.bf16 %v6267_v28  ;;  %v6314_v19 = vpack.c.bf16 %v408_v30, %v409_v21  ;;  %v6327_v4 = vld [vmem:[%s5733_s21 + $0xa0] sm:$0xff]  }
 0x108   : > { %4484 = vmatprep.mubr.msk.bf16.mxu0 %vm5524_vm0, %v7895_v35  ;;  %v6316_v44 = vpack.c.bf16 %v751_v50, %v752_v10  ;;  %v354_v52 = vrot.slane %v7902_v54, 7  ;;  %v717_v39 = vrot.slane %v7793_v6, 1  ;;  %7903 = vst [vmem:[#allocation34_spill] sm:$0xff] %v6327_v4  ;;  %v7802_v10 = vunpack.c.h.bf16 %v6297_v53 }
 0x109   : > { %7896 = vst [vmem:[#allocation31_spill] sm:$0xff] %v6286_v55  ;;  %v716_v63 = vrot.slane %v7794_v31, 1  ;;  %v7801_v54 = vunpack.c.l.bf16 %v6327_v4 }
 0x10a   : > { %7900 = vst [vmem:[#allocation33_spill] sm:$0xff] %v6316_v44  ;;  %v718_v48 = vrot.slane %v7802_v10, 1 }
 0x10b   : > { %v749_v21 = vsel %vm733_vm1, %v716_v63, %v717_v39  ;;  %v750_v50 = vsel %vm733_vm1, %v715_v24, %v716_v63  ;;  %v719_v63 = vrot.slane %v7801_v54, 1  ;;  %v6357_v24 = vld [vmem:[%s5733_s21 + $0xa8] sm:$0xff]  }
 0x10c   : > { %v6346_v31 = vpack.c.bf16 %v749_v21, %v750_v50  ;;  %v748_v21 = vsel %vm733_vm1, %v717_v39, %v718_v48  ;;  %v7810_v50 = vunpack.c.h.bf16 %v6327_v4  ;;  %v6387_v39 = vld [vmem:[%s5733_s21 + $0xb0] sm:$0xff]  }
 0x10e   : > { %1293 = vmatmul.mubr.bf16.gmra.mrb[48].mxu1 %v6284_v0  ;;  %7904 = vst [vmem:[#allocation35_spill] sm:$0xff] %v6346_v31  ;;  %v720_v60 = vrot.slane %v7810_v50, 1 }
 0x10f   : > { %4485 = vmatmul.mubr.bf16.gmra.mrb[64].mxu0 %v6286_v55  ;;  %1300 = vmatprep.mubr.bf16.mxu1 %v6110_v2  ;;  %v7901_v55 = vunpack.c.l.bf16 %v6143_v32 }
 0x110   : > { %4488 = vmatprep.mubr.msk.bf16.mxu0 %vm5524_vm0, %v7895_v35 }
 0x111   : > { %v353_v1 = vrot.slane %v7901_v55, 7 }
 0x113   : > { %v406_v55 = vsel %vm381_vm2, %v353_v1, %v354_v52  ;;  %v407_v30 = vsel %vm381_vm2, %v352_v34, %v353_v1  ;;  %v7906_v1 = vunpack.c.h.bf16 %v6176_v11 }
 0x114   : > { %v6344_v6 = vpack.c.bf16 %v406_v55, %v407_v30  ;;  %v747_v30 = vsel %vm733_vm1, %v718_v48, %v719_v63 }
 0x115   : > { %v356_v18 = vrot.slane %v7906_v1, 7  ;;  %v7809_v1 = vunpack.c.l.bf16 %v6357_v24  ;;  %v6376_v10 = vpack.c.bf16 %v747_v30, %v748_v21  ;;  %v746_v30 = vsel %vm733_vm1, %v719_v63, %v720_v60  ;;  %v6417_v63 = vld [vmem:[%s5733_s21 + $0xb8] sm:$0xff]  }
 0x116   : > { %1301 = vmatmul.mubr.bf16.gmra.mrb[52].mxu1 %v6314_v19  ;;  %v7818_v21 = vunpack.c.h.bf16 %v6357_v24 }
 0x117   : > { %4489 = vmatmul.mubr.bf16.gmra.mrb[68].mxu0 %v6316_v44  ;;  %1308 = vmatprep.mubr.bf16.mxu1 %v6143_v32  ;;  %v7905_v44 = vunpack.c.l.bf16 %v6176_v11  ;;  %7907 = vst [vmem:[#allocation36_spill] sm:$0xff] %v6376_v10  ;;  %v721_v48 = vrot.slane %v7809_v1, 1 }
 0x118   : > { %4492 = vmatprep.mubr.msk.bf16.mxu0 %vm5524_vm0, %v7895_v35  ;;  %v722_v15 = vrot.slane %v7818_v21, 1 }
 0x119   : > { %v355_v34 = vrot.slane %v7905_v44, 7 }
 0x11b   : > { %v404_v44 = vsel %vm381_vm2, %v355_v34, %v356_v18  ;;  %v405_v55 = vsel %vm381_vm2, %v354_v52, %v355_v34  ;;  %v7909_v34 = vunpack.c.h.bf16 %v6206_v56 }
 0x11c   : > { %v6374_v54 = vpack.c.bf16 %v404_v44, %v405_v55  ;;  %v745_v55 = vsel %vm733_vm1, %v720_v60, %v721_v48 }
 0x11d   : > { %v358_v25 = vrot.slane %v7909_v34, 7  ;;  %v7817_v34 = vunpack.c.l.bf16 %v6387_v39  ;;  %v6406_v50 = vpack.c.bf16 %v745_v55, %v746_v30  ;;  %v744_v55 = vsel %vm733_vm1, %v721_v48, %v722_v15  ;;  %v6447_v48 = vld [vmem:[%s5733_s21 + $0xc0] sm:$0xff]  }
 0x11e   : > { %1309 = vmatmul.mubr.bf16.gmra.mrb[56].mxu1 %v6344_v6  ;;  %v7826_v30 = vunpack.c.h.bf16 %v6387_v39  ;;  %7917 = vst [vmem:[#allocation40_spill] sm:$0xff] %v6447_v48 }
 0x11f   : > { %4493 = vmatmul.mubr.bf16.gmra.mrb[72].mxu0 %v6346_v31  ;;  %1316 = vmatprep.mubr.bf16.mxu1 %v6176_v11  ;;  %v7908_v31 = vunpack.c.l.bf16 %v6206_v56  ;;  %7910 = vst [vmem:[#allocation37_spill] sm:$0xff] %v6406_v50  ;;  %v723_v60 = vrot.slane %v7817_v34, 1 }
 0x120   : > { %4496 = vmatprep.mubr.msk.bf16.mxu0 %vm5524_vm0, %v7895_v35  ;;  %v724_v45 = vrot.slane %v7826_v30, 1 }
 0x121   : > { %v357_v52 = vrot.slane %v7908_v31, 7 }
 0x123   : > { %v402_v31 = vsel %vm381_vm2, %v357_v52, %v358_v25  ;;  %v403_v44 = vsel %vm381_vm2, %v356_v18, %v357_v52  ;;  %v7912_v52 = vunpack.c.h.bf16 %v6237_v8 }
 0x124   : > { %v6404_v1 = vpack.c.bf16 %v402_v31, %v403_v44  ;;  %v743_v44 = vsel %vm733_vm1, %v722_v15, %v723_v60 }
 0x125   : > { %v360_v41 = vrot.slane %v7912_v52, 7  ;;  %v7825_v52 = vunpack.c.l.bf16 %v6417_v63  ;;  %v6436_v21 = vpack.c.bf16 %v743_v44, %v744_v55  ;;  %v742_v44 = vsel %vm733_vm1, %v723_v60, %v724_v45  ;;  %v6477_v60 = vld [vmem:[%s5733_s21 + $0xc8] sm:$0xff]  }
 0x126   : > { %1317 = vmatmul.mubr.bf16.gmra.mrb[60].mxu1 %v6374_v54  ;;  %v7834_v55 = vunpack.c.h.bf16 %v6417_v63  ;;  %7922 = vst [vmem:[#allocation43_spill] sm:$0xff] %v6477_v60 }
 0x127   : > { %4497 = vmatmul.mubr.bf16.gmra.mrb[76].mxu0 %v6376_v10  ;;  %1324 = vmatprep.mubr.bf16.mxu1 %v6206_v56  ;;  %v7911_v10 = vunpack.c.l.bf16 %v6237_v8  ;;  %7914 = vst [vmem:[#allocation39_spill] sm:$0xff] %v6436_v21  ;;  %v725_v15 = vrot.slane %v7825_v52, 1 }
 0x128   : > { %4500 = vmatprep.mubr.msk.bf16.mxu0 %vm5524_vm0, %v7895_v35 }
 0x129   : > { %v359_v18 = vrot.slane %v7911_v10, 7 }
 0x12b   : > { %v400_v10 = vsel %vm381_vm2, %v359_v18, %v360_v41  ;;  %v401_v31 = vsel %vm381_vm2, %v358_v25, %v359_v18  ;;  %v7916_v18 = vunpack.c.h.bf16 %v6267_v28 }
 0x12c   : > { %v6434_v34 = vpack.c.bf16 %v400_v10, %v401_v31  ;;  %v741_v31 = vsel %vm733_vm1, %v724_v45, %v725_v15 }
 0x12d   : > { %v362_v58 = vrot.slane %v7916_v18, 7  ;;  %v7833_v18 = vunpack.c.l.bf16 %v6447_v48  ;;  %v6466_v30 = vpack.c.bf16 %v741_v31, %v742_v44  ;;  %v320_v44 = vunpack.c.h.bf16 %v6447_v48 }
 0x12e   : > { %1325 = vmatmul.mubr.bf16.gmra.mrb[64].mxu1 %v6404_v1  ;;  %7913 = vst [vmem:[#allocation38_spill] sm:$0xff] %v6434_v34 }
 0x12f   : > { %4501 = vmatmul.mubr.bf16.gmra.mrb[80].mxu0 %v6406_v50  ;;  %1332 = vmatprep.mubr.bf16.mxu1 %v6237_v8  ;;  %v7915_v50 = vunpack.c.l.bf16 %v6267_v28  ;;  %7919 = vst [vmem:[#allocation42_spill] sm:$0xff] %v6466_v30  ;;  %v727_v45 = vrot.slane %v7833_v18, 1  ;;  %v6505_v8 = vld [vmem:[%s5733_s21 + $0xd0] sm:$0xf] }
 0x130   : > { %4504 = vmatprep.mubr.msk.bf16.mxu0 %vm5524_vm0, %v7895_v35 }
 0x131   : > { %v361_v25 = vrot.slane %v7915_v50, 7 }
 0x133   : > { %v398_v50 = vsel %vm381_vm2, %v361_v25, %v362_v58  ;;  %v399_v10 = vsel %vm381_vm2, %v360_v41, %v361_v25  ;;  %v7921_v25 = vunpack.c.h.bf16 %v6297_v53 }
 0x134   : > { %v6464_v52 = vpack.c.bf16 %v398_v50, %v399_v10 }
 0x135   : > { %v364_v33 = vrot.slane %v7921_v25, 7  ;;  %v7845_v25 = vunpack.c.l.bf16 %v6477_v60 }
 0x136   : > { %1333 = vmatmul.mubr.bf16.gmra.mrb[68].mxu1 %v6434_v34  ;;  %7918 = vst [vmem:[#allocation41_spill] sm:$0xff] %v6464_v52 }
 0x137   : > { %4505 = vmatmul.mubr.bf16.gmra.mrb[84].mxu0 %v6436_v21  ;;  %1340 = vmatprep.mubr.bf16.mxu1 %v6267_v28  ;;  %v7920_v21 = vunpack.c.l.bf16 %v6297_v53  ;;  %v726_v28 = vrot.slane %v7834_v55, 1  ;;  %v729_v34 = vrot.slane %v7845_v25, 1  ;;  %v7928_v25 = vunpack.c.l.bf16 %v6357_v24 }
 0x138   : > { %4508 = vmatprep.mubr.msk.bf16.mxu0 %vm5524_vm0, %v7895_v35 }
 0x139   : > { %v363_v41 = vrot.slane %v7920_v21, 7  ;;  %v739_v10 = vsel %vm733_vm1, %v726_v28, %v727_v45  ;;  %v740_v31 = vsel %vm733_vm1, %v725_v15, %v726_v28 }
 0x13a   : > { %v6496_v55 = vpack.c.bf16 %v739_v10, %v740_v31  ;;  %v7852_v10 = vunpack.c.l.bf16 %v6505_v8 }
 0x13b   : > { %v396_v21 = vsel %vm381_vm2, %v363_v41, %v364_v33  ;;  %v397_v50 = vsel %vm381_vm2, %v362_v58, %v363_v41  ;;  %v7926_v41 = vunpack.c.h.bf16 %v6327_v4 }
 0x13c   : > { %v6494_v18 = vpack.c.bf16 %v396_v21, %v397_v50  ;;  %7924 = vst [vmem:[#allocation45_spill] sm:$0xff] %v6496_v55  ;;  %v322_v50 = vunpack.c.h.bf16 %v6477_v60 }
 0x13e   : > { %1341 = vmatmul.mubr.bf16.gmra.mrb[72].mxu1 %v6464_v52  ;;  %7923 = vst [vmem:[#allocation44_spill] sm:$0xff] %v6494_v18  ;;  %v728_v52 = vrot.slane %v320_v44, 1 }
 0x13f   : > { %4509 = vmatmul.mubr.bf16.gmra.mrb[88].mxu0 %v6466_v30  ;;  %1348 = vmatprep.mubr.bf16.mxu1 %v6297_v53  ;;  %v7925_v30 = vunpack.c.l.bf16 %v6327_v4  ;;  %v366_v53 = vrot.slane %v7926_v41, 7 }
 0x140   : > { %4512 = vmatprep.mubr.msk.bf16.mxu0 %vm5524_vm0, %v7895_v35  ;;  %v737_v15 = vsel %vm733_vm1, %v728_v52, %v729_v34  ;;  %v738_v21 = vsel %vm733_vm1, %v727_v45, %v728_v52 }
 0x141   : > { %v365_v58 = vrot.slane %v7925_v30, 7  ;;  %v6524_v41 = vpack.c.bf16 %v737_v15, %v738_v21  ;;  %v7931_v21 = vunpack.c.l.bf16 %v6387_v39 }
 0x143   : > { %v394_v28 = vsel %vm381_vm2, %v365_v58, %v366_v53  ;;  %v395_v30 = vsel %vm381_vm2, %v364_v33, %v365_v58  ;;  %7927 = vst [vmem:[#allocation46_spill] sm:$0xff] %v6524_v41  ;;  %v367_v33 = vrot.slane %v7928_v25, 7  ;;  %v7929_v58 = vunpack.c.h.bf16 %v6357_v24 }
 0x144   : > { %v6522_v31 = vpack.c.bf16 %v394_v28, %v395_v30 }
 0x145   : > { %v393_v45 = vsel %vm381_vm2, %v366_v53, %v367_v33  ;;  %v7933_v53 = vunpack.c.l.bf16 %v5844_v61 }
 0x146   : > { %1349 = vmatmul.mubr.bf16.gmra.mrb[76].mxu1 %v6494_v18  ;;  %v731_v18 = vrot.slane %v7852_v10, 1  ;;  %v7932_v10 = vunpack.c.h.bf16 %v6387_v39 }
 0x147   : > { %4513 = vmatmul.mubr.bf16.gmra.mrb[92].mxu0 %v6496_v55  ;;  %1356 = vmatprep.mubr.bf16.mxu1 %v6327_v4  ;;  %v368_v55 = vrot.slane %v7929_v58, 7  ;;  %v730_v4 = vrot.slane %v322_v50, 1  ;;  %v369_v58 = vrot.slane %v7931_v21, 7  ;;  %v7936_v21 = vunpack.c.h.bf16 %v6417_v63 }
 0x148   : > { %4516 = vmatprep.mubr.msk.bf16.mxu0 %vm5524_vm0, %v7895_v35 }
 0x149   : > { %v392_v52 = vsel %vm381_vm2, %v367_v33, %v368_v55  ;;  %v735_v25 = vsel %vm733_vm1, %v730_v4, %v731_v18  ;;  %v736_v28 = vsel %vm733_vm1, %v729_v34, %v730_v4  ;;  %v732_v33 = vrot.slane %v7933_v53, 1 }
 0x14a   : > { %v6545_v30 = vpack.c.bf16 %v392_v52, %v393_v45  ;;  %v6547_v15 = vpack.c.bf16 %v735_v25, %v736_v28  ;;  %v391_v34 = vsel %vm381_vm2, %v368_v55, %v369_v58  ;;  %v7935_v25 = vunpack.c.l.bf16 %v6417_v63 }
 0x14b   : > { %v787_v61 = vsel %vm733_vm1, %v732_v33, %v5772_v23  ;;  %v372_v55 = vrot.slane %v7936_v21, 7 }
 0x14c   : > { %7930 = vst [vmem:[#allocation47_spill] sm:$0xff] %v6547_v15  ;;  %v371_v28 = vrot.slane %v7935_v25, 7  ;;  %v5100_v25 = vld [vmem:[#allocation6 + $0x200] sm:$0xff]  }
 0x14e   : > { %1357 = vmatmul.mubr.bf16.gmra.mrb[80].mxu1 %v6522_v31 }
 0x14f   : > { %4517 = vmatmul.mubr.bf16.gmra.mrb[96].mxu0 %v6524_v41  ;;  %1364 = vmatprep.mubr.bf16.mxu1 %v6357_v24  ;;  %v370_v41 = vrot.slane %v7932_v10, 7  ;;  %v734_v10 = vsel %vm733_vm1, %v731_v18, %v732_v33  ;;  %v388_v18 = vsel %vm381_vm2, %v371_v28, %v372_v55  ;;  %v7937_v33 = vunpack.c.l.bf16 %v6447_v48 }
 0x150   : > { %4520 = vmatprep.mubr.msk.bf16.mxu0 %vm5524_vm0, %v7895_v35  ;;  %v6571_v45 = vpack.c.bf16 %v787_v61, %v734_v10 }
 0x151   : > { %v390_v4 = vsel %vm381_vm2, %v369_v58, %v370_v41  ;;  %v389_v23 = vsel %vm381_vm2, %v370_v41, %v371_v28 }
 0x152   : > { %v6569_v52 = vpack.c.bf16 %v390_v4, %v391_v34  ;;  %7934 = vst [vmem:[#allocation48_spill] sm:$0xff] %v6571_v45  ;;  %v6585_v58 = vpack.c.bf16 %v388_v18, %v389_v23  ;;  %v373_v4 = vrot.slane %v7937_v33, 7  ;;  %v374_v34 = vrot.slane %v320_v44, 7  ;;  %v5102_v44 = vld [vmem:[#allocation6 + $0x208] sm:$0xff]  }
 0x153   : > { %v7939_v33 = vunpack.c.l.bf16 %v6477_v60 }
 0x154   : > { %v386_v41 = vsel %vm381_vm2, %v373_v4, %v374_v34  ;;  %v387_v28 = vsel %vm381_vm2, %v372_v55, %v373_v4  ;;  %v5104_v55 = vld [vmem:[#allocation6 + $0x210] sm:$0xff]  }
 0x155   : > { %v6602_v18 = vpack.c.bf16 %v386_v41, %v387_v28 }
 0x156   : > { %1365 = vmatmul.mubr.bf16.gmra.mrb[84].mxu1 %v6545_v30 }
 0x157   : > { %4521 = vmatmul.mubr.bf16.gmra.mrb[100].mxu0 %v6547_v15  ;;  %1372 = vmatprep.mubr.bf16.mxu1 %v6387_v39  ;;  %7938 = vst [vmem:[#allocation49_spill] sm:$0xff] %v6602_v18 }
 0x158   : > { %4524 = vmatprep.mubr.msk.bf16.mxu0 %vm5524_vm0, %v7895_v35 }
 0x15e   : > { %1373 = vmatmul.mubr.bf16.gmra.mrb[88].mxu1 %v6569_v52 }
 0x15f   : > { %4525 = vmatmul.mubr.bf16.gmra.mrb[104].mxu0 %v6571_v45  ;;  %1380 = vmatprep.mubr.bf16.mxu1 %v6417_v63 }
 0x160   : > { %2529 = vmatprep.mubr.bf16.mxu0 %v5756_v12 }
 0x162   : > { %v6587_v53 = vpop.f32.mrb[0].mxu0 }
 0x163   : > { %v4422_v10 = vpop.f32.mrb[1].mxu0 }
 0x164   : > { %v6591_v61 = vpop.f32.mrb[2].mxu0  ;;  %v375_v10 = vrot.slane %v7939_v33, 7 }
 0x165   : > { %v4423_v21 = vpop.f32.mrb[3].mxu0 }
 0x166   : > { %1381 = vmatmul.mubr.bf16.gmra.mrb[92].mxu1 %v6585_v58  ;;  %v376_v21 = vrot.slane %v322_v50, 7  ;;  %v385_v50 = vsel %vm381_vm2, %v374_v34, %v375_v10  ;;  %v5108_v34 = vld [vmem:[#allocation6 + $0x220] sm:$0xff]  }
 0x167   : > { %2530 = vmatmul.mubr.bf16.vlgmr.msra.gmra.mrb[108].mxu0 %v5897_v36  ;;  %1388 = vmatprep.mubr.bf16.mxu1 %v6447_v48 }
 0x168   : > { %2537 = vmatprep.mubr.bf16.mxu0 %v5759_v13  ;;  %4653 = vmatpush3.bf16.msra.mxu0 %v5100_v25  ;;  %v384_v25 = vsel %vm381_vm2, %v375_v10, %v376_v21 }
 0x169   : > { %4654 = vmatprep.subr.bf16.mxu0 %v7895_v35  ;;  %v6620_v41 = vpack.c.bf16 %v384_v25, %v385_v50 }
 0x16a   : > { %v6604_v23 = vpop.f32.mrb[4].mxu0 }
 0x16b   : > { %v4426_v45 = vpop.f32.mrb[5].mxu0 }
 0x16c   : > { %v6608_v15 = vpop.f32.mrb[6].mxu0  ;;  %4655 = vmatpush3.bf16.msra.mxu0 %v5102_v44  ;;  %v5106_v45 = vld [vmem:[#allocation6 + $0x218] sm:$0xff]  }
 0x16d   : > { %v4427_v4 = vpop.f32.mrb[7].mxu0  ;;  %4656 = vmatprep.subr.bf16.mxu0 %v7895_v35  ;;  %v5357_v44 = vld [vmem:[%s5733_s21 + $0xd4] sm:$0xf] }
 0x16e   : > { %1389 = vmatmul.mubr.bf16.gmra.mrb[96].mxu1 %v6602_v18  ;;  %v6626_v33 = vcombine.low %v6505_v8, %v5357_v44  ;;  %v7940_v4 = vunpack.c.l.bf16 %v6505_v8 }
 0x16f   : > { %2538 = vmatmul.mubr.bf16.gmra.mrb[112].mxu0 %v5933_v59  ;;  %1396 = vmatprep.mubr.bf16.mxu1 %v6477_v60 }
 0x170   : > { %2545 = vmatprep.mubr.bf16.mxu0 %v5781_v26  ;;  %4657 = vmatpush3.bf16.msra.mxu0 %v5104_v55  ;;  %v377_v60 = vrot.slane %v7940_v4, 7 }
 0x171   : > { %4658 = vmatprep.subr.bf16.mxu0 %v7895_v35 }
 0x172   : > { %v6622_v28 = vpop.f32.mrb[8].mxu0  ;;  %v382_v55 = vsel %vm381_vm2, %v377_v60, %v5873_v16  ;;  %v383_v8 = vsel %vm381_vm2, %v376_v21, %v377_v60 }
 0x173   : > { %v4430_v18 = vpop.f32.mrb[9].mxu0 }
 0x174   : > { %v6630_v48 = vpop.f32.mrb[10].mxu0  ;;  %4659 = vmatpush3.bf16.msra.mxu0 %v5106_v45  ;;  %v6643_v18 = vpack.c.bf16 %v382_v55, %v383_v8 }
 0x175   : > { %v4431_v10 = vpop.f32.mrb[11].mxu0  ;;  %4660 = vmatprep.subr.bf16.mxu0 %v7895_v35 }
 0x176   : > { %1397 = vmatmul.mubr.bf16.gmra.mrb[100].mxu1 %v6620_v41 }
 0x177   : > { %2546 = vmatmul.mubr.bf16.gmra.mrb[116].mxu0 %v5965_v22  ;;  %1404 = vmatprep.mubr.bf16.mxu1 %v6626_v33 }
 0x178   : > { %2553 = vmatprep.mubr.bf16.mxu0 %v5800_v37  ;;  %4661 = vmatpush3.bf16.msra.mxu0 %v5108_v34  ;;  %v5099_v34 = vld [vmem:[#allocation6 + $0x140] sm:$0xff]  }
 0x179   : > { %4662 = vmatprep.subr.bf16.mxu0 %v7895_v35 }
 0x17a   : > { %v6645_v25 = vpop.f32.mrb[12].mxu0 }
 0x17b   : > { %v4434_v50 = vpop.f32.mrb[13].mxu0 }
 0x17c   : > { %v6647_v45 = vpop.f32.mrb[14].mxu0 }
 0x17d   : > { %v4435_v44 = vpop.f32.mrb[15].mxu0 }
 0x17e   : > { %1405 = vmatmul.mubr.bf16.gmra.mrb[104].mxu1 %v6643_v18 }
 0x17f   : > { %2554 = vmatmul.mubr.bf16.gmra.mrb[120].mxu0 %v5998_v47  ;;  %1838 = vmatprep.mubr.bf16.mxu1 %v5756_v12  ;;  %v5101_v12 = vld [vmem:[#allocation6 + $0x148] sm:$0xff]  }
 0x180   : > { %2561 = vmatprep.mubr.bf16.mxu0 %v5822_v49 }
 0x181   : > { %v1198_v20 = vpop.f32.mrb[0].mxu1 }
 0x182   : > { %v6654_v16 = vadd.f32 %v6587_v53, %v1198_v20  ;;  %v1200_v60 = vpop.f32.mrb[1].mxu1  ;;  %v6656_v21 = vpop.f32.mrb[16].mxu0 }
 0x183   : > { %v1201_v4 = vpop.f32.mrb[2].mxu1  ;;  %v4438_v10 = vpop.f32.mrb[17].mxu0 }
 0x184   : > { %v6659_v55 = vadd.f32 %v6591_v61, %v1201_v4  ;;  %v1203_v8 = vpop.f32.mrb[3].mxu1  ;;  %v6661_v50 = vpop.f32.mrb[18].mxu0 }
 0x185   : > { %v4439_v44 = vpop.f32.mrb[19].mxu0 }
 0x186   : > { %1839 = vmatmul.mubr.bf16.vlgmr.msra.gmra.mrb[108].mxu1 %v5897_v36 }
 0x187   : > { %2562 = vmatmul.mubr.bf16.gmra.mrb[124].mxu0 %v6030_v14  ;;  %4529 = vmatpush3.bf16.msra.mxu1 %v5099_v34 }
 0x188   : > { %1846 = vmatprep.mubr.bf16.mxu1 %v5759_v13  ;;  %2569 = vmatprep.mubr.bf16.mxu0 %v5847_v62  ;;  %v5103_v13 = vld [vmem:[#allocation6 + $0x150] sm:$0xff]  }
 0x189   : > { %v1206_v53 = vpop.f32.mrb[4].mxu1  ;;  %4530 = vmatprep.subr.bf16.mxu1 %v7895_v35 }
 0x18a   : > { %v6669_v61 = vadd.f32 %v6604_v23, %v1206_v53  ;;  %v1208_v20 = vpop.f32.mrb[5].mxu1  ;;  %v6671_v60 = vpop.f32.mrb[20].mxu0  ;;  %v5110_v23 = vld [vmem:[#allocation6 + $0x228] sm:$0xff]  }
 0x18b   : > { %v1209_v4 = vpop.f32.mrb[6].mxu1  ;;  %4531 = vmatpush3.bf16.msra.mxu1 %v5101_v12  ;;  %v4442_v36 = vpop.f32.mrb[21].mxu0  ;;  %v5105_v12 = vld [vmem:[#allocation6 + $0x158] sm:$0xff]   ;;  %4663 = vmatpush3.bf16.msra.mxu0 %v5110_v23 }
 0x18c   : > { %v6674_v10 = vadd.f32 %v6608_v15, %v1209_v4  ;;  %v1211_v34 = vpop.f32.mrb[7].mxu1  ;;  %v6676_v8 = vpop.f32.mrb[22].mxu0  ;;  %4532 = vmatprep.subr.bf16.mxu1 %v7895_v35  ;;  %4664 = vmatprep.subr.bf16.mxu0 %v7895_v35 }
 0x18d   : > { %v4443_v44 = vpop.f32.mrb[23].mxu0 }
 0x18e   : > { %7941 = vst [vmem:[#allocation50_spill] sm:$0xff] %v6674_v10  ;;  %1847 = vmatmul.mubr.bf16.gmra.mrb[112].mxu1 %v5933_v59  ;;  %v5107_v44 = vld [vmem:[#allocation6 + $0x160] sm:$0xff]  }
 0x18f   : > { %2570 = vmatmul.mubr.bf16.gmra.mrb[128].mxu0 %v6063_v51  ;;  %1854 = vmatprep.mubr.bf16.mxu1 %v5781_v26 }
 0x190   : > { %2577 = vmatprep.mubr.bf16.mxu0 %v5876_v17  ;;  %4533 = vmatpush3.bf16.msra.mxu1 %v5103_v13 }
 0x191   : > { %v1214_v15 = vpop.f32.mrb[8].mxu1  ;;  %4534 = vmatprep.subr.bf16.mxu1 %v7895_v35 }
 0x192   : > { %v6685_v53 = vadd.f32 %v6622_v28, %v1214_v15  ;;  %v1216_v20 = vpop.f32.mrb[9].mxu1  ;;  %v6687_v4 = vpop.f32.mrb[24].mxu0  ;;  %v5109_v28 = vld [vmem:[#allocation6 + $0x168] sm:$0xff]  }
 0x193   : > { %v1217_v59 = vpop.f32.mrb[10].mxu1  ;;  %v4446_v36 = vpop.f32.mrb[25].mxu0 }
 0x194   : > { %v6691_v26 = vadd.f32 %v6630_v48, %v1217_v59  ;;  %v1219_v34 = vpop.f32.mrb[11].mxu1  ;;  %v6693_v13 = vpop.f32.mrb[26].mxu0  ;;  %4535 = vmatpush3.bf16.msra.mxu1 %v5105_v12 }
 0x195   : > { %v4447_v10 = vpop.f32.mrb[27].mxu0  ;;  %4536 = vmatprep.subr.bf16.mxu1 %v7895_v35 }
 0x196   : > { %1855 = vmatmul.mubr.bf16.gmra.mrb[116].mxu1 %v5965_v22 }
 0x197   : > { %2578 = vmatmul.mubr.bf16.gmra.mrb[132].mxu0 %v6096_v27  ;;  %1862 = vmatprep.mubr.bf16.mxu1 %v5800_v37 }
 0x198   : > { %2585 = vmatprep.mubr.bf16.mxu0 %v5907_v42  ;;  %4537 = vmatpush3.bf16.msra.mxu1 %v5107_v44 }
 0x199   : > { %v1222_v48 = vpop.f32.mrb[12].mxu1  ;;  %4538 = vmatprep.subr.bf16.mxu1 %v7895_v35 }
 0x19a   : > { %v6702_v23 = vadd.f32 %v6645_v25, %v1222_v48  ;;  %v1224_v12 = vpop.f32.mrb[13].mxu1  ;;  %v1503_v10 = vpop.f32.mrb[28].mxu0 }
 0x19b   : > { %v1225_v15 = vpop.f32.mrb[14].mxu1  ;;  %v4450_v20 = vpop.f32.mrb[29].mxu0 }
 0x19c   : > { %v6705_v22 = vadd.f32 %v6647_v45, %v1225_v15  ;;  %v1227_v59 = vpop.f32.mrb[15].mxu1  ;;  %v6707_v36 = vpop.f32.mrb[30].mxu0  ;;  %4539 = vmatpush3.bf16.msra.mxu1 %v5109_v28 }
 0x19d   : > { %v4451_v37 = vpop.f32.mrb[31].mxu0  ;;  %4540 = vmatprep.subr.bf16.mxu1 %v7895_v35 }
 0x19e   : > { %1863 = vmatmul.mubr.bf16.gmra.mrb[120].mxu1 %v5998_v47 }
 0x19f   : > { %2586 = vmatmul.mubr.bf16.gmra.mrb[136].mxu0 %v6129_v29  ;;  %1870 = vmatprep.mubr.bf16.mxu1 %v5822_v49 }
 0x1a0   : > { %2593 = vmatprep.mubr.bf16.mxu0 %v5941_v3 }
 0x1a1   : > { %v1230_v25 = vpop.f32.mrb[16].mxu1 }
 0x1a2   : > { %v6715_v34 = vadd.f32 %v6656_v21, %v1230_v25  ;;  %v1232_v45 = vpop.f32.mrb[17].mxu1  ;;  %v1511_v44 = vpop.f32.mrb[32].mxu0 }
 0x1a3   : > { %v1233_v48 = vpop.f32.mrb[18].mxu1  ;;  %v4454_v12 = vpop.f32.mrb[33].mxu0 }
 0x1a4   : > { %v6718_v28 = vadd.f32 %v6661_v50, %v1233_v48  ;;  %v1235_v15 = vpop.f32.mrb[19].mxu1  ;;  %v1514_v20 = vpop.f32.mrb[34].mxu0  ;;  %v5111_v50 = vld [vmem:[#allocation6 + $0x170] sm:$0xff]  }
 0x1a5   : > { %v4455_v47 = vpop.f32.mrb[35].mxu0  ;;  %4541 = vmatpush3.bf16.msra.mxu1 %v5111_v50 }
 0x1a6   : > { %1871 = vmatmul.mubr.bf16.gmra.mrb[124].mxu1 %v6030_v14  ;;  %4542 = vmatprep.subr.bf16.mxu1 %v7895_v35 }
 0x1a7   : > { %2594 = vmatmul.mubr.bf16.gmra.mrb[140].mxu0 %v6162_v57  ;;  %1878 = vmatprep.mubr.bf16.mxu1 %v5847_v62  ;;  %v5112_v62 = vld [vmem:[#allocation6 + $0x230] sm:$0xff]  }
 0x1a8   : > { %2601 = vmatprep.mubr.bf16.mxu0 %v5979_v38  ;;  %4665 = vmatpush3.bf16.msra.mxu0 %v5112_v62 }
 0x1a9   : > { %v1238_v49 = vpop.f32.mrb[20].mxu1  ;;  %4666 = vmatprep.subr.bf16.mxu0 %v7895_v35 }
 0x1aa   : > { %v6725_v21 = vadd.f32 %v6671_v60, %v1238_v49  ;;  %v1240_v59 = vpop.f32.mrb[21].mxu1  ;;  %v6727_v37 = vpop.f32.mrb[36].mxu0 }
 0x1ab   : > { %v1241_v25 = vpop.f32.mrb[22].mxu1  ;;  %v4458_v45 = vpop.f32.mrb[37].mxu0 }
 0x1ac   : > { %v6730_v48 = vadd.f32 %v6676_v8, %v1241_v25  ;;  %v1243_v14 = vpop.f32.mrb[23].mxu1  ;;  %v6732_v12 = vpop.f32.mrb[38].mxu0 }
 0x1ad   : > { %v4459_v15 = vpop.f32.mrb[39].mxu0 }
 0x1ae   : > { %1879 = vmatmul.mubr.bf16.gmra.mrb[128].mxu1 %v6063_v51 }
 0x1af   : > { %2602 = vmatmul.mubr.bf16.gmra.mrb[144].mxu0 %v6193_v9  ;;  %1886 = vmatprep.mubr.bf16.mxu1 %v5876_v17 }
 0x1b0   : > { %2609 = vmatprep.mubr.bf16.mxu0 %v6011_v5 }
 0x1b1   : > { %v1246_v60 = vpop.f32.mrb[24].mxu1 }
 0x1b2   : > { %v6741_v8 = vadd.f32 %v6687_v4, %v1246_v60  ;;  %v1248_v47 = vpop.f32.mrb[25].mxu1  ;;  %v1527_v49 = vpop.f32.mrb[40].mxu0  ;;  %v5113_v60 = vld [vmem:[#allocation6 + $0x238] sm:$0xff]  }
 0x1b3   : > { %v1249_v59 = vpop.f32.mrb[26].mxu1  ;;  %v4462_v50 = vpop.f32.mrb[41].mxu0  ;;  %4667 = vmatpush3.bf16.msra.mxu0 %v5113_v60 }
 0x1b4   : > { %v6744_v25 = vadd.f32 %v6693_v13, %v1249_v59  ;;  %v1251_v51 = vpop.f32.mrb[27].mxu1  ;;  %v1530_v45 = vpop.f32.mrb[42].mxu0 }
 0x1b5   : > { %v4463_v14 = vpop.f32.mrb[43].mxu0 }
 0x1b6   : > { %1887 = vmatmul.mubr.bf16.gmra.mrb[132].mxu1 %v6096_v27 }
 0x1b7   : > { %2610 = vmatmul.mubr.bf16.gmra.mrb[148].mxu0 %v6223_v46  ;;  %1894 = vmatprep.mubr.bf16.mxu1 %v5907_v42 }
 0x1b8   : > { %2617 = vmatprep.mubr.bf16.mxu0 %v6044_v43 }
 0x1b9   : > { %v1254_v17 = vpop.f32.mrb[28].mxu1 }
 0x1ba   : > { %v6750_v4 = vadd.f32 %v1503_v10, %v1254_v17  ;;  %v1256_v62 = vpop.f32.mrb[29].mxu1  ;;  %v1535_v15 = vpop.f32.mrb[44].mxu0 }
 0x1bb   : > { %v1257_v47 = vpop.f32.mrb[30].mxu1  ;;  %v4466_v13 = vpop.f32.mrb[45].mxu0 }
 0x1bc   : > { %v6753_v59 = vadd.f32 %v6707_v36, %v1257_v47  ;;  %v1259_v50 = vpop.f32.mrb[31].mxu1  ;;  %v1538_v51 = vpop.f32.mrb[46].mxu0 }
 0x1bd   : > { %v4467_v27 = vpop.f32.mrb[47].mxu0  ;;  %v5114_v50 = vld [vmem:[#allocation6 + $0x178] sm:$0xff]  }
 0x1be   : > { %1895 = vmatmul.mubr.bf16.gmra.mrb[136].mxu1 %v6129_v29 }
 0x1bf   : > { %2618 = vmatmul.mubr.bf16.gmra.mrb[152].mxu0 %v6254_v7  ;;  %1902 = vmatprep.mubr.bf16.mxu1 %v5941_v3 }
 0x1c0   : > { %2625 = vmatprep.mubr.bf16.mxu0 %v6077_v40  ;;  %4543 = vmatpush3.bf16.msra.mxu1 %v5114_v50 }
 0x1c1   : > { %v1262_v42 = vpop.f32.mrb[32].mxu1 }
 0x1c2   : > { %v6759_v10 = vadd.f32 %v1511_v44, %v1262_v42  ;;  %v1264_v14 = vpop.f32.mrb[33].mxu1  ;;  %v1543_v17 = vpop.f32.mrb[48].mxu0 }
 0x1c3   : > { %v1265_v62 = vpop.f32.mrb[34].mxu1  ;;  %v4470_v36 = vpop.f32.mrb[49].mxu0 }
 0x1c4   : > { %v6761_v47 = vadd.f32 %v1514_v20, %v1265_v62  ;;  %v1267_v13 = vpop.f32.mrb[35].mxu1  ;;  %v1546_v60 = vpop.f32.mrb[50].mxu0 }
 0x1c5   : > { %v4471_v27 = vpop.f32.mrb[51].mxu0 }
 0x1c6   : > { %1903 = vmatmul.mubr.bf16.gmra.mrb[140].mxu1 %v6162_v57 }
 0x1c7   : > { %2626 = vmatmul.mubr.bf16.gmra.mrb[156].mxu0 %v6284_v0  ;;  %1910 = vmatprep.mubr.bf16.mxu1 %v5979_v38 }
 0x1c8   : > { %2633 = vmatprep.mubr.bf16.mxu0 %v6110_v2 }
 0x1c9   : > { %v1270_v3 = vpop.f32.mrb[36].mxu1 }
 0x1ca   : > { %v6768_v29 = vadd.f32 %v6727_v37, %v1270_v3  ;;  %v1272_v44 = vpop.f32.mrb[37].mxu1  ;;  %v1551_v20 = vpop.f32.mrb[52].mxu0 }
 0x1cb   : > { %v1273_v42 = vpop.f32.mrb[38].mxu1  ;;  %v4474_v14 = vpop.f32.mrb[53].mxu0 }
 0x1cc   : > { %v6771_v62 = vadd.f32 %v6732_v12, %v1273_v42  ;;  %v1275_v36 = vpop.f32.mrb[39].mxu1  ;;  %v1554_v57 = vpop.f32.mrb[54].mxu0 }
 0x1cd   : > { %v4475_v13 = vpop.f32.mrb[55].mxu0 }
 0x1ce   : > { %1911 = vmatmul.mubr.bf16.gmra.mrb[144].mxu1 %v6193_v9 }
 0x1cf   : > { %2634 = vmatmul.mubr.bf16.gmra.mrb[160].mxu0 %v6314_v19  ;;  %1918 = vmatprep.mubr.bf16.mxu1 %v6011_v5 }
 0x1d0   : > { %2641 = vmatprep.mubr.bf16.mxu0 %v6143_v32 }
 0x1d1   : > { %v1278_v38 = vpop.f32.mrb[40].mxu1 }
 0x1d2   : > { %v6777_v37 = vadd.f32 %v1527_v49, %v1278_v38  ;;  %v1280_v50 = vpop.f32.mrb[41].mxu1  ;;  %v1559_v27 = vpop.f32.mrb[56].mxu0 }
 0x1d3   : > { %v1281_v3 = vpop.f32.mrb[42].mxu1  ;;  %v4478_v44 = vpop.f32.mrb[57].mxu0 }
 0x1d4   : > { %v6779_v12 = vadd.f32 %v1530_v45, %v1281_v3  ;;  %v1283_v42 = vpop.f32.mrb[43].mxu1  ;;  %v1562_v14 = vpop.f32.mrb[58].mxu0 }
 0x1d5   : > { %v4479_v36 = vpop.f32.mrb[59].mxu0 }
 0x1d6   : > { %1919 = vmatmul.mubr.bf16.gmra.mrb[148].mxu1 %v6223_v46 }
 0x1d7   : > { %2642 = vmatmul.mubr.bf16.gmra.mrb[164].mxu0 %v6344_v6  ;;  %1926 = vmatprep.mubr.bf16.mxu1 %v6044_v43 }
 0x1d8   : > { %2649 = vmatprep.mubr.bf16.mxu0 %v6176_v11 }
 0x1d9   : > { %v1286_v5 = vpop.f32.mrb[44].mxu1 }
 0x1da   : > { %v6785_v9 = vadd.f32 %v1535_v15, %v1286_v5  ;;  %v1288_v49 = vpop.f32.mrb[45].mxu1  ;;  %v1567_v13 = vpop.f32.mrb[60].mxu0 }
 0x1db   : > { %v1289_v38 = vpop.f32.mrb[46].mxu1  ;;  %v4482_v50 = vpop.f32.mrb[61].mxu0 }
 0x1dc   : > { %v6787_v45 = vadd.f32 %v1538_v51, %v1289_v38  ;;  %v1291_v3 = vpop.f32.mrb[47].mxu1  ;;  %v1570_v44 = vpop.f32.mrb[62].mxu0 }
 0x1dd   : > { %v4483_v42 = vpop.f32.mrb[63].mxu0 }
 0x1de   : > { %1927 = vmatmul.mubr.bf16.gmra.mrb[152].mxu1 %v6254_v7 }
 0x1df   : > { %2650 = vmatmul.mubr.bf16.gmra.mrb[168].mxu0 %v6374_v54  ;;  %1934 = vmatprep.mubr.bf16.mxu1 %v6077_v40  ;;  %v7943_v40 = vld [vmem:[#allocation28_spill] sm:$0xff] }
 0x1e0   : > { %2657 = vmatprep.mubr.bf16.mxu0 %v6206_v56 }
 0x1e1   : > { %v1294_v43 = vpop.f32.mrb[48].mxu1 }
 0x1e2   : > { %v6793_v46 = vadd.f32 %v1543_v17, %v1294_v43  ;;  %v1296_v15 = vpop.f32.mrb[49].mxu1  ;;  %v1575_v36 = vpop.f32.mrb[64].mxu0 }
 0x1e3   : > { %v1297_v5 = vpop.f32.mrb[50].mxu1  ;;  %v4486_v49 = vpop.f32.mrb[65].mxu0 }
 0x1e4   : > { %v6795_v51 = vadd.f32 %v1546_v60, %v1297_v5  ;;  %v1299_v38 = vpop.f32.mrb[51].mxu1  ;;  %v1578_v50 = vpop.f32.mrb[66].mxu0 }
 0x1e5   : > { %v4487_v3 = vpop.f32.mrb[67].mxu0 }
 0x1e6   : > { %7942 = vst [vmem:[#allocation51_spill] sm:$0xff] %v6795_v51  ;;  %1935 = vmatmul.mubr.bf16.gmra.mrb[156].mxu1 %v6284_v0  ;;  %v7946_v0 = vld [vmem:[#allocation38_spill] sm:$0xff] }
 0x1e7   : > { %2658 = vmatmul.mubr.bf16.gmra.mrb[172].mxu0 %v6404_v1  ;;  %1942 = vmatprep.mubr.bf16.mxu1 %v6110_v2  ;;  %v7947_v2 = vld [vmem:[#allocation30_spill] sm:$0xff] }
 0x1e8   : > { %2665 = vmatprep.mubr.bf16.mxu0 %v7943_v40 }
 0x1e9   : > { %v1302_v7 = vpop.f32.mrb[52].mxu1 }
 0x1ea   : > { %v6801_v17 = vadd.f32 %v1551_v20, %v1302_v7  ;;  %v1304_v42 = vpop.f32.mrb[53].mxu1  ;;  %v1583_v43 = vpop.f32.mrb[68].mxu0 }
 0x1eb   : > { %v1305_v15 = vpop.f32.mrb[54].mxu1  ;;  %v4490_v49 = vpop.f32.mrb[69].mxu0 }
 0x1ec   : > { %7944 = vst [vmem:[#allocation28_spill] sm:$0xff] %v6801_v17  ;;  %v6803_v60 = vadd.f32 %v1554_v57, %v1305_v15  ;;  %v1307_v5 = vpop.f32.mrb[55].mxu1  ;;  %v1586_v38 = vpop.f32.mrb[70].mxu0 }
 0x1ed   : > { %v4491_v3 = vpop.f32.mrb[71].mxu0 }
 0x1ee   : > { %7945 = vst [vmem:[#allocation52_spill] sm:$0xff] %v6803_v60  ;;  %1943 = vmatmul.mubr.bf16.gmra.mrb[160].mxu1 %v6314_v19  ;;  %v7950_v19 = vld [vmem:[#allocation41_spill] sm:$0xff] }
 0x1ef   : > { %2666 = vmatmul.mubr.bf16.gmra.mrb[176].mxu0 %v7946_v0  ;;  %1950 = vmatprep.mubr.bf16.mxu1 %v6143_v32  ;;  %v7951_v32 = vld [vmem:[#allocation32_spill] sm:$0xff] }
 0x1f0   : > { %2673 = vmatprep.mubr.bf16.mxu0 %v7947_v2 }
 0x1f1   : > { %v1310_v51 = vpop.f32.mrb[56].mxu1 }
 0x1f2   : > { %v6809_v20 = vadd.f32 %v1559_v27, %v1310_v51  ;;  %v1312_v7 = vpop.f32.mrb[57].mxu1  ;;  %v1591_v42 = vpop.f32.mrb[72].mxu0 }
 0x1f3   : > { %v1313_v17 = vpop.f32.mrb[58].mxu1  ;;  %v4494_v49 = vpop.f32.mrb[73].mxu0 }
 0x1f4   : > { %7948 = vst [vmem:[#allocation38_spill] sm:$0xff] %v6809_v20  ;;  %v6811_v57 = vadd.f32 %v1562_v14, %v1313_v17  ;;  %v1315_v15 = vpop.f32.mrb[59].mxu1  ;;  %v1594_v5 = vpop.f32.mrb[74].mxu0 }
 0x1f5   : > { %v4495_v3 = vpop.f32.mrb[75].mxu0 }
 0x1f6   : > { %7949 = vst [vmem:[#allocation30_spill] sm:$0xff] %v6811_v57  ;;  %1951 = vmatmul.mubr.bf16.gmra.mrb[164].mxu1 %v6344_v6  ;;  %v7953_v6 = vld [vmem:[#allocation44_spill] sm:$0xff] }
 0x1f7   : > { %2674 = vmatmul.mubr.bf16.gmra.mrb[180].mxu0 %v7950_v19  ;;  %1958 = vmatprep.mubr.bf16.mxu1 %v6176_v11  ;;  %v7954_v11 = vld [vmem:[#allocation34_spill] sm:$0xff] }
 0x1f8   : > { %2681 = vmatprep.mubr.bf16.mxu0 %v7951_v32 }
 0x1f9   : > { %v1318_v60 = vpop.f32.mrb[60].mxu1 }
 0x1fa   : > { %v6817_v27 = vadd.f32 %v1567_v13, %v1318_v60  ;;  %v1320_v51 = vpop.f32.mrb[61].mxu1  ;;  %v1599_v7 = vpop.f32.mrb[76].mxu0 }
 0x1fb   : > { %v1321_v20 = vpop.f32.mrb[62].mxu1  ;;  %v4498_v49 = vpop.f32.mrb[77].mxu0 }
 0x1fc   : > { %7952 = vst [vmem:[#allocation41_spill] sm:$0xff] %v6817_v27  ;;  %v6819_v14 = vadd.f32 %v1570_v44, %v1321_v20  ;;  %v1323_v17 = vpop.f32.mrb[63].mxu1  ;;  %v1602_v15 = vpop.f32.mrb[78].mxu0 }
 0x1fd   : > { %v4499_v3 = vpop.f32.mrb[79].mxu0 }
 0x1fe   : > { %1959 = vmatmul.mubr.bf16.gmra.mrb[168].mxu1 %v6374_v54 }
 0x1ff   : > { %2682 = vmatmul.mubr.bf16.gmra.mrb[184].mxu0 %v7953_v6  ;;  %1966 = vmatprep.mubr.bf16.mxu1 %v6206_v56 }
 0x200   : > { %2689 = vmatprep.mubr.bf16.mxu0 %v7954_v11 }
 0x201   : > { %v1326_v57 = vpop.f32.mrb[64].mxu1 }
 0x202   : > { %v6825_v13 = vadd.f32 %v1575_v36, %v1326_v57  ;;  %v1328_v60 = vpop.f32.mrb[65].mxu1  ;;  %v1607_v51 = vpop.f32.mrb[80].mxu0 }
 0x203   : > { %v1329_v27 = vpop.f32.mrb[66].mxu1  ;;  %v4502_v49 = vpop.f32.mrb[81].mxu0 }
 0x204   : > { %v6827_v44 = vadd.f32 %v1578_v50, %v1329_v27  ;;  %v1331_v20 = vpop.f32.mrb[67].mxu1  ;;  %v1610_v17 = vpop.f32.mrb[82].mxu0 }
 0x205   : > { %v4503_v3 = vpop.f32.mrb[83].mxu0 }
 0x206   : > { %1967 = vmatmul.mubr.bf16.gmra.mrb[172].mxu1 %v6404_v1 }
 0x207   : > { %2690 = vmatmul.mubr.bf16.gmra.mrb[188].mxu0 %v6522_v31  ;;  %1974 = vmatprep.mubr.bf16.mxu1 %v7943_v40 }
 0x208   : > { %2697 = vmatprep.mubr.bf16.mxu0 %v6357_v24 }
 0x209   : > { %v1334_v56 = vpop.f32.mrb[68].mxu1 }
 0x20a   : > { %v6833_v54 = vadd.f32 %v1583_v43, %v1334_v56  ;;  %v1336_v36 = vpop.f32.mrb[69].mxu1  ;;  %v1615_v57 = vpop.f32.mrb[84].mxu0 }
 0x20b   : > { %v1337_v60 = vpop.f32.mrb[70].mxu1  ;;  %v4506_v49 = vpop.f32.mrb[85].mxu0 }
 0x20c   : > { %v6835_v50 = vadd.f32 %v1586_v38, %v1337_v60  ;;  %v1339_v27 = vpop.f32.mrb[71].mxu1  ;;  %v1618_v20 = vpop.f32.mrb[86].mxu0 }
 0x20d   : > { %v4507_v3 = vpop.f32.mrb[87].mxu0 }
 0x20e   : > { %1975 = vmatmul.mubr.bf16.gmra.mrb[176].mxu1 %v7946_v0 }
 0x20f   : > { %2698 = vmatmul.mubr.bf16.gmra.mrb[192].mxu0 %v6545_v30  ;;  %1982 = vmatprep.mubr.bf16.mxu1 %v7947_v2 }
 0x210   : > { %2705 = vmatprep.mubr.bf16.mxu0 %v6387_v39 }
 0x211   : > { %v1342_v1 = vpop.f32.mrb[72].mxu1 }
 0x212   : > { %v6841_v40 = vadd.f32 %v1591_v42, %v1342_v1  ;;  %v1344_v43 = vpop.f32.mrb[73].mxu1  ;;  %v1623_v56 = vpop.f32.mrb[88].mxu0 }
 0x213   : > { %v1345_v36 = vpop.f32.mrb[74].mxu1  ;;  %v4510_v49 = vpop.f32.mrb[89].mxu0 }
 0x214   : > { %v6843_v38 = vadd.f32 %v1594_v5, %v1345_v36  ;;  %v1347_v60 = vpop.f32.mrb[75].mxu1  ;;  %v1626_v27 = vpop.f32.mrb[90].mxu0 }
 0x215   : > { %v4511_v3 = vpop.f32.mrb[91].mxu0 }
 0x216   : > { %1983 = vmatmul.mubr.bf16.gmra.mrb[180].mxu1 %v7950_v19  ;;  %v7957_v19 = vld [vmem:[#allocation40_spill] sm:$0xff] }
 0x217   : > { %2706 = vmatmul.mubr.bf16.gmra.mrb[196].mxu0 %v6569_v52  ;;  %1990 = vmatprep.mubr.bf16.mxu1 %v7951_v32 }
 0x218   : > { %2713 = vmatprep.mubr.bf16.mxu0 %v6417_v63 }
 0x219   : > { %v1350_v0 = vpop.f32.mrb[76].mxu1 }
 0x21a   : > { %v6849_v2 = vadd.f32 %v1599_v7, %v1350_v0  ;;  %v1352_v42 = vpop.f32.mrb[77].mxu1  ;;  %v1631_v1 = vpop.f32.mrb[92].mxu0 }
 0x21b   : > { %v1353_v43 = vpop.f32.mrb[78].mxu1  ;;  %v4514_v49 = vpop.f32.mrb[93].mxu0 }
 0x21c   : > { %7955 = vst [vmem:[#allocation32_spill] sm:$0xff] %v6849_v2  ;;  %v6851_v5 = vadd.f32 %v1602_v15, %v1353_v43  ;;  %v1355_v36 = vpop.f32.mrb[79].mxu1  ;;  %v1634_v60 = vpop.f32.mrb[94].mxu0 }
 0x21d   : > { %v4515_v3 = vpop.f32.mrb[95].mxu0 }
 0x21e   : > { %7956 = vst [vmem:[#allocation44_spill] sm:$0xff] %v6851_v5  ;;  %1991 = vmatmul.mubr.bf16.gmra.mrb[184].mxu1 %v7953_v6  ;;  %v7959_v6 = vld [vmem:[#allocation49_spill] sm:$0xff] }
 0x21f   : > { %2714 = vmatmul.mubr.bf16.gmra.mrb[200].mxu0 %v6585_v58  ;;  %1998 = vmatprep.mubr.bf16.mxu1 %v7954_v11  ;;  %v7960_v11 = vld [vmem:[#allocation43_spill] sm:$0xff] }
 0x220   : > { %2721 = vmatprep.mubr.bf16.mxu0 %v7957_v19 }
 0x221   : > { %v1358_v32 = vpop.f32.mrb[80].mxu1 }
 0x222   : > { %v6857_v7 = vadd.f32 %v1607_v51, %v1358_v32  ;;  %v1360_v0 = vpop.f32.mrb[81].mxu1  ;;  %v1639_v42 = vpop.f32.mrb[96].mxu0 }
 0x223   : > { %v1361_v2 = vpop.f32.mrb[82].mxu1  ;;  %v4518_v49 = vpop.f32.mrb[97].mxu0 }
 0x224   : > { %7958 = vst [vmem:[#allocation34_spill] sm:$0xff] %v6857_v7  ;;  %v6859_v15 = vadd.f32 %v1610_v17, %v1361_v2  ;;  %v1363_v43 = vpop.f32.mrb[83].mxu1  ;;  %v1642_v36 = vpop.f32.mrb[98].mxu0 }
 0x225   : > { %v4519_v3 = vpop.f32.mrb[99].mxu0 }
 0x226   : > { %1999 = vmatmul.mubr.bf16.gmra.mrb[188].mxu1 %v6522_v31 }
 0x227   : > { %2722 = vmatmul.mubr.bf16.gmra.mrb[204].mxu0 %v7959_v6  ;;  %2006 = vmatprep.mubr.bf16.mxu1 %v6357_v24 }
 0x228   : > { %2729 = vmatprep.mubr.bf16.mxu0 %v7960_v11 }
 0x229   : > { %v1366_v5 = vpop.f32.mrb[84].mxu1 }
 0x22a   : > { %v6865_v51 = vadd.f32 %v1615_v57, %v1366_v5  ;;  %v1368_v32 = vpop.f32.mrb[85].mxu1  ;;  %v1647_v0 = vpop.f32.mrb[100].mxu0 }
 0x22b   : > { %v1369_v7 = vpop.f32.mrb[86].mxu1  ;;  %v4522_v49 = vpop.f32.mrb[101].mxu0 }
 0x22c   : > { %v6867_v17 = vadd.f32 %v1618_v20, %v1369_v7  ;;  %v1371_v2 = vpop.f32.mrb[87].mxu1  ;;  %v1650_v43 = vpop.f32.mrb[102].mxu0 }
 0x22d   : > { %v4523_v3 = vpop.f32.mrb[103].mxu0 }
 0x22e   : > { %2007 = vmatmul.mubr.bf16.gmra.mrb[192].mxu1 %v6545_v30 }
 0x22f   : > { %2730 = vmatmul.mubr.bf16.gmra.mrb[208].mxu0 %v6620_v41  ;;  %2014 = vmatprep.mubr.bf16.mxu1 %v6387_v39 }
 0x230   : > { %2737 = vmatprep.mubr.bf16.mxu0 %v6626_v33 }
 0x231   : > { %v1374_v24 = vpop.f32.mrb[88].mxu1 }
 0x232   : > { %v6873_v31 = vadd.f32 %v1623_v56, %v1374_v24  ;;  %v1376_v57 = vpop.f32.mrb[89].mxu1  ;;  %v1655_v5 = vpop.f32.mrb[104].mxu0 }
 0x233   : > { %v1377_v32 = vpop.f32.mrb[90].mxu1  ;;  %v4526_v49 = vpop.f32.mrb[105].mxu0 }
 0x234   : > { %v6875_v20 = vadd.f32 %v1626_v27, %v1377_v32  ;;  %v1379_v7 = vpop.f32.mrb[91].mxu1  ;;  %v1658_v2 = vpop.f32.mrb[106].mxu0  ;;  %v7961_v32 = vld [vmem:[#allocation13_spill] sm:$0xff] }
 0x235   : > { %v4527_v3 = vpop.f32.mrb[107].mxu0 }
 0x236   : > { %2015 = vmatmul.mubr.bf16.gmra.mrb[196].mxu1 %v6569_v52 }
 0x237   : > { %2738 = vmatmul.mubr.bf16.gmra.mrb[212].mxu0 %v6643_v18  ;;  %2022 = vmatprep.mubr.bf16.mxu1 %v6417_v63 }
 0x238   : > { %4668 = vmatprep.mubr.msk.bf16.mxu0 %vm5524_vm0, %v7895_v35 }
 0x239   : > { %v1382_v39 = vpop.f32.mrb[92].mxu1 }
 0x23a   : > { %v6882_v30 = vadd.f32 %v1631_v1, %v1382_v39  ;;  %v1384_v56 = vpop.f32.mrb[93].mxu1 }
 0x23b   : > { %v1385_v24 = vpop.f32.mrb[94].mxu1 }
 0x23c   : > { %v6884_v57 = vadd.f32 %v1634_v60, %v1385_v24  ;;  %v1387_v27 = vpop.f32.mrb[95].mxu1  ;;  %v7962_v60 = vld [vmem:[#allocation14_spill] sm:$0xff] }
 0x23e   : > { %2023 = vmatmul.mubr.bf16.gmra.mrb[200].mxu1 %v6585_v58 }
 0x23f   : > { %4669 = vmatmul.mubr.bf16.vlgmr.msra.gmra.mrb[108].mxu0 %v7961_v32  ;;  %2030 = vmatprep.mubr.bf16.mxu1 %v7957_v19 }
 0x240   : > { %4672 = vmatprep.mubr.msk.bf16.mxu0 %vm5524_vm0, %v7895_v35 }
 0x241   : > { %v1390_v63 = vpop.f32.mrb[96].mxu1 }
 0x242   : > { %v6891_v52 = vadd.f32 %v1639_v42, %v1390_v63  ;;  %v1392_v49 = vpop.f32.mrb[97].mxu1 }
 0x243   : > { %v1393_v1 = vpop.f32.mrb[98].mxu1 }
 0x244   : > { %v6893_v7 = vadd.f32 %v1642_v36, %v1393_v1  ;;  %v1395_v3 = vpop.f32.mrb[99].mxu1  ;;  %v7963_v36 = vld [vmem:[#allocation15_spill] sm:$0xff]  ;;  %v7964_v1 = vld [vmem:[#allocation16_spill] sm:$0xff] }
 0x246   : > { %2031 = vmatmul.mubr.bf16.gmra.mrb[204].mxu1 %v7959_v6 }
 0x247   : > { %4673 = vmatmul.mubr.bf16.gmra.mrb[112].mxu0 %v7962_v60  ;;  %2038 = vmatprep.mubr.bf16.mxu1 %v7960_v11 }
 0x248   : > { %4676 = vmatprep.mubr.msk.bf16.mxu0 %vm5524_vm0, %v7895_v35 }
 0x249   : > { %v1398_v58 = vpop.f32.mrb[100].mxu1 }
 0x24a   : > { %v6900_v19 = vadd.f32 %v1647_v0, %v1398_v58  ;;  %v1400_v39 = vpop.f32.mrb[101].mxu1 }
 0x24b   : > { %v1401_v42 = vpop.f32.mrb[102].mxu1 }
 0x24c   : > { %v1651_v56 = vadd.f32 %v1650_v43, %v1401_v42  ;;  %v1403_v24 = vpop.f32.mrb[103].mxu1 }
 0x24e   : > { %2039 = vmatmul.mubr.bf16.gmra.mrb[208].mxu1 %v6620_v41 }
 0x24f   : > { %4677 = vmatmul.mubr.bf16.gmra.mrb[116].mxu0 %v7963_v36  ;;  %2046 = vmatprep.mubr.bf16.mxu1 %v6626_v33 }
 0x250   : > { %4680 = vmatprep.mubr.msk.bf16.mxu0 %vm5524_vm0, %v7895_v35 }
 0x251   : > { %v1406_v6 = vpop.f32.mrb[104].mxu1 }
 0x252   : > { %v1656_v11 = vadd.f32 %v1655_v5, %v1406_v6  ;;  %v1408_v27 = vpop.f32.mrb[105].mxu1 }
 0x253   : > { %v1409_v63 = vpop.f32.mrb[106].mxu1 }
 0x254   : > { %v1659_v49 = vadd.f32 %v1658_v2, %v1409_v63  ;;  %v1411_v0 = vpop.f32.mrb[107].mxu1  ;;  %v7965_v2 = vld [vmem:[#allocation17_spill] sm:$0xff] }
 0x256   : > { %2047 = vmatmul.mubr.bf16.gmra.mrb[212].mxu1 %v6643_v18 }
 0x257   : > { %4681 = vmatmul.mubr.bf16.gmra.mrb[120].mxu0 %v7964_v1  ;;  %4544 = vmatprep.mubr.msk.bf16.mxu1 %vm5524_vm0, %v7895_v35 }
 0x258   : > { %4684 = vmatprep.mubr.msk.bf16.mxu0 %vm5524_vm0, %v7895_v35 }
 0x259   : > { %v1840_v41 = vpop.f32.mrb[108].mxu1 }
 0x25a   : > { %v6913_v33 = vadd.f32 %v1840_v41, %v1651_v56  ;;  %v1842_v43 = vpop.f32.mrb[109].mxu1 }
 0x25b   : > { %v1843_v3 = vpop.f32.mrb[110].mxu1  ;;  %v7968_v43 = vld [vmem:[#allocation50_spill] sm:$0xff] }
 0x25c   : > { %v6915_v5 = vadd.f32 %v1843_v3, %v1656_v11  ;;  %v1845_v58 = vpop.f32.mrb[111].mxu1 }
 0x25e   : > { %4545 = vmatmul.mubr.bf16.vlgmr.msra.gmra.mrb[216].mxu1 %v7961_v32  ;;  %v7966_v32 = vld [vmem:[#allocation18_spill] sm:$0xff] }
 0x25f   : > { %4685 = vmatmul.mubr.bf16.gmra.mrb[124].mxu0 %v7965_v2  ;;  %4548 = vmatprep.mubr.msk.bf16.mxu1 %vm5524_vm0, %v7895_v35 }
 0x260   : > { %4688 = vmatprep.mubr.msk.bf16.mxu0 %vm5524_vm0, %v7895_v35 }
 0x261   : > { %v1848_v18 = vpop.f32.mrb[112].mxu1 }
 0x262   : > { %v6923_v39 = vadd.f32 %v1848_v18, %v1659_v49  ;;  %v1850_v42 = vpop.f32.mrb[113].mxu1 }
 0x263   : > { %v1851_v56 = vpop.f32.mrb[114].mxu1 }
 0x264   : > { %v6926_v24 = vadd.f32 %v1851_v56, %v6654_v16  ;;  %v1853_v6 = vpop.f32.mrb[115].mxu1 }
 0x266   : > { %4549 = vmatmul.mubr.bf16.gmra.mrb[220].mxu1 %v7962_v60  ;;  %v7967_v60 = vld [vmem:[#allocation19_spill] sm:$0xff] }
 0x267   : > { %4689 = vmatmul.mubr.bf16.gmra.mrb[128].mxu0 %v7966_v32  ;;  %4552 = vmatprep.mubr.msk.bf16.mxu1 %vm5524_vm0, %v7895_v35 }
 0x268   : > { %4692 = vmatprep.mubr.msk.bf16.mxu0 %vm5524_vm0, %v7895_v35 }
 0x269   : > { %v1856_v11 = vpop.f32.mrb[116].mxu1 }
 0x26a   : > { %v6935_v27 = vadd.f32 %v1856_v11, %v6659_v55  ;;  %v1858_v63 = vpop.f32.mrb[117].mxu1 }
 0x26b   : > { %v1859_v49 = vpop.f32.mrb[118].mxu1 }
 0x26c   : > { %v6938_v16 = vadd.f32 %v1859_v49, %v6669_v61  ;;  %v1861_v0 = vpop.f32.mrb[119].mxu1 }
 0x26e   : > { %4553 = vmatmul.mubr.bf16.gmra.mrb[224].mxu1 %v7963_v36  ;;  %v7969_v36 = vld [vmem:[#allocation20_spill] sm:$0xff] }
 0x26f   : > { %4693 = vmatmul.mubr.bf16.gmra.mrb[132].mxu0 %v7967_v60  ;;  %4556 = vmatprep.mubr.msk.bf16.mxu1 %vm5524_vm0, %v7895_v35 }
 0x270   : > { %4696 = vmatprep.mubr.msk.bf16.mxu0 %vm5524_vm0, %v7895_v35 }
 0x271   : > { %v1864_v41 = vpop.f32.mrb[120].mxu1 }
 0x272   : > { %v6947_v55 = vadd.f32 %v1864_v41, %v7968_v43  ;;  %v1866_v3 = vpop.f32.mrb[121].mxu1 }
 0x273   : > { %v1867_v58 = vpop.f32.mrb[122].mxu1 }
 0x274   : > { %v6950_v61 = vadd.f32 %v1867_v58, %v6685_v53  ;;  %v1869_v18 = vpop.f32.mrb[123].mxu1 }
 0x276   : > { %4557 = vmatmul.mubr.bf16.gmra.mrb[228].mxu1 %v7964_v1  ;;  %v7970_v1 = vld [vmem:[#allocation21_spill] sm:$0xff] }
 0x277   : > { %4697 = vmatmul.mubr.bf16.gmra.mrb[136].mxu0 %v7969_v36  ;;  %4560 = vmatprep.mubr.msk.bf16.mxu1 %vm5524_vm0, %v7895_v35 }
 0x278   : > { %4700 = vmatprep.mubr.msk.bf16.mxu0 %vm5524_vm0, %v7895_v35 }
 0x279   : > { %v1872_v42 = vpop.f32.mrb[124].mxu1 }
 0x27a   : > { %v6959_v56 = vadd.f32 %v1872_v42, %v6691_v26  ;;  %v1874_v6 = vpop.f32.mrb[125].mxu1 }
 0x27b   : > { %v1875_v11 = vpop.f32.mrb[126].mxu1 }
 0x27c   : > { %v6962_v53 = vadd.f32 %v1875_v11, %v6702_v23  ;;  %v1877_v63 = vpop.f32.mrb[127].mxu1 }
 0x27e   : > { %4561 = vmatmul.mubr.bf16.gmra.mrb[232].mxu1 %v7965_v2  ;;  %v7971_v2 = vld [vmem:[#allocation22_spill] sm:$0xff] }
 0x27f   : > { %4701 = vmatmul.mubr.bf16.gmra.mrb[140].mxu0 %v7970_v1  ;;  %4564 = vmatprep.mubr.msk.bf16.mxu1 %vm5524_vm0, %v7895_v35 }
 0x280   : > { %4704 = vmatprep.mubr.msk.bf16.mxu0 %vm5524_vm0, %v7895_v35 }
 0x281   : > { %v1880_v49 = vpop.f32.mrb[128].mxu1 }
 0x282   : > { %v6971_v26 = vadd.f32 %v1880_v49, %v6705_v22  ;;  %v1882_v0 = vpop.f32.mrb[129].mxu1 }
 0x283   : > { %v1883_v41 = vpop.f32.mrb[130].mxu1 }
 0x284   : > { %v6974_v23 = vadd.f32 %v1883_v41, %v6715_v34  ;;  %v1885_v43 = vpop.f32.mrb[131].mxu1 }
 0x286   : > { %4565 = vmatmul.mubr.bf16.gmra.mrb[236].mxu1 %v7966_v32  ;;  %v7972_v32 = vld [vmem:[#allocation23_spill] sm:$0xff] }
 0x287   : > { %4705 = vmatmul.mubr.bf16.gmra.mrb[144].mxu0 %v7971_v2  ;;  %4568 = vmatprep.mubr.msk.bf16.mxu1 %vm5524_vm0, %v7895_v35 }
 0x288   : > { %4708 = vmatprep.mubr.msk.bf16.mxu0 %vm5524_vm0, %v7895_v35 }
 0x289   : > { %v1888_v3 = vpop.f32.mrb[132].mxu1 }
 0x28a   : > { %v6983_v22 = vadd.f32 %v1888_v3, %v6718_v28  ;;  %v1890_v58 = vpop.f32.mrb[133].mxu1 }
 0x28b   : > { %v1891_v18 = vpop.f32.mrb[134].mxu1 }
 0x28c   : > { %v6986_v34 = vadd.f32 %v1891_v18, %v6725_v21  ;;  %v1893_v42 = vpop.f32.mrb[135].mxu1 }
 0x28e   : > { %4569 = vmatmul.mubr.bf16.gmra.mrb[240].mxu1 %v7967_v60  ;;  %v7973_v60 = vld [vmem:[#allocation24_spill] sm:$0xff] }
 0x28f   : > { %4709 = vmatmul.mubr.bf16.gmra.mrb[148].mxu0 %v7972_v32  ;;  %4572 = vmatprep.mubr.msk.bf16.mxu1 %vm5524_vm0, %v7895_v35 }
 0x290   : > { %4712 = vmatprep.mubr.msk.bf16.mxu0 %vm5524_vm0, %v7895_v35 }
 0x291   : > { %v1896_v6 = vpop.f32.mrb[136].mxu1 }
 0x292   : > { %v6995_v28 = vadd.f32 %v1896_v6, %v6730_v48  ;;  %v1898_v11 = vpop.f32.mrb[137].mxu1 }
 0x293   : > { %v1899_v63 = vpop.f32.mrb[138].mxu1 }
 0x294   : > { %v6998_v21 = vadd.f32 %v1899_v63, %v6741_v8  ;;  %v1901_v49 = vpop.f32.mrb[139].mxu1 }
 0x296   : > { %4573 = vmatmul.mubr.bf16.gmra.mrb[244].mxu1 %v7969_v36  ;;  %v7974_v36 = vld [vmem:[#allocation25_spill] sm:$0xff] }
 0x297   : > { %4713 = vmatmul.mubr.bf16.gmra.mrb[152].mxu0 %v7973_v60  ;;  %4576 = vmatprep.mubr.msk.bf16.mxu1 %vm5524_vm0, %v7895_v35 }
 0x298   : > { %4716 = vmatprep.mubr.msk.bf16.mxu0 %vm5524_vm0, %v7895_v35 }
 0x299   : > { %v1904_v0 = vpop.f32.mrb[140].mxu1 }
 0x29a   : > { %v7007_v48 = vadd.f32 %v1904_v0, %v6744_v25  ;;  %v1906_v41 = vpop.f32.mrb[141].mxu1 }
 0x29b   : > { %v1907_v43 = vpop.f32.mrb[142].mxu1 }
 0x29c   : > { %v7010_v8 = vadd.f32 %v1907_v43, %v6750_v4  ;;  %v1909_v3 = vpop.f32.mrb[143].mxu1 }
 0x29e   : > { %4577 = vmatmul.mubr.bf16.gmra.mrb[248].mxu1 %v7970_v1  ;;  %v7975_v1 = vld [vmem:[#allocation26_spill] sm:$0xff] }
 0x29f   : > { %4717 = vmatmul.mubr.bf16.gmra.mrb[156].mxu0 %v7974_v36  ;;  %4580 = vmatprep.mubr.msk.bf16.mxu1 %vm5524_vm0, %v7895_v35 }
 0x2a0   : > { %4720 = vmatprep.mubr.msk.bf16.mxu0 %vm5524_vm0, %v7895_v35 }
 0x2a1   : > { %v1912_v58 = vpop.f32.mrb[144].mxu1 }
 0x2a2   : > { %v7019_v25 = vadd.f32 %v1912_v58, %v6753_v59  ;;  %v1914_v18 = vpop.f32.mrb[145].mxu1 }
 0x2a3   : > { %v1915_v42 = vpop.f32.mrb[146].mxu1 }
 0x2a4   : > { %v7022_v4 = vadd.f32 %v1915_v42, %v6759_v10  ;;  %v1917_v6 = vpop.f32.mrb[147].mxu1 }
 0x2a6   : > { %4581 = vmatmul.mubr.bf16.gmra.mrb[252].mxu1 %v7971_v2  ;;  %v7976_v2 = vld [vmem:[#allocation27_spill] sm:$0xff] }
 0x2a7   : > { %4721 = vmatmul.mubr.bf16.gmra.mrb[160].mxu0 %v7975_v1  ;;  %4584 = vmatprep.mubr.msk.bf16.mxu1 %vm5524_vm0, %v7895_v35 }
 0x2a8   : > { %4724 = vmatprep.mubr.msk.bf16.mxu0 %vm5524_vm0, %v7895_v35 }
 0x2a9   : > { %v1920_v11 = vpop.f32.mrb[148].mxu1 }
 0x2aa   : > { %v7031_v59 = vadd.f32 %v1920_v11, %v6761_v47  ;;  %v1922_v63 = vpop.f32.mrb[149].mxu1 }
 0x2ab   : > { %v1923_v49 = vpop.f32.mrb[150].mxu1 }
 0x2ac   : > { %v7034_v10 = vadd.f32 %v1923_v49, %v6768_v29  ;;  %v1925_v0 = vpop.f32.mrb[151].mxu1 }
 0x2ae   : > { %4585 = vmatmul.mubr.bf16.gmra.mrb[0].mxu1 %v7972_v32  ;;  %v7977_v32 = vld [vmem:[#allocation29_spill] sm:$0xff] }
 0x2af   : > { %4725 = vmatmul.mubr.bf16.gmra.mrb[164].mxu0 %v7976_v2  ;;  %4588 = vmatprep.mubr.msk.bf16.mxu1 %vm5524_vm0, %v7895_v35 }
 0x2b0   : > { %4728 = vmatprep.mubr.msk.bf16.mxu0 %vm5524_vm0, %v7895_v35 }
 0x2b1   : > { %v1928_v41 = vpop.f32.mrb[152].mxu1 }
 0x2b2   : > { %v7043_v47 = vadd.f32 %v1928_v41, %v6771_v62  ;;  %v1930_v43 = vpop.f32.mrb[153].mxu1 }
 0x2b3   : > { %v1931_v3 = vpop.f32.mrb[154].mxu1 }
 0x2b4   : > { %v7046_v29 = vadd.f32 %v1931_v3, %v6777_v37  ;;  %v1933_v58 = vpop.f32.mrb[155].mxu1  ;;  %v7980_v3 = vld [vmem:[#allocation51_spill] sm:$0xff] }
 0x2b6   : > { %4589 = vmatmul.mubr.bf16.gmra.mrb[4].mxu1 %v7973_v60  ;;  %v7978_v60 = vld [vmem:[#allocation31_spill] sm:$0xff] }
 0x2b7   : > { %4729 = vmatmul.mubr.bf16.gmra.mrb[168].mxu0 %v7977_v32  ;;  %4592 = vmatprep.mubr.msk.bf16.mxu1 %vm5524_vm0, %v7895_v35 }
 0x2b8   : > { %4732 = vmatprep.mubr.msk.bf16.mxu0 %vm5524_vm0, %v7895_v35 }
 0x2b9   : > { %v1936_v18 = vpop.f32.mrb[156].mxu1 }
 0x2ba   : > { %v7055_v62 = vadd.f32 %v1936_v18, %v6779_v12  ;;  %v1938_v42 = vpop.f32.mrb[157].mxu1 }
 0x2bb   : > { %v1939_v6 = vpop.f32.mrb[158].mxu1  ;;  %v7981_v42 = vld [vmem:[#allocation28_spill] sm:$0xff] }
 0x2bc   : > { %v7058_v37 = vadd.f32 %v1939_v6, %v6785_v9  ;;  %v1941_v11 = vpop.f32.mrb[159].mxu1 }
 0x2be   : > { %4593 = vmatmul.mubr.bf16.gmra.mrb[8].mxu1 %v7974_v36  ;;  %v7979_v36 = vld [vmem:[#allocation33_spill] sm:$0xff] }
 0x2bf   : > { %4733 = vmatmul.mubr.bf16.gmra.mrb[172].mxu0 %v7978_v60  ;;  %4596 = vmatprep.mubr.msk.bf16.mxu1 %vm5524_vm0, %v7895_v35 }
 0x2c0   : > { %4736 = vmatprep.mubr.msk.bf16.mxu0 %vm5524_vm0, %v7895_v35 }
 0x2c1   : > { %v1944_v63 = vpop.f32.mrb[160].mxu1 }
 0x2c2   : > { %v7067_v12 = vadd.f32 %v1944_v63, %v6787_v45  ;;  %v1946_v49 = vpop.f32.mrb[161].mxu1  ;;  %v7983_v63 = vld [vmem:[#allocation52_spill] sm:$0xff] }
 0x2c3   : > { %v1947_v0 = vpop.f32.mrb[162].mxu1 }
 0x2c4   : > { %v7070_v9 = vadd.f32 %v1947_v0, %v6793_v46  ;;  %v1949_v41 = vpop.f32.mrb[163].mxu1 }
 0x2c6   : > { %4597 = vmatmul.mubr.bf16.gmra.mrb[12].mxu1 %v7975_v1  ;;  %v7982_v1 = vld [vmem:[#allocation35_spill] sm:$0xff] }
 0x2c7   : > { %4737 = vmatmul.mubr.bf16.gmra.mrb[176].mxu0 %v7979_v36  ;;  %4600 = vmatprep.mubr.msk.bf16.mxu1 %vm5524_vm0, %v7895_v35 }
 0x2c8   : > { %4740 = vmatprep.mubr.msk.bf16.mxu0 %vm5524_vm0, %v7895_v35 }
 0x2c9   : > { %v1952_v43 = vpop.f32.mrb[164].mxu1 }
 0x2ca   : > { %v7079_v45 = vadd.f32 %v1952_v43, %v7980_v3  ;;  %v1954_v58 = vpop.f32.mrb[165].mxu1  ;;  %v7984_v43 = vld [vmem:[#allocation38_spill] sm:$0xff] }
 0x2cb   : > { %v1955_v18 = vpop.f32.mrb[166].mxu1 }
 0x2cc   : > { %v7082_v46 = vadd.f32 %v1955_v18, %v7981_v42  ;;  %v1957_v6 = vpop.f32.mrb[167].mxu1  ;;  %v7986_v42 = vld [vmem:[#allocation30_spill] sm:$0xff] }
 0x2ce   : > { %4601 = vmatmul.mubr.bf16.gmra.mrb[16].mxu1 %v7976_v2  ;;  %v7985_v2 = vld [vmem:[#allocation36_spill] sm:$0xff] }
 0x2cf   : > { %4741 = vmatmul.mubr.bf16.gmra.mrb[180].mxu0 %v7982_v1  ;;  %4604 = vmatprep.mubr.msk.bf16.mxu1 %vm5524_vm0, %v7895_v35 }
 0x2d0   : > { %4744 = vmatprep.mubr.msk.bf16.mxu0 %vm5524_vm0, %v7895_v35 }
 0x2d1   : > { %v1960_v11 = vpop.f32.mrb[168].mxu1 }
 0x2d2   : > { %v7091_v49 = vadd.f32 %v1960_v11, %v7983_v63  ;;  %v1962_v0 = vpop.f32.mrb[169].mxu1 }
 0x2d3   : > { %v1963_v41 = vpop.f32.mrb[170].mxu1  ;;  %v7987_v0 = vld [vmem:[#allocation41_spill] sm:$0xff] }
 0x2d4   : > { %v7094_v3 = vadd.f32 %v1963_v41, %v7984_v43  ;;  %v1965_v58 = vpop.f32.mrb[171].mxu1 }
 0x2d6   : > { %4605 = vmatmul.mubr.bf16.gmra.mrb[20].mxu1 %v7977_v32  ;;  %v7988_v32 = vld [vmem:[#allocation37_spill] sm:$0xff] }
 0x2d7   : > { %4745 = vmatmul.mubr.bf16.gmra.mrb[184].mxu0 %v7985_v2  ;;  %4608 = vmatprep.mubr.msk.bf16.mxu1 %vm5524_vm0, %v7895_v35 }
 0x2d8   : > { %4748 = vmatprep.mubr.msk.bf16.mxu0 %vm5524_vm0, %v7895_v35 }
 0x2d9   : > { %v1968_v18 = vpop.f32.mrb[172].mxu1 }
 0x2da   : > { %v7103_v6 = vadd.f32 %v1968_v18, %v7986_v42  ;;  %v1970_v11 = vpop.f32.mrb[173].mxu1 }
 0x2db   : > { %v1971_v63 = vpop.f32.mrb[174].mxu1 }
 0x2dc   : > { %v7106_v41 = vadd.f32 %v1971_v63, %v7987_v0  ;;  %v1973_v43 = vpop.f32.mrb[175].mxu1 }
 0x2de   : > { %4609 = vmatmul.mubr.bf16.gmra.mrb[24].mxu1 %v7978_v60  ;;  %v7989_v60 = vld [vmem:[#allocation39_spill] sm:$0xff] }
 0x2df   : > { %4749 = vmatmul.mubr.bf16.gmra.mrb[188].mxu0 %v7988_v32  ;;  %4612 = vmatprep.mubr.msk.bf16.mxu1 %vm5524_vm0, %v7895_v35 }
 0x2e0   : > { %4752 = vmatprep.mubr.msk.bf16.mxu0 %vm5524_vm0, %v7895_v35 }
 0x2e1   : > { %v1976_v58 = vpop.f32.mrb[176].mxu1 }
 0x2e2   : > { %v7115_v18 = vadd.f32 %v1976_v58, %v6819_v14  ;;  %v1978_v42 = vpop.f32.mrb[177].mxu1 }
 0x2e3   : > { %v1979_v11 = vpop.f32.mrb[178].mxu1 }
 0x2e4   : > { %v7118_v63 = vadd.f32 %v1979_v11, %v6825_v13  ;;  %v1981_v0 = vpop.f32.mrb[179].mxu1 }
 0x2e6   : > { %4613 = vmatmul.mubr.bf16.gmra.mrb[28].mxu1 %v7979_v36  ;;  %v7990_v36 = vld [vmem:[#allocation42_spill] sm:$0xff] }
 0x2e7   : > { %4753 = vmatmul.mubr.bf16.gmra.mrb[192].mxu0 %v7989_v60  ;;  %4616 = vmatprep.mubr.msk.bf16.mxu1 %vm5524_vm0, %v7895_v35 }
 0x2e8   : > { %4756 = vmatprep.mubr.msk.bf16.mxu0 %vm5524_vm0, %v7895_v35 }
 0x2e9   : > { %v1984_v43 = vpop.f32.mrb[180].mxu1 }
 0x2ea   : > { %v7127_v14 = vadd.f32 %v1984_v43, %v6827_v44  ;;  %v1986_v58 = vpop.f32.mrb[181].mxu1 }
 0x2eb   : > { %v1987_v42 = vpop.f32.mrb[182].mxu1 }
 0x2ec   : > { %v7130_v13 = vadd.f32 %v1987_v42, %v6833_v54  ;;  %v1989_v11 = vpop.f32.mrb[183].mxu1 }
 0x2ee   : > { %4617 = vmatmul.mubr.bf16.gmra.mrb[32].mxu1 %v7982_v1  ;;  %v7993_v1 = vld [vmem:[#allocation45_spill] sm:$0xff] }
 0x2ef   : > { %4757 = vmatmul.mubr.bf16.gmra.mrb[196].mxu0 %v7990_v36  ;;  %4620 = vmatprep.mubr.msk.bf16.mxu1 %vm5524_vm0, %v7895_v35 }
 0x2f0   : > { %4760 = vmatprep.mubr.msk.bf16.mxu0 %vm5524_vm0, %v7895_v35 }
 0x2f1   : > { %v1992_v0 = vpop.f32.mrb[184].mxu1 }
 0x2f2   : > { %v7139_v44 = vadd.f32 %v1992_v0, %v6835_v50  ;;  %v1994_v43 = vpop.f32.mrb[185].mxu1 }
 0x2f3   : > { %v1995_v58 = vpop.f32.mrb[186].mxu1 }
 0x2f4   : > { %7991 = vst [vmem:[#allocation40_spill] sm:$0xff] %v7139_v44  ;;  %v7142_v54 = vadd.f32 %v1995_v58, %v6841_v40  ;;  %v1997_v42 = vpop.f32.mrb[187].mxu1  ;;  %v7995_v44 = vld [vmem:[#allocation32_spill] sm:$0xff] }
 0x2f6   : > { %7992 = vst [vmem:[#allocation49_spill] sm:$0xff] %v7142_v54  ;;  %4621 = vmatmul.mubr.bf16.gmra.mrb[36].mxu1 %v7985_v2  ;;  %v7996_v2 = vld [vmem:[#allocation46_spill] sm:$0xff]  ;;  %v7997_v54 = vld [vmem:[#allocation44_spill] sm:$0xff] }
 0x2f7   : > { %4761 = vmatmul.mubr.bf16.gmra.mrb[200].mxu0 %v7993_v1  ;;  %4624 = vmatprep.mubr.msk.bf16.mxu1 %vm5524_vm0, %v7895_v35 }
 0x2f8   : > { %4764 = vmatprep.mubr.msk.bf16.mxu0 %vm5524_vm0, %v7895_v35 }
 0x2f9   : > { %v2000_v11 = vpop.f32.mrb[188].mxu1 }
 0x2fa   : > { %v7151_v50 = vadd.f32 %v2000_v11, %v6843_v38  ;;  %v2002_v0 = vpop.f32.mrb[189].mxu1 }
 0x2fb   : > { %v2003_v43 = vpop.f32.mrb[190].mxu1 }
 0x2fc   : > { %7994 = vst [vmem:[#allocation43_spill] sm:$0xff] %v7151_v50  ;;  %v7154_v40 = vadd.f32 %v2003_v43, %v7995_v44  ;;  %v2005_v58 = vpop.f32.mrb[191].mxu1  ;;  %v7999_v50 = vld [vmem:[#allocation34_spill] sm:$0xff] }
 0x2fe   : > { %4625 = vmatmul.mubr.bf16.gmra.mrb[40].mxu1 %v7988_v32  ;;  %v8001_v32 = vld [vmem:[#allocation47_spill] sm:$0xff] }
 0x2ff   : > { %4765 = vmatmul.mubr.bf16.gmra.mrb[204].mxu0 %v7996_v2  ;;  %4628 = vmatprep.mubr.msk.bf16.mxu1 %vm5524_vm0, %v7895_v35 }
 0x300   : > { %4768 = vmatprep.mubr.msk.bf16.mxu0 %vm5524_vm0, %v7895_v35 }
 0x301   : > { %v2008_v42 = vpop.f32.mrb[192].mxu1 }
 0x302   : > { %v7163_v38 = vadd.f32 %v2008_v42, %v7997_v54  ;;  %v2010_v11 = vpop.f32.mrb[193].mxu1 }
 0x303   : > { %v2011_v0 = vpop.f32.mrb[194].mxu1 }
 0x304   : > { %7998 = vst [vmem:[#allocation13_spill] sm:$0xff] %v7163_v38  ;;  %v7166_v44 = vadd.f32 %v2011_v0, %v7999_v50  ;;  %v2013_v43 = vpop.f32.mrb[195].mxu1 }
 0x306   : > { %8000 = vst [vmem:[#allocation14_spill] sm:$0xff] %v7166_v44  ;;  %4629 = vmatmul.mubr.bf16.gmra.mrb[44].mxu1 %v7989_v60  ;;  %v8003_v60 = vld [vmem:[#allocation48_spill] sm:$0xff] }
 0x307   : > { %4769 = vmatmul.mubr.bf16.gmra.mrb[208].mxu0 %v8001_v32  ;;  %4632 = vmatprep.mubr.msk.bf16.mxu1 %vm5524_vm0, %v7895_v35 }
 0x308   : > { %4772 = vmatprep.mubr.msk.bf16.mxu0 %vm5524_vm0, %v7895_v35 }
 0x309   : > { %v2016_v58 = vpop.f32.mrb[196].mxu1 }
 0x30a   : > { %v7175_v54 = vadd.f32 %v2016_v58, %v6859_v15  ;;  %v2018_v42 = vpop.f32.mrb[197].mxu1 }
 0x30b   : > { %v2019_v11 = vpop.f32.mrb[198].mxu1 }
 0x30c   : > { %v7178_v50 = vadd.f32 %v2019_v11, %v6865_v51  ;;  %v2021_v0 = vpop.f32.mrb[199].mxu1 }
 0x30e   : > { %8002 = vst [vmem:[#allocation15_spill] sm:$0xff] %v7178_v50  ;;  %4633 = vmatmul.mubr.bf16.gmra.mrb[48].mxu1 %v7990_v36 }
 0x30f   : > { %4773 = vmatmul.mubr.bf16.gmra.mrb[212].mxu0 %v8003_v60  ;;  %4636 = vmatprep.mubr.msk.bf16.mxu1 %vm5524_vm0, %v7895_v35 }
 0x311   : > { %v2024_v43 = vpop.f32.mrb[200].mxu1 }
 0x312   : > { %v7185_v44 = vadd.f32 %v2024_v43, %v6867_v17  ;;  %v7187_v38 = vpop.f32.mrb[108].mxu0  ;;  %v2026_v15 = vpop.f32.mrb[201].mxu1 }
 0x313   : > { %8004 = vst [vmem:[#allocation16_spill] sm:$0xff] %v7187_v38  ;;  %v4670_v58 = vpop.f32.mrb[109].mxu0  ;;  %v2027_v42 = vpop.f32.mrb[202].mxu1 }
 0x314   : > { %v7190_v51 = vadd.f32 %v2027_v42, %v6873_v31  ;;  %v7192_v11 = vpop.f32.mrb[110].mxu0  ;;  %v2029_v36 = vpop.f32.mrb[203].mxu1 }
 0x315   : > { %8006 = vst [vmem:[#allocation18_spill] sm:$0xff] %v7192_v11  ;;  %v4671_v0 = vpop.f32.mrb[111].mxu0 }
 0x316   : > { %8005 = vst [vmem:[#allocation17_spill] sm:$0xff] %v7190_v51  ;;  %4637 = vmatmul.mubr.bf16.gmra.mrb[52].mxu1 %v7993_v1 }
 0x317   : > { %4640 = vmatprep.mubr.msk.bf16.mxu1 %vm5524_vm0, %v7895_v35 }
 0x319   : > { %v2032_v50 = vpop.f32.mrb[204].mxu1 }
 0x31a   : > { %v7198_v17 = vadd.f32 %v2032_v50, %v6875_v20  ;;  %v7200_v43 = vpop.f32.mrb[112].mxu0  ;;  %v2034_v15 = vpop.f32.mrb[205].mxu1 }
 0x31b   : > { %8008 = vst [vmem:[#allocation50_spill] sm:$0xff] %v7200_v43  ;;  %v4674_v58 = vpop.f32.mrb[113].mxu0  ;;  %v2035_v38 = vpop.f32.mrb[206].mxu1 }
 0x31c   : > { %8007 = vst [vmem:[#allocation19_spill] sm:$0xff] %v7198_v17  ;;  %v7203_v31 = vadd.f32 %v2035_v38, %v6882_v30  ;;  %v2791_v42 = vpop.f32.mrb[114].mxu0  ;;  %v2037_v36 = vpop.f32.mrb[207].mxu1 }
 0x31d   : > { %v4675_v0 = vpop.f32.mrb[115].mxu0 }
 0x31e   : > { %8009 = vst [vmem:[#allocation20_spill] sm:$0xff] %v7203_v31  ;;  %4641 = vmatmul.mubr.bf16.gmra.mrb[56].mxu1 %v7996_v2  ;;  %v7225_v31 = vld [vmem:[#allocation8] ss:$0 sm:$0xff] }
 0x31f   : > { %4644 = vmatprep.mubr.msk.bf16.mxu1 %vm5524_vm0, %v7895_v35 }
 0x321   : > { %v2040_v1 = vpop.f32.mrb[208].mxu1 }
 0x322   : > { %v7209_v20 = vadd.f32 %v2040_v1, %v6884_v57  ;;  %v2796_v50 = vpop.f32.mrb[116].mxu0  ;;  %v2042_v43 = vpop.f32.mrb[209].mxu1 }
 0x323   : > { %v4678_v15 = vpop.f32.mrb[117].mxu0  ;;  %v2043_v58 = vpop.f32.mrb[210].mxu1 }
 0x324   : > { %8010 = vst [vmem:[#allocation21_spill] sm:$0xff] %v7209_v20  ;;  %v7212_v11 = vadd.f32 %v2043_v58, %v6891_v52  ;;  %v2799_v30 = vpop.f32.mrb[118].mxu0  ;;  %v2045_v38 = vpop.f32.mrb[211].mxu1 }
 0x325   : > { %v4679_v36 = vpop.f32.mrb[119].mxu0 }
 0x326   : > { %8011 = vst [vmem:[#allocation22_spill] sm:$0xff] %v7212_v11  ;;  %4645 = vmatmul.mubr.bf16.gmra.mrb[60].mxu1 %v8001_v32 }
 0x327   : > { %4648 = vmatprep.mubr.msk.bf16.mxu1 %vm5524_vm0, %v7895_v35 }
 0x329   : > { %v2048_v2 = vpop.f32.mrb[212].mxu1 }
 0x32a   : > { %v7218_v0 = vadd.f32 %v2048_v2, %v6893_v7  ;;  %v2804_v57 = vpop.f32.mrb[120].mxu0  ;;  %v2050_v1 = vpop.f32.mrb[213].mxu1 }
 0x32b   : > { %v4682_v43 = vpop.f32.mrb[121].mxu0  ;;  %v2051_v15 = vpop.f32.mrb[214].mxu1 }
 0x32c   : > { %8012 = vst [vmem:[#allocation23_spill] sm:$0xff] %v7218_v0  ;;  %v7221_v20 = vadd.f32 %v2051_v15, %v6900_v19  ;;  %v2807_v52 = vpop.f32.mrb[122].mxu0  ;;  %v2053_v58 = vpop.f32.mrb[215].mxu1 }
 0x32d   : > { %v4683_v38 = vpop.f32.mrb[123].mxu0 }
 0x32e   : > { %8013 = vst [vmem:[#allocation24_spill] sm:$0xff] %v7221_v20  ;;  %4649 = vmatmul.mubr.bf16.gmra.mrb[64].mxu1 %v8003_v60 }
 0x331   : > { %v2089_v32 = vpop.f32.mrb[216].mxu1 }
 0x332   : > { %v2090_v36 = vadd.f32 %v2089_v32, %v6913_v33  ;;  %v2812_v35 = vpop.f32.mrb[124].mxu0  ;;  %v4546_v11 = vpop.f32.mrb[217].mxu1 }
 0x333   : > { %v4686_v7 = vpop.f32.mrb[125].mxu0  ;;  %v2092_v2 = vpop.f32.mrb[218].mxu1 }
 0x334   : > { %v2995_v1 = vadd.f32 %v2791_v42, %v2090_v36  ;;  %v2093_v43 = vadd.f32 %v2092_v2, %v6915_v5  ;;  %v2815_v0 = vpop.f32.mrb[126].mxu0  ;;  %v4547_v19 = vpop.f32.mrb[219].mxu1 }
 0x335   : > { %v4687_v15 = vpop.f32.mrb[127].mxu0 }
 0x336   : > { %v7229_v58 = vadd.f32 %v7225_v31, %v2995_v1  ;;  %v2996_v38 = vadd.f32 %v2796_v50, %v2093_v43 }
 0x338   : > { %v3973_v60 = vmul.f32 -1.442695, %v7229_v58  ;;  %v7233_v33 = vadd.f32 %v7225_v31, %v2996_v38 }
 0x339   : > { %v2097_v11 = vpop.f32.mrb[220].mxu1 }
 0x33a   : > { %5141 = vpow2.f32 %v3973_v60  ;;  %v3974_v32 = vmul.f32 -1.442695, %v7233_v33  ;;  %v2098_v42 = vadd.f32 %v2097_v11, %v6923_v39  ;;  %v2820_v36 = vpop.f32.mrb[128].mxu0  ;;  %v4550_v5 = vpop.f32.mrb[221].mxu1 }
 0x33b   : > { %v4690_v7 = vpop.f32.mrb[129].mxu0  ;;  %v2100_v2 = vpop.f32.mrb[222].mxu1 }
 0x33c   : > { %5143 = vpow2.f32 %v3974_v32  ;;  %v2997_v19 = vadd.f32 %v2799_v30, %v2098_v42  ;;  %v2101_v1 = vadd.f32 %v2100_v2, %v6926_v24  ;;  %v7238_v50 = vpop.f32.mrb[130].mxu0  ;;  %v4551_v43 = vpop.f32.mrb[223].mxu1 }
 0x33d   : > { %v4691_v15 = vpop.f32.mrb[131].mxu0 }
 0x33e   : > { %v7241_v38 = vadd.f32 %v7225_v31, %v2997_v19  ;;  %v2998_v60 = vadd.f32 %v2804_v57, %v2101_v1 }
 0x340   : > { %v3975_v20 = vmul.f32 -1.442695, %v7241_v38  ;;  %v7245_v39 = vadd.f32 %v7225_v31, %v2998_v60 }
 0x341   : > { %v2105_v11 = vpop.f32.mrb[224].mxu1 }
 0x342   : > { %5145 = vpow2.f32 %v3975_v20  ;;  %v3976_v32 = vmul.f32 -1.442695, %v7245_v39  ;;  %v2106_v30 = vadd.f32 %v2105_v11, %v6935_v27  ;;  %v7249_v24 = vpop.f32.mrb[132].mxu0  ;;  %v4554_v42 = vpop.f32.mrb[225].mxu1 }
 0x343   : > { %v4694_v5 = vpop.f32.mrb[133].mxu0  ;;  %v2108_v7 = vpop.f32.mrb[226].mxu1 }
 0x344   : > { %v5142_v2 = vpop.eup %5141  ;;  %5147 = vpow2.f32 %v3976_v32  ;;  %v2999_v19 = vadd.f32 %v2807_v52, %v2106_v30  ;;  %v2109_v57 = vadd.f32 %v2108_v7, %v6938_v16  ;;  %v7252_v1 = vpop.f32.mrb[134].mxu0 }
 0x345   : > { %v4555_v43 = vpop.f32.mrb[227].mxu1  ;;  %v3272_v15 = vadd.f32 1.0, %v5142_v2  ;;  %v4695_v60 = vpop.f32.mrb[135].mxu0 }
 0x346   : > { %v5144_v20 = vpop.eup %5143  ;;  %v7255_v17 = vadd.f32 %v7225_v31, %v2999_v19  ;;  %v3000_v27 = vadd.f32 %v2812_v35, %v2109_v57 }
 0x347   : > { %5149 = vrcp.f32 %v3272_v15  ;;  %v3273_v11 = vadd.f32 1.0, %v5144_v20 }
 0x348   : > { %v3977_v42 = vmul.f32 -1.442695, %v7255_v17  ;;  %v7259_v5 = vadd.f32 %v7225_v31, %v3000_v27 }
 0x349   : > { %5151 = vrcp.f32 %v3273_v11  ;;  %v2113_v52 = vpop.f32.mrb[228].mxu1 }
 0x34a   : > { %5153 = vpow2.f32 %v3977_v42  ;;  %v3978_v16 = vmul.f32 -1.442695, %v7259_v5  ;;  %v2114_v32 = vadd.f32 %v2113_v52, %v6947_v55  ;;  %v7263_v30 = vpop.f32.mrb[136].mxu0  ;;  %v4558_v7 = vpop.f32.mrb[229].mxu1 }
 0x34b   : > { %v4698_v2 = vpop.f32.mrb[137].mxu0  ;;  %v2116_v19 = vpop.f32.mrb[230].mxu1 }
 0x34c   : > { %v5146_v35 = vpop.eup %5145  ;;  %5155 = vpow2.f32 %v3978_v16  ;;  %v3001_v57 = vadd.f32 %v2815_v0, %v2114_v32  ;;  %v2117_v43 = vadd.f32 %v2116_v19, %v6950_v61  ;;  %v7266_v15 = vpop.f32.mrb[138].mxu0 }
 0x34d   : > { %v4559_v60 = vpop.f32.mrb[231].mxu1  ;;  %v3274_v20 = vadd.f32 1.0, %v5146_v35  ;;  %v4699_v27 = vpop.f32.mrb[139].mxu0 }
 0x34e   : > { %v5148_v11 = vpop.eup %5147  ;;  %v7269_v42 = vadd.f32 %v7225_v31, %v3001_v57  ;;  %v3002_v55 = vadd.f32 %v2820_v36, %v2117_v43 }
 0x34f   : > { %5157 = vrcp.f32 %v3274_v20  ;;  %v3275_v52 = vadd.f32 1.0, %v5148_v11 }
 0x350   : > { %v3979_v7 = vmul.f32 -1.442695, %v7269_v42  ;;  %v7273_v2 = vadd.f32 %v7225_v31, %v3002_v55 }
 0x351   : > { %v5150_v0 = vpop.eup %5149  ;;  %5159 = vrcp.f32 %v3275_v52  ;;  %v2121_v61 = vpop.f32.mrb[232].mxu1 }
 0x352   : > { %5161 = vpow2.f32 %v3979_v7  ;;  %v3980_v16 = vmul.f32 -1.442695, %v7273_v2  ;;  %v2122_v32 = vadd.f32 %v2121_v61, %v6959_v56  ;;  %v7277_v19 = vpop.f32.mrb[140].mxu0  ;;  %v4562_v35 = vpop.f32.mrb[233].mxu1  ;;  %v3434_v36 = vmul.f32 %v5150_v0, %v7229_v58 }
 0x353   : > { %v5152_v57 = vpop.eup %5151  ;;  %v4702_v43 = vpop.f32.mrb[141].mxu0 }
 0x354   : > { %v2124_v60 = vpop.f32.mrb[234].mxu1  ;;  %v5154_v20 = vpop.eup %5153  ;;  %v3435_v27 = vmul.f32 %v5152_v57, %v7233_v33  ;;  %5163 = vpow2.f32 %v3980_v16  ;;  %v3003_v11 = vadd.f32 %v7238_v50, %v2122_v32 }
 0x355   : > { %v2125_v55 = vadd.f32 %v2124_v60, %v6962_v53  ;;  %v7283_v52 = vpop.f32.mrb[142].mxu0  ;;  %v4563_v56 = vpop.f32.mrb[235].mxu1  ;;  %v3276_v7 = vadd.f32 1.0, %v5154_v20 }
 0x356   : > { %v4703_v61 = vpop.f32.mrb[143].mxu0  ;;  %v5156_v35 = vpop.eup %5155  ;;  %v4141_v51 = vpack.c.bf16 %v3435_v27, %v3434_v36  ;;  %v7286_v58 = vadd.f32 %v7225_v31, %v3003_v11 }
 0x357   : > { %v3004_v0 = vadd.f32 %v7249_v24, %v2125_v55  ;;  %5165 = vrcp.f32 %v3276_v7  ;;  %v3277_v43 = vadd.f32 1.0, %v5156_v35 }
 0x358   : > { %4142 = vst [vmem:[%s7291_s18] sm:$0xff] %v4141_v51   ;;  %v3981_v53 = vmul.f32 -1.442695, %v7286_v58 }
 0x359   : > { %v7296_v33 = vadd.f32 %v7225_v31, %v3004_v0  ;;  %v5158_v50 = vpop.eup %5157  ;;  %5167 = vrcp.f32 %v3277_v43  ;;  %v2129_v16 = vpop.f32.mrb[236].mxu1 }
 0x35a   : > { %5169 = vpow2.f32 %v3981_v53  ;;  %v2130_v24 = vadd.f32 %v2129_v16, %v6971_v26  ;;  %v7300_v57 = vpop.f32.mrb[144].mxu0  ;;  %v4566_v36 = vpop.f32.mrb[237].mxu1  ;;  %v3436_v20 = vmul.f32 %v5158_v50, %v7241_v38 }
 0x35b   : > { %v3982_v32 = vmul.f32 -1.442695, %v7296_v33  ;;  %v5160_v60 = vpop.eup %5159  ;;  %v4706_v51 = vpop.f32.mrb[145].mxu0 }
 0x35c   : > { %v2132_v27 = vpop.f32.mrb[238].mxu1  ;;  %v5162_v11 = vpop.eup %5161  ;;  %v3437_v55 = vmul.f32 %v5160_v60, %v7245_v39  ;;  %v3005_v56 = vadd.f32 %v7252_v1, %v2130_v24 }
 0x35d   : > { %5171 = vpow2.f32 %v3982_v32  ;;  %v2133_v7 = vadd.f32 %v2132_v27, %v6974_v23  ;;  %v7306_v61 = vpop.f32.mrb[146].mxu0  ;;  %v4567_v26 = vpop.f32.mrb[239].mxu1  ;;  %v3278_v35 = vadd.f32 1.0, %v5162_v11 }
 0x35e   : > { %v4707_v0 = vpop.f32.mrb[147].mxu0  ;;  %v5164_v43 = vpop.eup %5163  ;;  %v4146_v53 = vpack.c.bf16 %v3437_v55, %v3436_v20  ;;  %v7309_v38 = vadd.f32 %v7225_v31, %v3005_v56 }
 0x35f   : > { %v3006_v50 = vadd.f32 %v7263_v30, %v2133_v7  ;;  %5173 = vrcp.f32 %v3278_v35  ;;  %v3279_v16 = vadd.f32 1.0, %v5164_v43 }
 0x360   : > { %4273 = vst [vmem:[%s7291_s18 + $0x8] sm:$0xff] %v4146_v53   ;;  %v3983_v39 = vmul.f32 -1.442695, %v7309_v38 }
 0x361   : > { %v7315_v1 = vadd.f32 %v7225_v31, %v3006_v50  ;;  %v5166_v23 = vpop.eup %5165  ;;  %5175 = vrcp.f32 %v3279_v16  ;;  %v2137_v32 = vpop.f32.mrb[240].mxu1 }
 0x362   : > { %5177 = vpow2.f32 %v3983_v39  ;;  %v2138_v36 = vadd.f32 %v2137_v32, %v6983_v22  ;;  %v7319_v60 = vpop.f32.mrb[148].mxu0  ;;  %v4570_v20 = vpop.f32.mrb[241].mxu1  ;;  %v3438_v51 = vmul.f32 %v5166_v23, %v7255_v17 }
 0x363   : > { %v3984_v24 = vmul.f32 -1.442695, %v7315_v1  ;;  %v5168_v30 = vpop.eup %5167  ;;  %v4710_v27 = vpop.f32.mrb[149].mxu0 }
 0x364   : > { %v2140_v11 = vpop.f32.mrb[242].mxu1  ;;  %v5170_v55 = vpop.eup %5169  ;;  %v3439_v56 = vmul.f32 %v5168_v30, %v7259_v5  ;;  %v3007_v7 = vadd.f32 %v7266_v15, %v2138_v36 }
 0x365   : > { %5179 = vpow2.f32 %v3984_v24  ;;  %v2141_v26 = vadd.f32 %v2140_v11, %v6986_v34  ;;  %v7325_v35 = vpop.f32.mrb[150].mxu0  ;;  %v4571_v22 = vpop.f32.mrb[243].mxu1  ;;  %v3280_v0 = vadd.f32 1.0, %v5170_v55 }
 0x366   : > { %v4711_v43 = vpop.f32.mrb[151].mxu0  ;;  %v4151_v50 = vpack.c.bf16 %v3439_v56, %v3438_v51  ;;  %v7328_v17 = vadd.f32 %v7225_v31, %v3007_v7 }
 0x367   : > { %v5172_v53 = vpop.eup %5171  ;;  %v3008_v16 = vadd.f32 %v7277_v19, %v2141_v26  ;;  %5181 = vrcp.f32 %v3280_v0 }
 0x368   : > { %v3281_v39 = vadd.f32 1.0, %v5172_v53  ;;  %4274 = vst [vmem:[%s7291_s18 + $0x10] sm:$0xff] %v4151_v50   ;;  %v3985_v5 = vmul.f32 -1.442695, %v7328_v17 }
 0x369   : > { %v7334_v15 = vadd.f32 %v7225_v31, %v3008_v16  ;;  %v5174_v34 = vpop.eup %5173  ;;  %v2145_v23 = vpop.f32.mrb[244].mxu1 }
 0x36a   : > { %5183 = vrcp.f32 %v3281_v39  ;;  %v2146_v24 = vadd.f32 %v2145_v23, %v6995_v28  ;;  %v7338_v36 = vpop.f32.mrb[152].mxu0  ;;  %v4574_v20 = vpop.f32.mrb[245].mxu1  ;;  %v3440_v30 = vmul.f32 %v5174_v34, %v7269_v42 }
 0x36b   : > { %5185 = vpow2.f32 %v3985_v5  ;;  %v3986_v32 = vmul.f32 -1.442695, %v7334_v15  ;;  %v5176_v19 = vpop.eup %5175  ;;  %v4714_v51 = vpop.f32.mrb[153].mxu0 }
 0x36c   : > { %v2148_v27 = vpop.f32.mrb[246].mxu1  ;;  %v5178_v11 = vpop.eup %5177  ;;  %v3441_v55 = vmul.f32 %v5176_v19, %v7273_v2  ;;  %v3009_v56 = vadd.f32 %v7283_v52, %v2146_v24 }
 0x36d   : > { %5187 = vpow2.f32 %v3986_v32  ;;  %v2149_v7 = vadd.f32 %v2148_v27, %v6998_v21  ;;  %v7344_v26 = vpop.f32.mrb[154].mxu0  ;;  %v4575_v28 = vpop.f32.mrb[247].mxu1  ;;  %v3282_v22 = vadd.f32 1.0, %v5178_v11 }
 0x36e   : > { %v4715_v0 = vpop.f32.mrb[155].mxu0  ;;  %v4156_v53 = vpack.c.bf16 %v3441_v55, %v3440_v30  ;;  %v7347_v42 = vadd.f32 %v7225_v31, %v3009_v56 }
 0x36f   : > { %v5180_v43 = vpop.eup %5179  ;;  %v3010_v50 = vadd.f32 %v7300_v57, %v2149_v7  ;;  %5189 = vrcp.f32 %v3282_v22 }
 0x370   : > { %v3283_v16 = vadd.f32 1.0, %v5180_v43  ;;  %4275 = vst [vmem:[%s7291_s18 + $0x18] sm:$0xff] %v4156_v53   ;;  %v3987_v2 = vmul.f32 -1.442695, %v7347_v42 }
 0x371   : > { %v7353_v52 = vadd.f32 %v7225_v31, %v3010_v50  ;;  %v5182_v21 = vpop.eup %5181  ;;  %v2153_v39 = vpop.f32.mrb[248].mxu1 }
 0x372   : > { %5191 = vrcp.f32 %v3283_v16  ;;  %v2154_v34 = vadd.f32 %v2153_v39, %v7007_v48  ;;  %v7357_v23 = vpop.f32.mrb[156].mxu0  ;;  %v4578_v32 = vpop.f32.mrb[249].mxu1  ;;  %v3442_v24 = vmul.f32 %v5182_v21, %v7286_v58 }
 0x373   : > { %5193 = vpow2.f32 %v3987_v2  ;;  %v3988_v5 = vmul.f32 -1.442695, %v7353_v52  ;;  %v4718_v20 = vpop.f32.mrb[157].mxu0  ;;  %v2156_v19 = vpop.f32.mrb[250].mxu1 }
 0x374   : > { %v5184_v57 = vpop.eup %5183  ;;  %v3011_v27 = vadd.f32 %v7306_v61, %v2154_v34  ;;  %v2157_v11 = vadd.f32 %v2156_v19, %v7010_v8  ;;  %v7363_v55 = vpop.f32.mrb[158].mxu0 }
 0x375   : > { %v5186_v30 = vpop.eup %5185  ;;  %v3443_v51 = vmul.f32 %v5184_v57, %v7296_v33  ;;  %5195 = vpow2.f32 %v3988_v5  ;;  %v4579_v48 = vpop.f32.mrb[251].mxu1 }
 0x376   : > { %v3284_v56 = vadd.f32 1.0, %v5186_v30  ;;  %v4719_v7 = vpop.f32.mrb[159].mxu0  ;;  %v7366_v58 = vadd.f32 %v7225_v31, %v3011_v27  ;;  %v3012_v0 = vadd.f32 %v7319_v60, %v2157_v11 }
 0x377   : > { %v5188_v28 = vpop.eup %5187  ;;  %v4161_v22 = vpack.c.bf16 %v3443_v51, %v3442_v24 }
 0x378   : > { %5197 = vrcp.f32 %v3284_v56  ;;  %v3285_v43 = vadd.f32 1.0, %v5188_v28  ;;  %v3989_v33 = vmul.f32 -1.442695, %v7366_v58  ;;  %v7372_v61 = vadd.f32 %v7225_v31, %v3012_v0 }
 0x379   : > { %4276 = vst [vmem:[%s7291_s18 + $0x20] sm:$0xff] %v4161_v22   ;;  %v5190_v8 = vpop.eup %5189  ;;  %v2161_v53 = vpop.f32.mrb[252].mxu1 }
 0x37a   : > { %5199 = vrcp.f32 %v3285_v43  ;;  %v3990_v50 = vmul.f32 -1.442695, %v7372_v61  ;;  %v2162_v16 = vadd.f32 %v2161_v53, %v7019_v25  ;;  %v7376_v2 = vpop.f32.mrb[160].mxu0  ;;  %v4582_v21 = vpop.f32.mrb[253].mxu1  ;;  %v3444_v39 = vmul.f32 %v5190_v8, %v7309_v38 }
 0x37b   : > { %5201 = vpow2.f32 %v3989_v33  ;;  %v4722_v5 = vpop.f32.mrb[161].mxu0  ;;  %v2164_v34 = vpop.f32.mrb[254].mxu1 }
 0x37c   : > { %v5192_v60 = vpop.eup %5191  ;;  %5203 = vpow2.f32 %v3990_v50  ;;  %v3013_v24 = vadd.f32 %v7325_v35, %v2162_v16  ;;  %v2165_v20 = vadd.f32 %v2164_v34, %v7022_v4  ;;  %v7382_v19 = vpop.f32.mrb[162].mxu0 }
 0x37d   : > { %v5194_v32 = vpop.eup %5193  ;;  %v3445_v57 = vmul.f32 %v5192_v60, %v7315_v1  ;;  %v4583_v25 = vpop.f32.mrb[255].mxu1 }
 0x37e   : > { %v3286_v30 = vadd.f32 1.0, %v5194_v32  ;;  %v4723_v51 = vpop.f32.mrb[163].mxu0  ;;  %v7385_v38 = vadd.f32 %v7225_v31, %v3013_v24  ;;  %v3014_v48 = vadd.f32 %v7338_v36, %v2165_v20 }
 0x37f   : > { %v5196_v27 = vpop.eup %5195  ;;  %v4166_v11 = vpack.c.bf16 %v3445_v57, %v3444_v39 }
 0x380   : > { %5205 = vrcp.f32 %v3286_v30  ;;  %v3287_v56 = vadd.f32 1.0, %v5196_v27  ;;  %v3991_v1 = vmul.f32 -1.442695, %v7385_v38  ;;  %v7391_v35 = vadd.f32 %v7225_v31, %v3014_v48 }
 0x381   : > { %4277 = vst [vmem:[%s7291_s18 + $0x28] sm:$0xff] %v4166_v11   ;;  %v2169_v7 = vpop.f32.mrb[0].mxu1 }
 0x382   : > { %v5198_v4 = vpop.eup %5197  ;;  %5207 = vrcp.f32 %v3287_v56  ;;  %v3992_v28 = vmul.f32 -1.442695, %v7391_v35  ;;  %v2170_v22 = vadd.f32 %v2169_v7, %v7031_v59  ;;  %v7395_v0 = vpop.f32.mrb[164].mxu0 }
 0x383   : > { %5209 = vpow2.f32 %v3991_v1  ;;  %v4586_v43 = vpop.f32.mrb[1].mxu1  ;;  %v3446_v33 = vmul.f32 %v5198_v4, %v7328_v17  ;;  %v4726_v8 = vpop.f32.mrb[165].mxu0 }
 0x384   : > { %v5200_v36 = vpop.eup %5199  ;;  %v2172_v53 = vpop.f32.mrb[2].mxu1  ;;  %5211 = vpow2.f32 %v3992_v28  ;;  %v3015_v21 = vadd.f32 %v7344_v26, %v2170_v22 }
 0x385   : > { %v5202_v50 = vpop.eup %5201  ;;  %v3447_v16 = vmul.f32 %v5200_v36, %v7334_v15  ;;  %v2173_v60 = vadd.f32 %v2172_v53, %v7034_v10  ;;  %v7401_v39 = vpop.f32.mrb[166].mxu0 }
 0x386   : > { %v4587_v59 = vpop.f32.mrb[3].mxu1  ;;  %v3288_v5 = vadd.f32 1.0, %v5202_v50  ;;  %v4727_v34 = vpop.f32.mrb[167].mxu0  ;;  %v7404_v17 = vadd.f32 %v7225_v31, %v3015_v21 }
 0x387   : > { %v5204_v32 = vpop.eup %5203  ;;  %v4171_v57 = vpack.c.bf16 %v3447_v16, %v3446_v33  ;;  %v3016_v24 = vadd.f32 %v7357_v23, %v2173_v60 }
 0x388   : > { %5213 = vrcp.f32 %v3288_v5  ;;  %v3289_v20 = vadd.f32 1.0, %v5204_v32  ;;  %v3993_v15 = vmul.f32 -1.442695, %v7404_v17 }
 0x389   : > { %4278 = vst [vmem:[%s7291_s18 + $0x30] sm:$0xff] %v4171_v57   ;;  %v7410_v26 = vadd.f32 %v7225_v31, %v3016_v24  ;;  %v2177_v25 = vpop.f32.mrb[4].mxu1 }
 0x38a   : > { %v5206_v10 = vpop.eup %5205  ;;  %5215 = vrcp.f32 %v3289_v20  ;;  %v2178_v51 = vadd.f32 %v2177_v25, %v7043_v47  ;;  %v7414_v27 = vpop.f32.mrb[168].mxu0 }
 0x38b   : > { %5217 = vpow2.f32 %v3993_v15  ;;  %v3994_v30 = vmul.f32 -1.442695, %v7410_v26  ;;  %v4590_v11 = vpop.f32.mrb[5].mxu1  ;;  %v3448_v48 = vmul.f32 %v5206_v10, %v7347_v42  ;;  %v4730_v56 = vpop.f32.mrb[169].mxu0 }
 0x38c   : > { %v5208_v23 = vpop.eup %5207  ;;  %v2180_v1 = vpop.f32.mrb[6].mxu1  ;;  %v3017_v28 = vadd.f32 %v7363_v55, %v2178_v51 }
 0x38d   : > { %v5210_v4 = vpop.eup %5209  ;;  %v3449_v7 = vmul.f32 %v5208_v23, %v7353_v52  ;;  %5219 = vpow2.f32 %v3994_v30  ;;  %v2181_v22 = vadd.f32 %v2180_v1, %v7046_v29  ;;  %v7420_v43 = vpop.f32.mrb[170].mxu0 }
 0x38e   : > { %v4591_v47 = vpop.f32.mrb[7].mxu1  ;;  %v3290_v36 = vadd.f32 1.0, %v5210_v4  ;;  %v4731_v33 = vpop.f32.mrb[171].mxu0  ;;  %v7423_v42 = vadd.f32 %v7225_v31, %v3017_v28 }
 0x38f   : > { %v5212_v8 = vpop.eup %5211  ;;  %v4176_v53 = vpack.c.bf16 %v3449_v7, %v3448_v48  ;;  %v3018_v50 = vadd.f32 %v7376_v2, %v2181_v22 }
 0x390   : > { %5221 = vrcp.f32 %v3290_v36  ;;  %v3291_v16 = vadd.f32 1.0, %v5212_v8  ;;  %v3995_v52 = vmul.f32 -1.442695, %v7423_v42 }
 0x391   : > { %4279 = vst [vmem:[%s7291_s18 + $0x38] sm:$0xff] %v4176_v53   ;;  %v7429_v55 = vadd.f32 %v7225_v31, %v3018_v50  ;;  %v2185_v21 = vpop.f32.mrb[8].mxu1 }
 0x392   : > { %v5214_v29 = vpop.eup %5213  ;;  %5223 = vrcp.f32 %v3291_v16  ;;  %v2186_v59 = vadd.f32 %v2185_v21, %v7055_v62  ;;  %v7433_v5 = vpop.f32.mrb[172].mxu0 }
 0x393   : > { %5225 = vpow2.f32 %v3995_v52  ;;  %v3996_v60 = vmul.f32 -1.442695, %v7429_v55  ;;  %v4594_v34 = vpop.f32.mrb[9].mxu1  ;;  %v3450_v32 = vmul.f32 %v5214_v29, %v7366_v58  ;;  %v4734_v57 = vpop.f32.mrb[173].mxu0 }
 0x394   : > { %v5216_v2 = vpop.eup %5215  ;;  %v2188_v24 = vpop.f32.mrb[10].mxu1  ;;  %v3019_v10 = vadd.f32 %v7382_v19, %v2186_v59 }
 0x395   : > { %v5218_v20 = vpop.eup %5217  ;;  %v3451_v15 = vmul.f32 %v5216_v2, %v7372_v61  ;;  %5227 = vpow2.f32 %v3996_v60  ;;  %v2189_v25 = vadd.f32 %v2188_v24, %v7058_v37  ;;  %v7439_v30 = vpop.f32.mrb[174].mxu0 }
 0x396   : > { %v4595_v62 = vpop.f32.mrb[11].mxu1  ;;  %v3292_v51 = vadd.f32 1.0, %v5218_v20  ;;  %v4735_v11 = vpop.f32.mrb[175].mxu0  ;;  %v7442_v58 = vadd.f32 %v7225_v31, %v3019_v10 }
 0x397   : > { %v5220_v23 = vpop.eup %5219  ;;  %v4181_v48 = vpack.c.bf16 %v3451_v15, %v3450_v32  ;;  %v3020_v56 = vadd.f32 %v7395_v0, %v2189_v25 }
 0x398   : > { %5229 = vrcp.f32 %v3292_v51  ;;  %v3293_v1 = vadd.f32 1.0, %v5220_v23  ;;  %v3997_v61 = vmul.f32 -1.442695, %v7442_v58 }
 0x399   : > { %4280 = vst [vmem:[%s7291_s18 + $0x40] sm:$0xff] %v4181_v48   ;;  %v7448_v19 = vadd.f32 %v7225_v31, %v3020_v56  ;;  %v2193_v4 = vpop.f32.mrb[12].mxu1 }
 0x39a   : > { %v5222_v37 = vpop.eup %5221  ;;  %5231 = vrcp.f32 %v3293_v1  ;;  %v2194_v28 = vadd.f32 %v2193_v4, %v7067_v12  ;;  %v7452_v22 = vpop.f32.mrb[176].mxu0 }
 0x39b   : > { %5233 = vpow2.f32 %v3997_v61  ;;  %v3998_v7 = vmul.f32 -1.442695, %v7448_v19  ;;  %v4598_v47 = vpop.f32.mrb[13].mxu1  ;;  %v3452_v36 = vmul.f32 %v5222_v37, %v7385_v38  ;;  %v4738_v33 = vpop.f32.mrb[177].mxu0 }
 0x39c   : > { %v5224_v0 = vpop.eup %5223  ;;  %v2196_v8 = vpop.f32.mrb[14].mxu1  ;;  %v3021_v16 = vadd.f32 %v7401_v39, %v2194_v28 }
 0x39d   : > { %v5226_v53 = vpop.eup %5225  ;;  %v3453_v50 = vmul.f32 %v5224_v0, %v7391_v35  ;;  %5235 = vpow2.f32 %v3998_v7  ;;  %v2197_v52 = vadd.f32 %v2196_v8, %v7070_v9  ;;  %v7458_v29 = vpop.f32.mrb[178].mxu0 }
 0x39e   : > { %v4599_v12 = vpop.f32.mrb[15].mxu1  ;;  %v3294_v21 = vadd.f32 1.0, %v5226_v53  ;;  %v4739_v60 = vpop.f32.mrb[179].mxu0  ;;  %v7461_v38 = vadd.f32 %v7225_v31, %v3021_v16 }
 0x39f   : > { %v5228_v59 = vpop.eup %5227  ;;  %v4186_v34 = vpack.c.bf16 %v3453_v50, %v3452_v36  ;;  %v3022_v2 = vadd.f32 %v7414_v27, %v2197_v52 }
 0x3a0   : > { %5237 = vrcp.f32 %v3294_v21  ;;  %v3295_v32 = vadd.f32 1.0, %v5228_v59  ;;  %v3999_v35 = vmul.f32 -1.442695, %v7461_v38 }
 0x3a1   : > { %4281 = vst [vmem:[%s7291_s18 + $0x48] sm:$0xff] %v4186_v34   ;;  %v7467_v39 = vadd.f32 %v7225_v31, %v3022_v2  ;;  %v2201_v57 = vpop.f32.mrb[16].mxu1 }
 0x3a2   : > { %v5230_v9 = vpop.eup %5229  ;;  %5239 = vrcp.f32 %v3295_v32  ;;  %v2202_v20 = vadd.f32 %v2201_v57, %v7079_v45  ;;  %v7471_v15 = vpop.f32.mrb[180].mxu0 }
 0x3a3   : > { %5241 = vpow2.f32 %v3999_v35  ;;  %v4000_v24 = vmul.f32 -1.442695, %v7467_v39  ;;  %v4602_v10 = vpop.f32.mrb[17].mxu1  ;;  %v3454_v25 = vmul.f32 %v5230_v9, %v7404_v17  ;;  %v4742_v62 = vpop.f32.mrb[181].mxu0 }
 0x3a4   : > { %v5232_v27 = vpop.eup %5231  ;;  %v2204_v51 = vpop.f32.mrb[18].mxu1  ;;  %v3023_v48 = vadd.f32 %v7420_v43, %v2202_v20 }
 0x3a5   : > { %v5234_v11 = vpop.eup %5233  ;;  %v3455_v23 = vmul.f32 %v5232_v27, %v7410_v26  ;;  %5243 = vpow2.f32 %v4000_v24  ;;  %v2205_v56 = vadd.f32 %v2204_v51, %v7082_v46  ;;  %v7477_v1 = vpop.f32.mrb[182].mxu0 }
 0x3a6   : > { %v4603_v45 = vpop.f32.mrb[19].mxu1  ;;  %v3296_v61 = vadd.f32 1.0, %v5234_v11  ;;  %v4743_v37 = vpop.f32.mrb[183].mxu0  ;;  %v7480_v17 = vadd.f32 %v7225_v31, %v3023_v48 }
 0x3a7   : > { %v5236_v4 = vpop.eup %5235  ;;  %v4191_v7 = vpack.c.bf16 %v3455_v23, %v3454_v25  ;;  %v3024_v28 = vadd.f32 %v7433_v5, %v2205_v56 }
 0x3a8   : > { %5245 = vrcp.f32 %v3296_v61  ;;  %v3297_v47 = vadd.f32 1.0, %v5236_v4  ;;  %v4001_v26 = vmul.f32 -1.442695, %v7480_v17 }
 0x3a9   : > { %4282 = vst [vmem:[%s7291_s18 + $0x50] sm:$0xff] %v4191_v7   ;;  %v7486_v43 = vadd.f32 %v7225_v31, %v3024_v28  ;;  %v2209_v0 = vpop.f32.mrb[20].mxu1 }
 0x3aa   : > { %v5238_v46 = vpop.eup %5237  ;;  %5247 = vrcp.f32 %v3297_v47  ;;  %v2210_v33 = vadd.f32 %v2209_v0, %v7091_v49  ;;  %v7490_v8 = vpop.f32.mrb[184].mxu0 }
 0x3ab   : > { %5249 = vpow2.f32 %v4001_v26  ;;  %v4002_v36 = vmul.f32 -1.442695, %v7486_v43  ;;  %v4606_v53 = vpop.f32.mrb[21].mxu1  ;;  %v3456_v50 = vmul.f32 %v5238_v46, %v7423_v42  ;;  %v4746_v16 = vpop.f32.mrb[185].mxu0 }
 0x3ac   : > { %v5240_v5 = vpop.eup %5239  ;;  %v2212_v52 = vpop.f32.mrb[22].mxu1  ;;  %v3025_v60 = vadd.f32 %v7439_v30, %v2210_v33 }
 0x3ad   : > { %v5242_v12 = vpop.eup %5241  ;;  %v3457_v21 = vmul.f32 %v5240_v5, %v7429_v55  ;;  %5251 = vpow2.f32 %v4002_v36  ;;  %v2213_v59 = vadd.f32 %v2212_v52, %v7094_v3  ;;  %v7496_v34 = vpop.f32.mrb[186].mxu0 }
 0x3ae   : > { %v4607_v49 = vpop.f32.mrb[23].mxu1  ;;  %v3298_v2 = vadd.f32 1.0, %v5242_v12  ;;  %v4747_v32 = vpop.f32.mrb[187].mxu0  ;;  %v7499_v42 = vadd.f32 %v7225_v31, %v3025_v60 }
 0x3af   : > { %v5244_v35 = vpop.eup %5243  ;;  %v4196_v9 = vpack.c.bf16 %v3457_v21, %v3456_v50  ;;  %v3026_v57 = vadd.f32 %v7452_v22, %v2213_v59 }
 0x3b0   : > { %5253 = vrcp.f32 %v3298_v2  ;;  %v3299_v24 = vadd.f32 1.0, %v5244_v35  ;;  %v4003_v55 = vmul.f32 -1.442695, %v7499_v42 }
 0x3b1   : > { %4283 = vst [vmem:[%s7291_s18 + $0x58] sm:$0xff] %v4196_v9   ;;  %v7505_v30 = vadd.f32 %v7225_v31, %v3026_v57  ;;  %v2217_v20 = vpop.f32.mrb[24].mxu1 }
 0x3b2   : > { %v5246_v3 = vpop.eup %5245  ;;  %5255 = vrcp.f32 %v3299_v24  ;;  %v2218_v27 = vadd.f32 %v2217_v20, %v7103_v6  ;;  %v7509_v25 = vpop.f32.mrb[188].mxu0 }
 0x3b3   : > { %5257 = vpow2.f32 %v4003_v55  ;;  %v4004_v10 = vmul.f32 -1.442695, %v7505_v30  ;;  %v4610_v62 = vpop.f32.mrb[25].mxu1  ;;  %v3458_v51 = vmul.f32 %v5246_v3, %v7442_v58  ;;  %v4750_v11 = vpop.f32.mrb[189].mxu0 }
 0x3b4   : > { %v5248_v22 = vpop.eup %5247  ;;  %v2220_v23 = vpop.f32.mrb[26].mxu1  ;;  %v3027_v45 = vadd.f32 %v7458_v29, %v2218_v27 }
 0x3b5   : > { %v5250_v48 = vpop.eup %5249  ;;  %v3459_v56 = vmul.f32 %v5248_v22, %v7448_v19  ;;  %5259 = vpow2.f32 %v4004_v10  ;;  %v2221_v61 = vadd.f32 %v2220_v23, %v7106_v41  ;;  %v7515_v37 = vpop.f32.mrb[190].mxu0 }
 0x3b6   : > { %v4611_v6 = vpop.f32.mrb[27].mxu1  ;;  %v3300_v4 = vadd.f32 1.0, %v5250_v48  ;;  %v4751_v7 = vpop.f32.mrb[191].mxu0  ;;  %v7518_v58 = vadd.f32 %v7225_v31, %v3027_v45 }
 0x3b7   : > { %v5252_v28 = vpop.eup %5251  ;;  %v4201_v47 = vpack.c.bf16 %v3459_v56, %v3458_v51  ;;  %v3028_v26 = vadd.f32 %v7471_v15, %v2221_v61  ;;  %v7555_v7 = vld [vmem:[#allocation8] ss:$0 sm:$0xff] }
 0x3b8   : > { %5261 = vrcp.f32 %v3300_v4  ;;  %v3301_v46 = vadd.f32 1.0, %v5252_v28  ;;  %v4005_v19 = vmul.f32 -1.442695, %v7518_v58 }
 0x3b9   : > { %4284 = vst [vmem:[%s7291_s18 + $0x60] sm:$0xff] %v4201_v47   ;;  %v7524_v29 = vadd.f32 %v7225_v31, %v3028_v26  ;;  %v2225_v0 = vpop.f32.mrb[28].mxu1 }
 0x3ba   : > { %v5254_v41 = vpop.eup %5253  ;;  %5263 = vrcp.f32 %v3301_v46  ;;  %v2226_v33 = vadd.f32 %v2225_v0, %v7115_v18  ;;  %v7528_v53 = vpop.f32.mrb[192].mxu0 }
 0x3bb   : > { %5265 = vpow2.f32 %v4005_v19  ;;  %v4006_v36 = vmul.f32 -1.442695, %v7524_v29  ;;  %v4614_v5 = vpop.f32.mrb[29].mxu1  ;;  %v3460_v50 = vmul.f32 %v5254_v41, %v7461_v38  ;;  %v4754_v16 = vpop.f32.mrb[193].mxu0  ;;  %v8014_v19 = vld [vmem:[#allocation40_spill] sm:$0xff] }
 0x3bc   : > { %v5256_v15 = vpop.eup %5255  ;;  %v2228_v52 = vpop.f32.mrb[30].mxu1  ;;  %v3029_v60 = vadd.f32 %v7477_v1, %v2226_v33 }
 0x3bd   : > { %v5258_v12 = vpop.eup %5257  ;;  %v3461_v21 = vmul.f32 %v5256_v15, %v7467_v39  ;;  %5267 = vpow2.f32 %v4006_v36  ;;  %v2229_v59 = vadd.f32 %v2228_v52, %v7118_v63  ;;  %v7534_v49 = vpop.f32.mrb[194].mxu0 }
 0x3be   : > { %v4615_v18 = vpop.f32.mrb[31].mxu1  ;;  %v3302_v2 = vadd.f32 1.0, %v5258_v12  ;;  %v4755_v32 = vpop.f32.mrb[195].mxu0  ;;  %v7537_v38 = vadd.f32 %v7225_v31, %v3029_v60  ;;  %v8015_v12 = vld [vmem:[#allocation49_spill] sm:$0xff] }
 0x3bf   : > { %v5260_v35 = vpop.eup %5259  ;;  %v4206_v9 = vpack.c.bf16 %v3461_v21, %v3460_v50  ;;  %v3030_v57 = vadd.f32 %v7490_v8, %v2229_v59 }
 0x3c0   : > { %5269 = vrcp.f32 %v3302_v2  ;;  %v3303_v24 = vadd.f32 1.0, %v5260_v35  ;;  %v4007_v39 = vmul.f32 -1.442695, %v7537_v38 }
 0x3c1   : > { %4285 = vst [vmem:[%s7291_s18 + $0x68] sm:$0xff] %v4206_v9   ;;  %v7543_v1 = vadd.f32 %v7225_v31, %v3030_v57  ;;  %v2233_v55 = vpop.f32.mrb[32].mxu1 }
 0x3c2   : > { %v5262_v63 = vpop.eup %5261  ;;  %5271 = vrcp.f32 %v3303_v24  ;;  %v2234_v20 = vadd.f32 %v2233_v55, %v7127_v14  ;;  %v7547_v10 = vpop.f32.mrb[196].mxu0  ;;  %v8016_v55 = vld [vmem:[#allocation43_spill] sm:$0xff] }
 0x3c3   : > { %5273 = vpow2.f32 %v4007_v39  ;;  %v4008_v3 = vmul.f32 -1.442695, %v7543_v1  ;;  %v4618_v27 = vpop.f32.mrb[33].mxu1  ;;  %v3462_v62 = vmul.f32 %v5262_v63, %v7480_v17  ;;  %v4758_v22 = vpop.f32.mrb[197].mxu0 }
 0x3c4   : > { %v5264_v8 = vpop.eup %5263  ;;  %v2236_v51 = vpop.f32.mrb[34].mxu1  ;;  %v3031_v23 = vadd.f32 %v7496_v34, %v2234_v20 }
 0x3c5   : > { %v5266_v11 = vpop.eup %5265  ;;  %v3463_v31 = vmul.f32 %v5264_v8, %v7486_v43  ;;  %5275 = vpow2.f32 %v4008_v3  ;;  %v2237_v48 = vadd.f32 %v2236_v51, %v7130_v13  ;;  %v7553_v56 = vpop.f32.mrb[198].mxu0 }
 0x3c6   : > { %v4619_v14 = vpop.f32.mrb[35].mxu1  ;;  %v3304_v45 = vadd.f32 1.0, %v5266_v11  ;;  %v4759_v61 = vpop.f32.mrb[199].mxu0  ;;  %v7558_v17 = vadd.f32 %v7555_v7, %v3031_v23 }
 0x3c7   : > { %v5268_v6 = vpop.eup %5267  ;;  %v4211_v4 = vpack.c.bf16 %v3463_v31, %v3462_v62  ;;  %v3032_v28 = vadd.f32 %v7509_v25, %v2237_v48 }
 0x3c8   : > { %5277 = vrcp.f32 %v3304_v45  ;;  %v3305_v43 = vadd.f32 1.0, %v5268_v6  ;;  %v4009_v34 = vmul.f32 -1.442695, %v7558_v17 }
 0x3c9   : > { %4286 = vst [vmem:[%s7291_s18 + $0x70] sm:$0xff] %v4211_v4   ;;  %v7564_v13 = vadd.f32 %v7555_v7, %v3032_v28  ;;  %v2241_v26 = vpop.f32.mrb[36].mxu1 }
 0x3ca   : > { %v5270_v47 = vpop.eup %5269  ;;  %5279 = vrcp.f32 %v3305_v43  ;;  %v2242_v41 = vadd.f32 %v2241_v26, %v8014_v19  ;;  %v7568_v0 = vpop.f32.mrb[200].mxu0  ;;  %v8017_v26 = vld [vmem:[#allocation13_spill] sm:$0xff] }
 0x3cb   : > { %5281 = vpow2.f32 %v4009_v34  ;;  %v4010_v46 = vmul.f32 -1.442695, %v7564_v13  ;;  %v4622_v36 = vpop.f32.mrb[37].mxu1  ;;  %v3464_v33 = vmul.f32 %v5270_v47, %v7499_v42  ;;  %v4762_v5 = vpop.f32.mrb[201].mxu0 }
 0x3cc   : > { %v5272_v25 = vpop.eup %5271  ;;  %v2244_v15 = vpop.f32.mrb[38].mxu1  ;;  %v3033_v52 = vadd.f32 %v7515_v37, %v2242_v41 }
 0x3cd   : > { %v5274_v50 = vpop.eup %5273  ;;  %v3465_v16 = vmul.f32 %v5272_v25, %v7505_v30  ;;  %5283 = vpow2.f32 %v4010_v46  ;;  %v2245_v21 = vadd.f32 %v2244_v15, %v8015_v12  ;;  %v7574_v60 = vpop.f32.mrb[202].mxu0 }
 0x3ce   : > { %v4623_v59 = vpop.f32.mrb[39].mxu1  ;;  %v3306_v18 = vadd.f32 1.0, %v5274_v50  ;;  %v4763_v2 = vpop.f32.mrb[203].mxu0  ;;  %v7577_v42 = vadd.f32 %v7555_v7, %v3033_v52 }
 0x3cf   : > { %v5276_v32 = vpop.eup %5275  ;;  %v4216_v35 = vpack.c.bf16 %v3465_v16, %v3464_v33  ;;  %v3034_v9 = vadd.f32 %v7528_v53, %v2245_v21  ;;  %v8018_v16 = vld [vmem:[#allocation14_spill] sm:$0xff] }
 0x3d0   : > { %5285 = vrcp.f32 %v3306_v18  ;;  %v3307_v57 = vadd.f32 1.0, %v5276_v32  ;;  %v4011_v30 = vmul.f32 -1.442695, %v7577_v42 }
 0x3d1   : > { %4287 = vst [vmem:[%s7291_s18 + $0x78] sm:$0xff] %v4216_v35   ;;  %v7583_v37 = vadd.f32 %v7555_v7, %v3034_v9  ;;  %v2249_v39 = vpop.f32.mrb[40].mxu1 }
 0x3d2   : > { %v5278_v24 = vpop.eup %5277  ;;  %5287 = vrcp.f32 %v3307_v57  ;;  %v2250_v3 = vadd.f32 %v2249_v39, %v8016_v55  ;;  %v7587_v20 = vpop.f32.mrb[204].mxu0 }
 0x3d3   : > { %5289 = vpow2.f32 %v4011_v30  ;;  %v4012_v63 = vmul.f32 -1.442695, %v7583_v37  ;;  %v4626_v27 = vpop.f32.mrb[41].mxu1  ;;  %v3466_v8 = vmul.f32 %v5278_v24, %v7518_v58  ;;  %v4766_v62 = vpop.f32.mrb[205].mxu0 }
 0x3d4   : > { %v5280_v53 = vpop.eup %5279  ;;  %v2252_v22 = vpop.f32.mrb[42].mxu1  ;;  %v3035_v31 = vadd.f32 %v7534_v49, %v2250_v3 }
 0x3d5   : > { %v5282_v51 = vpop.eup %5281  ;;  %v3467_v11 = vmul.f32 %v5280_v53, %v7524_v29  ;;  %5291 = vpow2.f32 %v4012_v63  ;;  %v2253_v23 = vadd.f32 %v2252_v22, %v7154_v40  ;;  %v7593_v48 = vpop.f32.mrb[206].mxu0 }
 0x3d6   : > { %v4627_v14 = vpop.f32.mrb[43].mxu1  ;;  %v3308_v45 = vadd.f32 1.0, %v5282_v51  ;;  %v4767_v61 = vpop.f32.mrb[207].mxu0  ;;  %v7596_v58 = vadd.f32 %v7555_v7, %v3035_v31  ;;  %v8019_v51 = vld [vmem:[#allocation15_spill] sm:$0xff] }
 0x3d7   : > { %v5284_v6 = vpop.eup %5283  ;;  %v4221_v4 = vpack.c.bf16 %v3467_v11, %v3466_v8  ;;  %v3036_v28 = vadd.f32 %v7547_v10, %v2253_v23 }
 0x3d8   : > { %5293 = vrcp.f32 %v3308_v45  ;;  %v3309_v43 = vadd.f32 1.0, %v5284_v6  ;;  %v4013_v29 = vmul.f32 -1.442695, %v7596_v58 }
 0x3d9   : > { %4288 = vst [vmem:[%s7291_s18 + $0x80] sm:$0xff] %v4221_v4   ;;  %v7602_v49 = vadd.f32 %v7555_v7, %v3036_v28  ;;  %v2257_v34 = vpop.f32.mrb[44].mxu1 }
 0x3da   : > { %v5286_v40 = vpop.eup %5285  ;;  %5295 = vrcp.f32 %v3309_v43  ;;  %v2258_v46 = vadd.f32 %v2257_v34, %v8017_v26  ;;  %v7606_v19 = vpop.f32.mrb[208].mxu0 }
 0x3db   : > { %5297 = vpow2.f32 %v4013_v29  ;;  %v4014_v47 = vmul.f32 -1.442695, %v7602_v49  ;;  %v4630_v41 = vpop.f32.mrb[45].mxu1  ;;  %v3468_v36 = vmul.f32 %v5286_v40, %v7537_v38  ;;  %v4770_v25 = vpop.f32.mrb[209].mxu0 }
 0x3dc   : > { %v5288_v10 = vpop.eup %5287  ;;  %v2260_v33 = vpop.f32.mrb[46].mxu1  ;;  %v3037_v50 = vadd.f32 %v7553_v56, %v2258_v46 }
 0x3dd   : > { %v5290_v5 = vpop.eup %5289  ;;  %v3469_v15 = vmul.f32 %v5288_v10, %v7543_v1  ;;  %5299 = vpow2.f32 %v4014_v47  ;;  %v2261_v52 = vadd.f32 %v2260_v33, %v8018_v16  ;;  %v7612_v12 = vpop.f32.mrb[210].mxu0 }
 0x3de   : > { %v4631_v21 = vpop.f32.mrb[47].mxu1  ;;  %v3310_v59 = vadd.f32 1.0, %v5290_v5  ;;  %v4771_v18 = vpop.f32.mrb[211].mxu0  ;;  %v7615_v38 = vadd.f32 %v7555_v7, %v3037_v50 }
 0x3df   : > { %v5292_v2 = vpop.eup %5291  ;;  %v4226_v32 = vpack.c.bf16 %v3469_v15, %v3468_v36  ;;  %v3038_v35 = vadd.f32 %v7568_v0, %v2261_v52  ;;  %v8020_v36 = vld [vmem:[#allocation17_spill] sm:$0xff]  ;;  %v8021_v18 = vld [vmem:[#allocation19_spill] sm:$0xff] }
 0x3e0   : > { %5301 = vrcp.f32 %v3310_v59  ;;  %v3311_v9 = vadd.f32 1.0, %v5292_v2  ;;  %v4015_v1 = vmul.f32 -1.442695, %v7615_v38 }
 0x3e1   : > { %4289 = vst [vmem:[%s7291_s18 + $0x88] sm:$0xff] %v4226_v32   ;;  %v7621_v56 = vadd.f32 %v7555_v7, %v3038_v35  ;;  %v2265_v30 = vpop.f32.mrb[48].mxu1 }
 0x3e2   : > { %v5294_v57 = vpop.eup %5293  ;;  %5303 = vrcp.f32 %v3311_v9  ;;  %v2266_v39 = vadd.f32 %v2265_v30, %v7175_v54  ;;  %v7625_v63 = vpop.f32.mrb[212].mxu0 }
 0x3e3   : > { %5305 = vpow2.f32 %v4015_v1  ;;  %v4016_v24 = vmul.f32 -1.442695, %v7621_v56  ;;  %v4634_v55 = vpop.f32.mrb[49].mxu1  ;;  %v3470_v3 = vmul.f32 %v5294_v57, %v7558_v17  ;;  %v4774_v27 = vpop.f32.mrb[213].mxu0 }
 0x3e4   : > { %v5296_v0 = vpop.eup %5295  ;;  %v2268_v53 = vpop.f32.mrb[50].mxu1  ;;  %v3039_v22 = vadd.f32 %v7574_v60, %v2266_v39 }
 0x3e5   : > { %v5298_v8 = vpop.eup %5297  ;;  %v3471_v62 = vmul.f32 %v5296_v0, %v7564_v13  ;;  %5307 = vpow2.f32 %v4016_v24  ;;  %v2269_v11 = vadd.f32 %v2268_v53, %v8019_v51  ;;  %v7631_v31 = vpop.f32.mrb[214].mxu0  ;;  %v8022_v24 = vld [vmem:[#allocation20_spill] sm:$0xff] }
 0x3e6   : > { %v4635_v54 = vpop.f32.mrb[51].mxu1  ;;  %v3312_v23 = vadd.f32 1.0, %v5298_v8  ;;  %v4775_v14 = vpop.f32.mrb[215].mxu0  ;;  %v7634_v17 = vadd.f32 %v7555_v7, %v3039_v22 }
 0x3e7   : > { %v5300_v45 = vpop.eup %5299  ;;  %v4231_v61 = vpack.c.bf16 %v3471_v62, %v3470_v3  ;;  %v3040_v6 = vadd.f32 %v7587_v20, %v2269_v11  ;;  %v8023_v11 = vld [vmem:[#allocation21_spill] sm:$0xff] }
 0x3e8   : > { %5309 = vrcp.f32 %v3312_v23  ;;  %v3313_v4 = vadd.f32 1.0, %v5300_v45  ;;  %v4017_v13 = vmul.f32 -1.442695, %v7634_v17 }
 0x3e9   : > { %4290 = vst [vmem:[%s7291_s18 + $0x90] sm:$0xff] %v4231_v61   ;;  %v7640_v60 = vadd.f32 %v7555_v7, %v3040_v6  ;;  %v2273_v43 = vpop.f32.mrb[52].mxu1 }
 0x3ea   : > { %v5302_v28 = vpop.eup %5301  ;;  %5311 = vrcp.f32 %v3313_v4  ;;  %v2274_v40 = vadd.f32 %v2273_v43, %v7185_v44  ;;  %v4638_v34 = vpop.f32.mrb[53].mxu1 }
 0x3eb   : > { %5313 = vpow2.f32 %v4017_v13  ;;  %v4018_v29 = vmul.f32 -1.442695, %v7640_v60  ;;  %v3472_v20 = vmul.f32 %v5302_v28, %v7577_v42  ;;  %v2276_v26 = vpop.f32.mrb[54].mxu1  ;;  %v8024_v13 = vld [vmem:[#allocation22_spill] sm:$0xff] }
 0x3ec   : > { %v5304_v47 = vpop.eup %5303  ;;  %v3041_v10 = vadd.f32 %v7593_v48, %v2274_v40  ;;  %v2277_v25 = vadd.f32 %v2276_v26, %v8020_v36  ;;  %v4639_v33 = vpop.f32.mrb[55].mxu1  ;;  %v8026_v36 = vld [vmem:[#allocation23_spill] sm:$0xff] }
 0x3ed   : > { %v5306_v46 = vpop.eup %5305  ;;  %v3473_v41 = vmul.f32 %v5304_v47, %v7583_v37  ;;  %5315 = vpow2.f32 %v4018_v29 }
 0x3ee   : > { %v3314_v5 = vadd.f32 1.0, %v5306_v46  ;;  %v7649_v44 = vadd.f32 %v7555_v7, %v3041_v10  ;;  %v3042_v16 = vadd.f32 %v7606_v19, %v2277_v25 }
 0x3ef   : > { %v5308_v15 = vpop.eup %5307  ;;  %v4236_v50 = vpack.c.bf16 %v3473_v41, %v3472_v20  ;;  %v8025_v20 = vld [vmem:[#allocation16_spill] sm:$0xff] }
 0x3f0   : > { %5317 = vrcp.f32 %v3314_v5  ;;  %v3315_v42 = vadd.f32 1.0, %v5308_v15  ;;  %v4019_v52 = vmul.f32 -1.442695, %v7649_v44  ;;  %v7655_v37 = vadd.f32 %v7555_v7, %v3042_v16 }
 0x3f1   : > { %4291 = vst [vmem:[%s7291_s18 + $0x98] sm:$0xff] %v4236_v50   ;;  %v2281_v21 = vpop.f32.mrb[56].mxu1 }
 0x3f2   : > { %v5310_v48 = vpop.eup %5309  ;;  %5319 = vrcp.f32 %v3315_v42  ;;  %v4020_v59 = vmul.f32 -1.442695, %v7655_v37  ;;  %v2282_v2 = vadd.f32 %v2281_v21, %v8021_v18  ;;  %v4642_v32 = vpop.f32.mrb[57].mxu1  ;;  %v8028_v21 = vld [vmem:[#allocation24_spill] sm:$0xff] }
 0x3f3   : > { %5321 = vpow2.f32 %v4019_v52  ;;  %v3474_v19 = vmul.f32 %v5310_v48, %v7596_v58  ;;  %v2284_v9 = vpop.f32.mrb[58].mxu1  ;;  %v8027_v52 = vld [vmem:[#allocation18_spill] sm:$0xff] }
 0x3f4   : > { %v5312_v35 = vpop.eup %5311  ;;  %5323 = vpow2.f32 %v4020_v59  ;;  %v3043_v30 = vadd.f32 %v7612_v12, %v2282_v2  ;;  %v2285_v39 = vadd.f32 %v2284_v9, %v8022_v24  ;;  %v4643_v55 = vpop.f32.mrb[59].mxu1  ;;  %v8029_v9 = vld [vmem:[#allocation50_spill] sm:$0xff] }
 0x3f5   : > { %v5314_v1 = vpop.eup %5313  ;;  %v3475_v57 = vmul.f32 %v5312_v35, %v7602_v49 }
 0x3f6   : > { %v3316_v0 = vadd.f32 1.0, %v5314_v1  ;;  %v7664_v53 = vadd.f32 %v7555_v7, %v3043_v30  ;;  %v3044_v8 = vadd.f32 %v7625_v63, %v2285_v39 }
 0x3f7   : > { %v5316_v3 = vpop.eup %5315  ;;  %v4241_v27 = vpack.c.bf16 %v3475_v57, %v3474_v19 }
 0x3f8   : > { %5325 = vrcp.f32 %v3316_v0  ;;  %v3317_v58 = vadd.f32 1.0, %v5316_v3  ;;  %v4021_v62 = vmul.f32 -1.442695, %v7664_v53  ;;  %v7670_v49 = vadd.f32 %v7555_v7, %v3044_v8 }
 0x3f9   : > { %4292 = vst [vmem:[%s7291_s18 + $0xa0] sm:$0xff] %v4241_v27   ;;  %v2289_v22 = vpop.f32.mrb[60].mxu1 }
 0x3fa   : > { %v5318_v12 = vpop.eup %5317  ;;  %5327 = vrcp.f32 %v3317_v58  ;;  %v4022_v51 = vmul.f32 -1.442695, %v7670_v49  ;;  %v2290_v54 = vadd.f32 %v2289_v22, %v8023_v11  ;;  %v4646_v23 = vpop.f32.mrb[61].mxu1 }
 0x3fb   : > { %5329 = vpow2.f32 %v4021_v62  ;;  %v3476_v63 = vmul.f32 %v5318_v12, %v7615_v38  ;;  %v2292_v45 = vpop.f32.mrb[62].mxu1 }
 0x3fc   : > { %v5320_v14 = vpop.eup %5319  ;;  %5331 = vpow2.f32 %v4022_v51  ;;  %v3045_v4 = vadd.f32 %v7631_v31, %v2290_v54  ;;  %v2293_v28 = vadd.f32 %v2292_v45, %v8024_v13  ;;  %v4647_v43 = vpop.f32.mrb[63].mxu1 }
 0x3fd   : > { %v5322_v61 = vpop.eup %5321  ;;  %v3477_v6 = vmul.f32 %v5320_v14, %v7621_v56 }
 0x3fe   : > { %v3318_v29 = vadd.f32 1.0, %v5322_v61  ;;  %v5324_v40 = vpop.eup %5323  ;;  %v7679_v47 = vadd.f32 %v7555_v7, %v3045_v4  ;;  %v3046_v26 = vadd.f32 %v8025_v20, %v2293_v28 }
 0x3ff   : > { %v4246_v34 = vpack.c.bf16 %v3477_v6, %v3476_v63  ;;  %v3319_v38 = vadd.f32 1.0, %v5324_v40 }
 0x400   : > { %5333 = vrcp.f32 %v3318_v29  ;;  %v4023_v46 = vmul.f32 -1.442695, %v7679_v47  ;;  %v3107_v56 = vadd.f32 %v7555_v7, %v3046_v26 }
 0x401   : > { %4293 = vst [vmem:[%s7291_s18 + $0xa8] sm:$0xff] %v4246_v34   ;;  %5335 = vrcp.f32 %v3319_v38  ;;  %v2297_v31 = vpop.f32.mrb[64].mxu1 }
 0x402   : > { %v5326_v41 = vpop.eup %5325  ;;  %5337 = vpow2.f32 %v4023_v46  ;;  %v4024_v10 = vmul.f32 -1.442695, %v3107_v56  ;;  %v2298_v25 = vadd.f32 %v2297_v31, %v8026_v36  ;;  %v4650_v33 = vpop.f32.mrb[65].mxu1 }
 0x403   : > { %v3478_v15 = vmul.f32 %v5326_v41, %v7634_v17  ;;  %v2300_v50 = vpop.f32.mrb[66].mxu1 }
 0x404   : > { %v5328_v5 = vpop.eup %5327  ;;  %5339 = vpow2.f32 %v4024_v10  ;;  %v3047_v48 = vadd.f32 %v8027_v52, %v2298_v25  ;;  %v2301_v59 = vadd.f32 %v2300_v50, %v8028_v21  ;;  %v4651_v18 = vpop.f32.mrb[67].mxu1 }
 0x405   : > { %v5330_v16 = vpop.eup %5329  ;;  %v3479_v42 = vmul.f32 %v5328_v5, %v7640_v60 }
 0x406   : > { %v3320_v2 = vadd.f32 1.0, %v5330_v16  ;;  %v5332_v32 = vpop.eup %5331  ;;  %v3108_v19 = vadd.f32 %v7555_v7, %v3047_v48  ;;  %v3048_v1 = vadd.f32 %v8029_v9, %v2301_v59 }
 0x407   : > { %v4251_v35 = vpack.c.bf16 %v3479_v42, %v3478_v15  ;;  %v3321_v57 = vadd.f32 1.0, %v5332_v32 }
 0x408   : > { %5341 = vrcp.f32 %v3320_v2  ;;  %v4025_v17 = vmul.f32 -1.442695, %v3108_v19  ;;  %v3109_v60 = vadd.f32 %v7555_v7, %v3048_v1 }
 0x409   : > { %4294 = vst [vmem:[%s7291_s18 + $0xb0] sm:$0xff] %v4251_v35   ;;  %5343 = vrcp.f32 %v3321_v57 }
 0x40a   : > { %v5334_v30 = vpop.eup %5333  ;;  %5345 = vpow2.f32 %v4025_v17  ;;  %v4026_v24 = vmul.f32 -1.442695, %v3109_v60 }
 0x40b   : > { %v5336_v39 = vpop.eup %5335  ;;  %v3480_v0 = vmul.f32 %v5334_v30, %v7649_v44 }
 0x40c   : > { %v5338_v55 = vpop.eup %5337  ;;  %v3481_v3 = vmul.f32 %v5336_v39, %v7655_v37  ;;  %5347 = vpow2.f32 %v4026_v24 }
 0x40d   : > { %v3322_v27 = vadd.f32 1.0, %v5338_v55 }
 0x40e   : > { %v5340_v8 = vpop.eup %5339  ;;  %v4256_v58 = vpack.c.bf16 %v3481_v3, %v3480_v0 }
 0x40f   : > { %5349 = vrcp.f32 %v3322_v27  ;;  %v3323_v62 = vadd.f32 1.0, %v5340_v8 }
 0x410   : > { %4295 = vst [vmem:[%s7291_s18 + $0xb8] sm:$0xff] %v4256_v58  }
 0x411   : > { %5351 = vrcp.f32 %v3323_v62 }
 0x412   : > { %v5342_v12 = vpop.eup %5341 }
 0x413   : > { %v5344_v7 = vpop.eup %5343  ;;  %v3482_v51 = vmul.f32 %v5342_v12, %v7664_v53 }
 0x414   : > { %v5346_v22 = vpop.eup %5345  ;;  %v3483_v44 = vmul.f32 %v5344_v7, %v7670_v49 }
 0x415   : > { %v3324_v37 = vadd.f32 1.0, %v5346_v22 }
 0x416   : > { %v5348_v11 = vpop.eup %5347  ;;  %v4261_v54 = vpack.c.bf16 %v3483_v44, %v3482_v51 }
 0x417   : > { %5353 = vrcp.f32 %v3324_v37  ;;  %v3325_v23 = vadd.f32 1.0, %v5348_v11 }
 0x418   : > { %4296 = vst [vmem:[%s7291_s18 + $0xc0] sm:$0xff] %v4261_v54  }
 0x419   : > { %v5350_v14 = vpop.eup %5349  ;;  %5355 = vrcp.f32 %v3325_v23 }
 0x41a   : > { %v3484_v45 = vmul.f32 %v5350_v14, %v7679_v47 }
 0x41b   : > { %v5352_v63 = vpop.eup %5351 }
 0x41c   : > { %v3485_v61 = vmul.f32 %v5352_v63, %v3107_v56 }
 0x41e   : > { %v4266_v53 = vpack.c.bf16 %v3485_v61, %v3484_v45 }
 0x420   : > { %4297 = vst [vmem:[%s7291_s18 + $0xc8] sm:$0xff] %v4266_v53  }
 0x421   : > { %v5354_v6 = vpop.eup %5353 }
 0x422   : > { %v3486_v4 = vmul.f32 %v5354_v6, %v3108_v19 }
 0x423   : > { %v5356_v49 = vpop.eup %5355 }
 0x424   : > { %v3487_v13 = vmul.f32 %v5356_v49, %v3109_v60 }
 0x426   : > { %v4271_v28 = vpack.c.bf16 %v3487_v13, %v3486_v4 }
 0x428   : > { %4298 = vst [vmem:[%s7291_s18 + $0xd0] sm:$0xff] %v4271_v28  }
 0x429   : > { %5458 = shalt.err (!%p5455_p1)
}
 0x42a   : > { %s5459_s11 = scalar_lea.hbm %s7707_s22, 3456  ;;  %s5463_s28 = scalar_lea.hbm %s7757_s3, 6912 }
 0x42b   : > { %p5460_p13 = scmp.ne.s32.totalorder %s7707_s22, %s5459_s11  ;;  %p5464_p4 = scmp.lt.u32.totalorder %s7707_s22, %s7757_s3 }
 0x42c   : > { %p5465_p5 = scmp.lt.u32.totalorder %s5463_s28, %s5459_s11  ;;  %p5467_p11 = scmp.lt.u32.totalorder %s5459_s11, %s7707_s22 }
 0x42d   : > { %p5461_p6 = pnand %p5460_p13, %p8030_p0 }
 0x42e   : > { %p5466_p8 = por %p5465_p5, %p5464_p4 }
 0x42f   : > { %p5462_p10 = pneg %p5461_p6 }
 0x430   : > { %p5468_p2 = por %p5467_p11, %p5466_p8 }
 0x432   : > { %p5469_p3 = pnand %p5468_p2, %p5462_p10 }
 0x434   : > { %5472 = shalt.err (!%p5469_p3)
}
 0x435   : > { %s5526_s21 = smov 64   ;;  %s5527_s18 = smov 4  }
 0x436   : > { %4952 = dma.vmem_to_hbm [thread:$0]  (%p8030_p0), %s7709_s7, 3456, %s7707_s22, %s3759_s29, %s5526_s21, %s5526_s21, %s5527_s18  }
 0x437 PF: > { %s3787_s20 = sand.u32 1, %s5503_s12   ;;  %p8031_p7 = scmp.ne.s32.totalorder %s7866_s19, 0 }
 0x438   : > { %p8032_p9 = scmp.ge.s32.totalorder %s5515_s15, 2  ;;  %s3788_s8 = scalar_lea.sflag [#allocation5], %s3787_s20 }
 0x43a   : > { %p4966_p12 = pnand %p8032_p9, %p8031_p7 }
 0x43c   : > { %5498 = dma.done.wait (!%p4966_p12), %s3788_s8, 3456  }
 0x43d   : > { %5500 = vsyncadd (!%p4966_p12), %s3788_s8, 4294963840  ;;  %p17_p1 = scmp.ge.s32.totalorder %s5662_s5, 4   ;;  %s8033_s12 = smov %s5507_s13 }
 0x43e   : > { %s8034_s13 = smov %s5511_s14  ;;  %s8035_s14 = smov %s5678_s10 }
 0x43f   : > { %s8036_s15 = smov %s5662_s5  ;;  %19 = sbr.rel (!%p17_p1) target bundleno = 6 (0x6), region = 87 }
 0x446   :  { %3793 = vsyncpa [#allocation4], 1 }
 0x447   :  { %3795 = vsyncpa [#allocation4 + $0x1], 1 }
 0x448   :  { %3796 = vsyncpa [#allocation7], 1 }
 0x449   :  { %3797 = vsyncpa [#allocation5], 1 }
 0x44a   :  { %3799 = vsyncpa [#allocation5 + $0x1], 1 }

</bundles_post_ra>
